<compile_context>
chip_gen: v5e
topology: v5e:2x2
jax: 0.10.0
libtpu: 0.0.40
codegen_flags: <defaults>
</compile_context>

<pallas_src>
import jax
import jax.numpy as jnp
from jax import lax
from jax.experimental import pallas as pl
from jax.experimental.pallas import tpu as pltpu


# For output row oh = 2*m + a, contributions come from input row m + dh and
# kernel row kh:
#   a == 0: (dh= 0, kh=1), (dh=-1, kh=3)
#   a == 1: (dh=+1, kh=0), (dh= 0, kh=2)
# (identical table for columns: ow = 2*k + b, iw = k + dw, kernel col kw).
_PAIRS = (((0, 1), (-1, 3)),
          ((1, 0), (0, 2)))


def _convt_kernel(xm1_ref, x0_ref, xp1_ref, w_ref, b_ref, out_ref):
    """One (sample, H-tile) step of the k=4 / s=2 / p=1 transposed conv.

    xm1/x0/xp1 : (1, TH, W+2, Cin)  rows m-1 / m / m+1, columns zero-padded
    w_ref      : (16, Cin, Cout)    per-(parity, tap) dense weights
    b_ref      : (1, 4*Cout)        bias tiled over the 4 parity classes
    out_ref    : (1, TH, W, 4*Cout) parity folded into the channel dim
    """
    TH = out_ref.shape[1]
    W = out_ref.shape[2]
    Cin = x0_ref.shape[3]
    Cout = w_ref.shape[2]

    rows = (xm1_ref[0], x0_ref[0], xp1_ref[0])  # indexed by dh + 1

    # The 9 distinct shifted views, built exactly once and shared between the
    # parity classes.  2-D (M, K) form keeps the MXU matmuls clean.
    views = {}
    for dh in (-1, 0, 1):
        xr = rows[dh + 1]                                   # (TH, W+2, Cin)
        for dw in (-1, 0, 1):
            v = xr[:, dw + 1:dw + 1 + W, :]                 # (TH, W, Cin)
            views[(dh, dw)] = v.reshape(TH * W, Cin)

    parts = []
    t = 0
    for a in range(2):
        for b in range(2):
            acc = None
            for (dh, _kh) in _PAIRS[a]:
                for (dw, _kw) in _PAIRS[b]:
                    contrib = jnp.dot(views[(dh, dw)], w_ref[t],
                                      preferred_element_type=jnp.float32)
                    acc = contrib if acc is None else acc + contrib
                    t += 1
            parts.append(acc)                               # (TH*W, Cout) f32

    out = jnp.concatenate(parts, axis=-1) + b_ref[...]      # (TH*W, 4*Cout)
    out_ref[0] = out.reshape(TH, W, 4 * Cout).astype(out_ref.dtype)


def _pack_weight(weight):
    """(Cin, Cout, 4, 4) torch ConvTranspose2d weight -> (16, Cin, Cout),
    stacked per (parity, tap) in the kernel's loop order."""
    w_hwio = jnp.transpose(weight, (2, 3, 0, 1))            # (kh, kw, Cin, Cout)
    taps = []
    for a in range(2):
        for b in range(2):
            for (_dh, kh) in _PAIRS[a]:
                for (_dw, kw) in _PAIRS[b]:
                    taps.append(w_hwio[kh, kw])
    return jnp.stack(taps, axis=0)


def _block_vmem_bytes(th, W, Cin, Cout_p, itemsize):
    in_block = th * (W + 2) * Cin * itemsize                # one row-shift copy
    out_block = th * W * 4 * Cout_p * itemsize
    weights = 16 * Cin * Cout_p * itemsize + 4 * Cout_p * itemsize
    # in-kernel working set: 9 f32 shifted views + 4 f32 parity accumulators
    work = 9 * th * W * Cin * 4 + 4 * th * W * Cout_p * 4
    # 3 inputs + 1 output double-buffered by the pipeline; weights at most 2x.
    return 2 * (3 * in_block + out_block) + 2 * weights + work


def _pick_tile_h(H, W, Cin, Cout_p, itemsize, budget=40 * 1024 * 1024):
    for th in range(H, 0, -1):
        if H % th == 0 and _block_vmem_bytes(th, W, Cin, Cout_p,
                                             itemsize) <= budget:
            return th
    return 1


def verse_adapt_forward(x_nchw, weight, bias, *, tile_h=None):
    """ConvTranspose2d(kernel_size=4, stride=2, padding=1) forward.

    x_nchw : (N, Cin, H, W)
    weight : (Cin, Cout, 4, 4)   (PyTorch ConvTranspose2d weight layout)
    bias   : (Cout,)
    returns: (N, Cout, 2H, 2W)
    """
    N, Cin, H, W = x_nchw.shape
    Cout = weight.shape[1]
    dtype = x_nchw.dtype
    itemsize = jnp.dtype(dtype).itemsize

    # Lane-dense output: pad Cout so the folded channel dim (4*Cout) reaches a
    # full 128-lane vreg when Cout is small; padding is sliced off afterwards.
    Cout_p = 32 if Cout < 32 else Cout
    if Cout_p != Cout:
        weight = jnp.pad(weight, ((0, 0), (0, Cout_p - Cout), (0, 0), (0, 0)))
        bias_p = jnp.pad(bias, (0, Cout_p - Cout))
    else:
        bias_p = bias

    if tile_h is None:
        tile_h = _pick_tile_h(H, W, Cin, Cout_p, itemsize)
    assert H % tile_h == 0, (H, tile_h)
    n_h = H // tile_h

    # Host-side prep: NHWC, column halo (pad=1), and the +-1 row shifts baked
    # into three arrays so the H-tiled kernel needs no halo rows.
    x_nhwc = jnp.transpose(x_nchw, (0, 2, 3, 1))                      # (N,H,W,Cin)
    x_m1 = jnp.pad(x_nhwc, ((0, 0), (1, 0), (1, 1), (0, 0)))[:, :H]   # row m-1
    x_0 = jnp.pad(x_nhwc, ((0, 0), (0, 0), (1, 1), (0, 0)))           # row m
    x_p1 = jnp.pad(x_nhwc, ((0, 0), (0, 1), (1, 1), (0, 0)))[:, 1:]   # row m+1

    w_pk = _pack_weight(weight)                          # (16, Cin, Cout_p)
    b_pk = jnp.tile(bias_p, 4).reshape(1, 4 * Cout_p)    # (1, 4*Cout_p)

    vmem_limit = int(min(
        max(32 * 1024 * 1024,
            2 * _block_vmem_bytes(tile_h, W, Cin, Cout_p, itemsize)),
        64 * 1024 * 1024))

    def build_and_call(const_pipeline_mode):
        in_spec = pl.BlockSpec((1, tile_h, W + 2, Cin),
                               lambda n, h: (n, h, 0, 0))
        if const_pipeline_mode is None:
            w_spec = pl.BlockSpec((16, Cin, Cout_p), lambda n, h: (0, 0, 0))
            b_spec = pl.BlockSpec((1, 4 * Cout_p), lambda n, h: (0, 0))
        else:
            w_spec = pl.BlockSpec((16, Cin, Cout_p), lambda n, h: (0, 0, 0),
                                  pipeline_mode=const_pipeline_mode)
            b_spec = pl.BlockSpec((1, 4 * Cout_p), lambda n, h: (0, 0),
                                  pipeline_mode=const_pipeline_mode)
        fn = pl.pallas_call(
            _convt_kernel,
            out_shape=jax.ShapeDtypeStruct((N, H, W, 4 * Cout_p), dtype),
            grid_spec=pltpu.PrefetchScalarGridSpec(
                num_scalar_prefetch=0,
                grid=(N, n_h),
                in_specs=[in_spec, in_spec, in_spec, w_spec, b_spec],
                out_specs=pl.BlockSpec((1, tile_h, W, 4 * Cout_p),
                                       lambda n, h: (n, h, 0, 0)),
            ),
            compiler_params=pltpu.CompilerParams(
                dimension_semantics=("parallel", "parallel"),
                vmem_limit_bytes=vmem_limit),
        )
        return fn(x_m1, x_0, x_p1, w_pk, b_pk)

    try:
        # Grid-invariant weight/bias: single-buffered to save VMEM.
        out4 = build_and_call(pl.Buffered(1))
    except Exception:
        # Fallback for Pallas versions that reject Buffered(1) specs.
        out4 = build_and_call(None)

    # out4[n, m, k, (2a+b)*Cout_p + co] == out[n, co, 2m+a, 2k+b]
    out6 = out4.reshape(N, H, W, 2, 2, Cout_p)[..., :Cout]
    out = jnp.transpose(out6, (0, 5, 1, 3, 2, 4)).reshape(N, Cout, 2 * H, 2 * W)
    return out


def _reference(x_nchw, weight, bias):
    # Transposed conv as lhs-dilated regular conv with flipped / swapped kernel.
    wf = jnp.flip(jnp.transpose(weight, (1, 0, 2, 3)), axis=(2, 3))  # (Cout,Cin,4,4)
    out = lax.conv_general_dilated(
        x_nchw, wf,
        window_strides=(1, 1),
        padding=[(2, 2), (2, 2)],
        lhs_dilation=(2, 2),
        dimension_numbers=('NCHW', 'OIHW', 'NCHW'))
    return out + bias[None, :, None, None]


if __name__ == "__main__":
    key = jax.random.PRNGKey(0)
    kx, kw, kb = jax.random.split(key, 3)

    N, Cin, Cout, H, W = 2, 4, 8, 16, 16
    x = jax.random.normal(kx, (N, Cin, H, W), dtype=jnp.float32)
    weight = jax.random.normal(kw, (Cin, Cout, 4, 4), dtype=jnp.float32) * 0.1
    bias = jax.random.normal(kb, (Cout,), dtype=jnp.float32) * 0.1

    ref = _reference(x, weight, bias)

    # Multi-tile path (grid = (N, 2)).
    out_tiled = jax.block_until_ready(verse_adapt_forward(x, weight, bias,
                                                          tile_h=8))
    assert out_tiled.shape == (N, Cout, 2 * H, 2 * W), out_tiled.shape
    assert jnp.allclose(out_tiled, ref, rtol=1e-4, atol=1e-4), \
        float(jnp.max(jnp.abs(out_tiled - ref)))

    # Auto-tile path.
    out_auto = jax.block_until_ready(verse_adapt_forward(x, weight, bias))
    assert jnp.allclose(out_auto, ref, rtol=1e-4, atol=1e-4), \
        float(jnp.max(jnp.abs(out_auto - ref)))

    print("KERNEL_OK")
</pallas_src>

<mosaic_0001>
module attributes {stable_mosaic.version = 11 : i64} {
  func.func @_convt_kernel(%arg0: i32, %arg1: i32, %arg2: memref<1x8x18x4xf32, #tpu.memory_space<vmem>>, %arg3: memref<1x8x18x4xf32, #tpu.memory_space<vmem>>, %arg4: memref<1x8x18x4xf32, #tpu.memory_space<vmem>>, %arg5: memref<16x4x32xf32, #tpu.memory_space<vmem>>, %arg6: memref<1x128xf32, #tpu.memory_space<vmem>>, %arg7: memref<1x8x16x128xf32, #tpu.memory_space<vmem>>) attributes {dimension_semantics = [#tpu.dimension_semantics<parallel>, #tpu.dimension_semantics<parallel>], iteration_bounds = array<i64: 2, 2>, scalar_prefetch = 0 : i64, scratch_operands = 0 : i64, tpu.core_type = #tpu.core_type<tc>, window_params = [{transform_indices = @transform_0, window_bounds = array<i64: 1, 8, 18, 4>}, {transform_indices = @transform_1, window_bounds = array<i64: 1, 8, 18, 4>}, {transform_indices = @transform_2, window_bounds = array<i64: 1, 8, 18, 4>}, {pipeline_mode = #tpu.pipeline_mode<synchronous>, transform_indices = @transform_3, window_bounds = array<i64: 16, 4, 32>}, {pipeline_mode = #tpu.pipeline_mode<synchronous>, transform_indices = @transform_4, window_bounds = array<i64: 1, 128>}, {transform_indices = @transform_5, window_bounds = array<i64: 1, 8, 16, 128>}]} {
    %c0 = arith.constant 0 : index
    %c0_0 = arith.constant 0 : index
    %c0_1 = arith.constant 0 : index
    %c0_2 = arith.constant 0 : index
    %0 = vector.load %arg2[%c0, %c0_0, %c0_1, %c0_2] : memref<1x8x18x4xf32, #tpu.memory_space<vmem>>, vector<1x8x18x4xf32>
    %1 = vector.shape_cast %0 : vector<1x8x18x4xf32> to vector<8x18x4xf32>
    %c0_3 = arith.constant 0 : index
    %c0_4 = arith.constant 0 : index
    %c0_5 = arith.constant 0 : index
    %c0_6 = arith.constant 0 : index
    %2 = vector.load %arg3[%c0_3, %c0_4, %c0_5, %c0_6] : memref<1x8x18x4xf32, #tpu.memory_space<vmem>>, vector<1x8x18x4xf32>
    %3 = vector.shape_cast %2 : vector<1x8x18x4xf32> to vector<8x18x4xf32>
    %c0_7 = arith.constant 0 : index
    %c0_8 = arith.constant 0 : index
    %c0_9 = arith.constant 0 : index
    %c0_10 = arith.constant 0 : index
    %4 = vector.load %arg4[%c0_7, %c0_8, %c0_9, %c0_10] : memref<1x8x18x4xf32, #tpu.memory_space<vmem>>, vector<1x8x18x4xf32>
    %5 = vector.shape_cast %4 : vector<1x8x18x4xf32> to vector<8x18x4xf32>
    %6 = vector.extract_strided_slice %1 {offsets = [0, 0, 0], sizes = [8, 16, 4], strides = [1, 1, 1]} : vector<8x18x4xf32> to vector<8x16x4xf32>
    %7 = vector.shape_cast %6 : vector<8x16x4xf32> to vector<128x4xf32>
    %8 = vector.extract_strided_slice %1 {offsets = [0, 1, 0], sizes = [8, 16, 4], strides = [1, 1, 1]} : vector<8x18x4xf32> to vector<8x16x4xf32>
    %9 = vector.shape_cast %8 : vector<8x16x4xf32> to vector<128x4xf32>
    %10 = vector.extract_strided_slice %1 {offsets = [0, 2, 0], sizes = [8, 16, 4], strides = [1, 1, 1]} : vector<8x18x4xf32> to vector<8x16x4xf32>
    %11 = vector.shape_cast %10 : vector<8x16x4xf32> to vector<128x4xf32>
    %12 = vector.extract_strided_slice %3 {offsets = [0, 0, 0], sizes = [8, 16, 4], strides = [1, 1, 1]} : vector<8x18x4xf32> to vector<8x16x4xf32>
    %13 = vector.shape_cast %12 : vector<8x16x4xf32> to vector<128x4xf32>
    %14 = vector.extract_strided_slice %3 {offsets = [0, 1, 0], sizes = [8, 16, 4], strides = [1, 1, 1]} : vector<8x18x4xf32> to vector<8x16x4xf32>
    %15 = vector.shape_cast %14 : vector<8x16x4xf32> to vector<128x4xf32>
    %16 = vector.extract_strided_slice %3 {offsets = [0, 2, 0], sizes = [8, 16, 4], strides = [1, 1, 1]} : vector<8x18x4xf32> to vector<8x16x4xf32>
    %17 = vector.shape_cast %16 : vector<8x16x4xf32> to vector<128x4xf32>
    %18 = vector.extract_strided_slice %5 {offsets = [0, 0, 0], sizes = [8, 16, 4], strides = [1, 1, 1]} : vector<8x18x4xf32> to vector<8x16x4xf32>
    %19 = vector.shape_cast %18 : vector<8x16x4xf32> to vector<128x4xf32>
    %20 = vector.extract_strided_slice %5 {offsets = [0, 1, 0], sizes = [8, 16, 4], strides = [1, 1, 1]} : vector<8x18x4xf32> to vector<8x16x4xf32>
    %21 = vector.shape_cast %20 : vector<8x16x4xf32> to vector<128x4xf32>
    %22 = vector.extract_strided_slice %5 {offsets = [0, 2, 0], sizes = [8, 16, 4], strides = [1, 1, 1]} : vector<8x18x4xf32> to vector<8x16x4xf32>
    %23 = vector.shape_cast %22 : vector<8x16x4xf32> to vector<128x4xf32>
    %c0_11 = arith.constant 0 : index
    %c0_12 = arith.constant 0 : index
    %c0_13 = arith.constant 0 : index
    %24 = vector.load %arg5[%c0_11, %c0_12, %c0_13] : memref<16x4x32xf32, #tpu.memory_space<vmem>>, vector<1x4x32xf32>
    %25 = vector.shape_cast %24 : vector<1x4x32xf32> to vector<4x32xf32>
    %cst = arith.constant dense<0.000000e+00> : vector<128x32xf32>
    %26 = tpu.matmul %15, %25, %cst {dimension_numbers = #tpu.dot_dimension_numbers<[1], [0], [0], [1], [0, 0, 1, 1], [], []>} : vector<128x4xf32>, vector<4x32xf32>, vector<128x32xf32> -> vector<128x32xf32>
    %c1 = arith.constant 1 : index
    %c0_14 = arith.constant 0 : index
    %c0_15 = arith.constant 0 : index
    %27 = vector.load %arg5[%c1, %c0_14, %c0_15] : memref<16x4x32xf32, #tpu.memory_space<vmem>>, vector<1x4x32xf32>
    %28 = vector.shape_cast %27 : vector<1x4x32xf32> to vector<4x32xf32>
    %cst_16 = arith.constant dense<0.000000e+00> : vector<128x32xf32>
    %29 = tpu.matmul %13, %28, %cst_16 {dimension_numbers = #tpu.dot_dimension_numbers<[1], [0], [0], [1], [0, 0, 1, 1], [], []>} : vector<128x4xf32>, vector<4x32xf32>, vector<128x32xf32> -> vector<128x32xf32>
    %30 = arith.addf %26, %29 : vector<128x32xf32>
    %c2 = arith.constant 2 : index
    %c0_17 = arith.constant 0 : index
    %c0_18 = arith.constant 0 : index
    %31 = vector.load %arg5[%c2, %c0_17, %c0_18] : memref<16x4x32xf32, #tpu.memory_space<vmem>>, vector<1x4x32xf32>
    %32 = vector.shape_cast %31 : vector<1x4x32xf32> to vector<4x32xf32>
    %cst_19 = arith.constant dense<0.000000e+00> : vector<128x32xf32>
    %33 = tpu.matmul %9, %32, %cst_19 {dimension_numbers = #tpu.dot_dimension_numbers<[1], [0], [0], [1], [0, 0, 1, 1], [], []>} : vector<128x4xf32>, vector<4x32xf32>, vector<128x32xf32> -> vector<128x32xf32>
    %34 = arith.addf %30, %33 : vector<128x32xf32>
    %c3 = arith.constant 3 : index
    %c0_20 = arith.constant 0 : index
    %c0_21 = arith.constant 0 : index
    %35 = vector.load %arg5[%c3, %c0_20, %c0_21] : memref<16x4x32xf32, #tpu.memory_space<vmem>>, vector<1x4x32xf32>
    %36 = vector.shape_cast %35 : vector<1x4x32xf32> to vector<4x32xf32>
    %cst_22 = arith.constant dense<0.000000e+00> : vector<128x32xf32>
    %37 = tpu.matmul %7, %36, %cst_22 {dimension_numbers = #tpu.dot_dimension_numbers<[1], [0], [0], [1], [0, 0, 1, 1], [], []>} : vector<128x4xf32>, vector<4x32xf32>, vector<128x32xf32> -> vector<128x32xf32>
    %38 = arith.addf %34, %37 : vector<128x32xf32>
    %c4 = arith.constant 4 : index
    %c0_23 = arith.constant 0 : index
    %c0_24 = arith.constant 0 : index
    %39 = vector.load %arg5[%c4, %c0_23, %c0_24] : memref<16x4x32xf32, #tpu.memory_space<vmem>>, vector<1x4x32xf32>
    %40 = vector.shape_cast %39 : vector<1x4x32xf32> to vector<4x32xf32>
    %cst_25 = arith.constant dense<0.000000e+00> : vector<128x32xf32>
    %41 = tpu.matmul %17, %40, %cst_25 {dimension_numbers = #tpu.dot_dimension_numbers<[1], [0], [0], [1], [0, 0, 1, 1], [], []>} : vector<128x4xf32>, vector<4x32xf32>, vector<128x32xf32> -> vector<128x32xf32>
    %c5 = arith.constant 5 : index
    %c0_26 = arith.constant 0 : index
    %c0_27 = arith.constant 0 : index
    %42 = vector.load %arg5[%c5, %c0_26, %c0_27] : memref<16x4x32xf32, #tpu.memory_space<vmem>>, vector<1x4x32xf32>
    %43 = vector.shape_cast %42 : vector<1x4x32xf32> to vector<4x32xf32>
    %cst_28 = arith.constant dense<0.000000e+00> : vector<128x32xf32>
    %44 = tpu.matmul %15, %43, %cst_28 {dimension_numbers = #tpu.dot_dimension_numbers<[1], [0], [0], [1], [0, 0, 1, 1], [], []>} : vector<128x4xf32>, vector<4x32xf32>, vector<128x32xf32> -> vector<128x32xf32>
    %45 = arith.addf %41, %44 : vector<128x32xf32>
    %c6 = arith.constant 6 : index
    %c0_29 = arith.constant 0 : index
    %c0_30 = arith.constant 0 : index
    %46 = vector.load %arg5[%c6, %c0_29, %c0_30] : memref<16x4x32xf32, #tpu.memory_space<vmem>>, vector<1x4x32xf32>
    %47 = vector.shape_cast %46 : vector<1x4x32xf32> to vector<4x32xf32>
    %cst_31 = arith.constant dense<0.000000e+00> : vector<128x32xf32>
    %48 = tpu.matmul %11, %47, %cst_31 {dimension_numbers = #tpu.dot_dimension_numbers<[1], [0], [0], [1], [0, 0, 1, 1], [], []>} : vector<128x4xf32>, vector<4x32xf32>, vector<128x32xf32> -> vector<128x32xf32>
    %49 = arith.addf %45, %48 : vector<128x32xf32>
    %c7 = arith.constant 7 : index
    %c0_32 = arith.constant 0 : index
    %c0_33 = arith.constant 0 : index
    %50 = vector.load %arg5[%c7, %c0_32, %c0_33] : memref<16x4x32xf32, #tpu.memory_space<vmem>>, vector<1x4x32xf32>
    %51 = vector.shape_cast %50 : vector<1x4x32xf32> to vector<4x32xf32>
    %cst_34 = arith.constant dense<0.000000e+00> : vector<128x32xf32>
    %52 = tpu.matmul %9, %51, %cst_34 {dimension_numbers = #tpu.dot_dimension_numbers<[1], [0], [0], [1], [0, 0, 1, 1], [], []>} : vector<128x4xf32>, vector<4x32xf32>, vector<128x32xf32> -> vector<128x32xf32>
    %53 = arith.addf %49, %52 : vector<128x32xf32>
    %c8 = arith.constant 8 : index
    %c0_35 = arith.constant 0 : index
    %c0_36 = arith.constant 0 : index
    %54 = vector.load %arg5[%c8, %c0_35, %c0_36] : memref<16x4x32xf32, #tpu.memory_space<vmem>>, vector<1x4x32xf32>
    %55 = vector.shape_cast %54 : vector<1x4x32xf32> to vector<4x32xf32>
    %cst_37 = arith.constant dense<0.000000e+00> : vector<128x32xf32>
    %56 = tpu.matmul %21, %55, %cst_37 {dimension_numbers = #tpu.dot_dimension_numbers<[1], [0], [0], [1], [0, 0, 1, 1], [], []>} : vector<128x4xf32>, vector<4x32xf32>, vector<128x32xf32> -> vector<128x32xf32>
    %c9 = arith.constant 9 : index
    %c0_38 = arith.constant 0 : index
    %c0_39 = arith.constant 0 : index
    %57 = vector.load %arg5[%c9, %c0_38, %c0_39] : memref<16x4x32xf32, #tpu.memory_space<vmem>>, vector<1x4x32xf32>
    %58 = vector.shape_cast %57 : vector<1x4x32xf32> to vector<4x32xf32>
    %cst_40 = arith.constant dense<0.000000e+00> : vector<128x32xf32>
    %59 = tpu.matmul %19, %58, %cst_40 {dimension_numbers = #tpu.dot_dimension_numbers<[1], [0], [0], [1], [0, 0, 1, 1], [], []>} : vector<128x4xf32>, vector<4x32xf32>, vector<128x32xf32> -> vector<128x32xf32>
    %60 = arith.addf %56, %59 : vector<128x32xf32>
    %c10 = arith.constant 10 : index
    %c0_41 = arith.constant 0 : index
    %c0_42 = arith.constant 0 : index
    %61 = vector.load %arg5[%c10, %c0_41, %c0_42] : memref<16x4x32xf32, #tpu.memory_space<vmem>>, vector<1x4x32xf32>
    %62 = vector.shape_cast %61 : vector<1x4x32xf32> to vector<4x32xf32>
    %cst_43 = arith.constant dense<0.000000e+00> : vector<128x32xf32>
    %63 = tpu.matmul %15, %62, %cst_43 {dimension_numbers = #tpu.dot_dimension_numbers<[1], [0], [0], [1], [0, 0, 1, 1], [], []>} : vector<128x4xf32>, vector<4x32xf32>, vector<128x32xf32> -> vector<128x32xf32>
    %64 = arith.addf %60, %63 : vector<128x32xf32>
    %c11 = arith.constant 11 : index
    %c0_44 = arith.constant 0 : index
    %c0_45 = arith.constant 0 : index
    %65 = vector.load %arg5[%c11, %c0_44, %c0_45] : memref<16x4x32xf32, #tpu.memory_space<vmem>>, vector<1x4x32xf32>
    %66 = vector.shape_cast %65 : vector<1x4x32xf32> to vector<4x32xf32>
    %cst_46 = arith.constant dense<0.000000e+00> : vector<128x32xf32>
    %67 = tpu.matmul %13, %66, %cst_46 {dimension_numbers = #tpu.dot_dimension_numbers<[1], [0], [0], [1], [0, 0, 1, 1], [], []>} : vector<128x4xf32>, vector<4x32xf32>, vector<128x32xf32> -> vector<128x32xf32>
    %68 = arith.addf %64, %67 : vector<128x32xf32>
    %c12 = arith.constant 12 : index
    %c0_47 = arith.constant 0 : index
    %c0_48 = arith.constant 0 : index
    %69 = vector.load %arg5[%c12, %c0_47, %c0_48] : memref<16x4x32xf32, #tpu.memory_space<vmem>>, vector<1x4x32xf32>
    %70 = vector.shape_cast %69 : vector<1x4x32xf32> to vector<4x32xf32>
    %cst_49 = arith.constant dense<0.000000e+00> : vector<128x32xf32>
    %71 = tpu.matmul %23, %70, %cst_49 {dimension_numbers = #tpu.dot_dimension_numbers<[1], [0], [0], [1], [0, 0, 1, 1], [], []>} : vector<128x4xf32>, vector<4x32xf32>, vector<128x32xf32> -> vector<128x32xf32>
    %c13 = arith.constant 13 : index
    %c0_50 = arith.constant 0 : index
    %c0_51 = arith.constant 0 : index
    %72 = vector.load %arg5[%c13, %c0_50, %c0_51] : memref<16x4x32xf32, #tpu.memory_space<vmem>>, vector<1x4x32xf32>
    %73 = vector.shape_cast %72 : vector<1x4x32xf32> to vector<4x32xf32>
    %cst_52 = arith.constant dense<0.000000e+00> : vector<128x32xf32>
    %74 = tpu.matmul %21, %73, %cst_52 {dimension_numbers = #tpu.dot_dimension_numbers<[1], [0], [0], [1], [0, 0, 1, 1], [], []>} : vector<128x4xf32>, vector<4x32xf32>, vector<128x32xf32> -> vector<128x32xf32>
    %75 = arith.addf %71, %74 : vector<128x32xf32>
    %c14 = arith.constant 14 : index
    %c0_53 = arith.constant 0 : index
    %c0_54 = arith.constant 0 : index
    %76 = vector.load %arg5[%c14, %c0_53, %c0_54] : memref<16x4x32xf32, #tpu.memory_space<vmem>>, vector<1x4x32xf32>
    %77 = vector.shape_cast %76 : vector<1x4x32xf32> to vector<4x32xf32>
    %cst_55 = arith.constant dense<0.000000e+00> : vector<128x32xf32>
    %78 = tpu.matmul %17, %77, %cst_55 {dimension_numbers = #tpu.dot_dimension_numbers<[1], [0], [0], [1], [0, 0, 1, 1], [], []>} : vector<128x4xf32>, vector<4x32xf32>, vector<128x32xf32> -> vector<128x32xf32>
    %79 = arith.addf %75, %78 : vector<128x32xf32>
    %c15 = arith.constant 15 : index
    %c0_56 = arith.constant 0 : index
    %c0_57 = arith.constant 0 : index
    %80 = vector.load %arg5[%c15, %c0_56, %c0_57] : memref<16x4x32xf32, #tpu.memory_space<vmem>>, vector<1x4x32xf32>
    %81 = vector.shape_cast %80 : vector<1x4x32xf32> to vector<4x32xf32>
    %cst_58 = arith.constant dense<0.000000e+00> : vector<128x32xf32>
    %82 = tpu.matmul %15, %81, %cst_58 {dimension_numbers = #tpu.dot_dimension_numbers<[1], [0], [0], [1], [0, 0, 1, 1], [], []>} : vector<128x4xf32>, vector<4x32xf32>, vector<128x32xf32> -> vector<128x32xf32>
    %83 = arith.addf %79, %82 : vector<128x32xf32>
    %84 = tpu.concatenate %38, %53, %68, %83 in 1 : vector<128x32xf32>, vector<128x32xf32>, vector<128x32xf32>, vector<128x32xf32> -> vector<128x128xf32>
    %c0_59 = arith.constant 0 : index
    %c0_60 = arith.constant 0 : index
    %85 = vector.load %arg6[%c0_59, %c0_60] : memref<1x128xf32, #tpu.memory_space<vmem>>, vector<1x128xf32>
    %86 = vector.broadcast %85 : vector<1x128xf32> to vector<128x128xf32>
    %87 = arith.addf %84, %86 : vector<128x128xf32>
    %88 = vector.shape_cast %87 : vector<128x128xf32> to vector<8x16x128xf32>
    %c0_61 = arith.constant 0 : index
    %c0_62 = arith.constant 0 : index
    %c0_63 = arith.constant 0 : index
    %c0_64 = arith.constant 0 : index
    %89 = vector.load %arg7[%c0_61, %c0_62, %c0_63, %c0_64] : memref<1x8x16x128xf32, #tpu.memory_space<vmem>>, vector<1x8x16x128xf32>
    %90 = vector.shape_cast %89 : vector<1x8x16x128xf32> to vector<8x16x128xf32>
    %91 = vector.shape_cast %88 : vector<8x16x128xf32> to vector<1x8x16x128xf32>
    tpu.vector_store %arg7[%c0_61, %c0_62, %c0_63, %c0_64], %91 {strides = array<i32>} : memref<1x8x16x128xf32, #tpu.memory_space<vmem>>, vector<1x8x16x128xf32>,
    return
  }
  func.func @transform_0(%arg0: i32, %arg1: i32) -> (i32, i32, i32, i32) {
    %c0_i32 = arith.constant 0 : i32
    %c0_i32_0 = arith.constant 0 : i32
    %c0_i32_1 = arith.constant 0 : i32
    return %arg0, %arg1, %c0_i32, %c0_i32_0 : i32, i32, i32, i32
  }
  func.func @transform_1(%arg0: i32, %arg1: i32) -> (i32, i32, i32, i32) {
    %c0_i32 = arith.constant 0 : i32
    %c0_i32_0 = arith.constant 0 : i32
    %c0_i32_1 = arith.constant 0 : i32
    return %arg0, %arg1, %c0_i32, %c0_i32_0 : i32, i32, i32, i32
  }
  func.func @transform_2(%arg0: i32, %arg1: i32) -> (i32, i32, i32, i32) {
    %c0_i32 = arith.constant 0 : i32
    %c0_i32_0 = arith.constant 0 : i32
    %c0_i32_1 = arith.constant 0 : i32
    return %arg0, %arg1, %c0_i32, %c0_i32_0 : i32, i32, i32, i32
  }
  func.func @transform_3(%arg0: i32, %arg1: i32) -> (i32, i32, i32) {
    %c0_i32 = arith.constant 0 : i32
    %c0_i32_0 = arith.constant 0 : i32
    %c0_i32_1 = arith.constant 0 : i32
    %c0_i32_2 = arith.constant 0 : i32
    return %c0_i32, %c0_i32_0, %c0_i32_1 : i32, i32, i32
  }
  func.func @transform_4(%arg0: i32, %arg1: i32) -> (i32, i32) {
    %c0_i32 = arith.constant 0 : i32
    %c0_i32_0 = arith.constant 0 : i32
    %c0_i32_1 = arith.constant 0 : i32
    return %c0_i32, %c0_i32_0 : i32, i32
  }
  func.func @transform_5(%arg0: i32, %arg1: i32) -> (i32, i32, i32, i32) {
    %c0_i32 = arith.constant 0 : i32
    %c0_i32_0 = arith.constant 0 : i32
    %c0_i32_1 = arith.constant 0 : i32
    return %arg0, %arg1, %c0_i32, %c0_i32_0 : i32, i32, i32, i32
  }
}

module attributes {stable_mosaic.version = 11 : i64} {
  func.func @_convt_kernel(%arg0: i32, %arg1: i32, %arg2: memref<1x8x18x4xf32, #tpu.memory_space<vmem>>, %arg3: memref<1x8x18x4xf32, #tpu.memory_space<vmem>>, %arg4: memref<1x8x18x4xf32, #tpu.memory_space<vmem>>, %arg5: memref<16x4x32xf32, #tpu.memory_space<vmem>>, %arg6: memref<1x128xf32, #tpu.memory_space<vmem>>, %arg7: memref<1x8x16x128xf32, #tpu.memory_space<vmem>>) attributes {dimension_semantics = [#tpu.dimension_semantics<parallel>, #tpu.dimension_semantics<parallel>], iteration_bounds = array<i64: 2, 2>, scalar_prefetch = 0 : i64, scratch_operands = 0 : i64, tpu.core_type = #tpu.core_type<tc>, window_params = [{transform_indices = @transform_0, window_bounds = array<i64: 1, 8, 18, 4>}, {transform_indices = @transform_1, window_bounds = array<i64: 1, 8, 18, 4>}, {transform_indices = @transform_2, window_bounds = array<i64: 1, 8, 18, 4>}, {pipeline_mode = #tpu.pipeline_mode<synchronous>, transform_indices = @transform_3, window_bounds = array<i64: 16, 4, 32>}, {pipeline_mode = #tpu.pipeline_mode<synchronous>, transform_indices = @transform_4, window_bounds = array<i64: 1, 128>}, {transform_indices = @transform_5, window_bounds = array<i64: 1, 8, 16, 128>}]} {
    %c0 = arith.constant 0 : index
    %c0_0 = arith.constant 0 : index
    %c0_1 = arith.constant 0 : index
    %c0_2 = arith.constant 0 : index
    %0 = vector.load %arg2[%c0, %c0_0, %c0_1, %c0_2] : memref<1x8x18x4xf32, #tpu.memory_space<vmem>>, vector<1x8x18x4xf32>
    %1 = vector.shape_cast %0 : vector<1x8x18x4xf32> to vector<8x18x4xf32>
    %c0_3 = arith.constant 0 : index
    %c0_4 = arith.constant 0 : index
    %c0_5 = arith.constant 0 : index
    %c0_6 = arith.constant 0 : index
    %2 = vector.load %arg3[%c0_3, %c0_4, %c0_5, %c0_6] : memref<1x8x18x4xf32, #tpu.memory_space<vmem>>, vector<1x8x18x4xf32>
    %3 = vector.shape_cast %2 : vector<1x8x18x4xf32> to vector<8x18x4xf32>
    %c0_7 = arith.constant 0 : index
    %c0_8 = arith.constant 0 : index
    %c0_9 = arith.constant 0 : index
    %c0_10 = arith.constant 0 : index
    %4 = vector.load %arg4[%c0_7, %c0_8, %c0_9, %c0_10] : memref<1x8x18x4xf32, #tpu.memory_space<vmem>>, vector<1x8x18x4xf32>
    %5 = vector.shape_cast %4 : vector<1x8x18x4xf32> to vector<8x18x4xf32>
    %6 = vector.extract_strided_slice %1 {offsets = [0, 0, 0], sizes = [8, 16, 4], strides = [1, 1, 1]} : vector<8x18x4xf32> to vector<8x16x4xf32>
    %7 = vector.shape_cast %6 : vector<8x16x4xf32> to vector<128x4xf32>
    %8 = vector.extract_strided_slice %1 {offsets = [0, 1, 0], sizes = [8, 16, 4], strides = [1, 1, 1]} : vector<8x18x4xf32> to vector<8x16x4xf32>
    %9 = vector.shape_cast %8 : vector<8x16x4xf32> to vector<128x4xf32>
    %10 = vector.extract_strided_slice %1 {offsets = [0, 2, 0], sizes = [8, 16, 4], strides = [1, 1, 1]} : vector<8x18x4xf32> to vector<8x16x4xf32>
    %11 = vector.shape_cast %10 : vector<8x16x4xf32> to vector<128x4xf32>
    %12 = vector.extract_strided_slice %3 {offsets = [0, 0, 0], sizes = [8, 16, 4], strides = [1, 1, 1]} : vector<8x18x4xf32> to vector<8x16x4xf32>
    %13 = vector.shape_cast %12 : vector<8x16x4xf32> to vector<128x4xf32>
    %14 = vector.extract_strided_slice %3 {offsets = [0, 1, 0], sizes = [8, 16, 4], strides = [1, 1, 1]} : vector<8x18x4xf32> to vector<8x16x4xf32>
    %15 = vector.shape_cast %14 : vector<8x16x4xf32> to vector<128x4xf32>
    %16 = vector.extract_strided_slice %3 {offsets = [0, 2, 0], sizes = [8, 16, 4], strides = [1, 1, 1]} : vector<8x18x4xf32> to vector<8x16x4xf32>
    %17 = vector.shape_cast %16 : vector<8x16x4xf32> to vector<128x4xf32>
    %18 = vector.extract_strided_slice %5 {offsets = [0, 0, 0], sizes = [8, 16, 4], strides = [1, 1, 1]} : vector<8x18x4xf32> to vector<8x16x4xf32>
    %19 = vector.shape_cast %18 : vector<8x16x4xf32> to vector<128x4xf32>
    %20 = vector.extract_strided_slice %5 {offsets = [0, 1, 0], sizes = [8, 16, 4], strides = [1, 1, 1]} : vector<8x18x4xf32> to vector<8x16x4xf32>
    %21 = vector.shape_cast %20 : vector<8x16x4xf32> to vector<128x4xf32>
    %22 = vector.extract_strided_slice %5 {offsets = [0, 2, 0], sizes = [8, 16, 4], strides = [1, 1, 1]} : vector<8x18x4xf32> to vector<8x16x4xf32>
    %23 = vector.shape_cast %22 : vector<8x16x4xf32> to vector<128x4xf32>
    %c0_11 = arith.constant 0 : index
    %c0_12 = arith.constant 0 : index
    %c0_13 = arith.constant 0 : index
    %24 = vector.load %arg5[%c0_11, %c0_12, %c0_13] : memref<16x4x32xf32, #tpu.memory_space<vmem>>, vector<1x4x32xf32>
    %25 = vector.shape_cast %24 : vector<1x4x32xf32> to vector<4x32xf32>
    %cst = arith.constant dense<0.000000e+00> : vector<128x32xf32>
    %26 = tpu.matmul %15, %25, %cst {dimension_numbers = #tpu.dot_dimension_numbers<[1], [0], [0], [1], [0, 0, 1, 1], [], []>} : vector<128x4xf32>, vector<4x32xf32>, vector<128x32xf32> -> vector<128x32xf32>
    %c1 = arith.constant 1 : index
    %c0_14 = arith.constant 0 : index
    %c0_15 = arith.constant 0 : index
    %27 = vector.load %arg5[%c1, %c0_14, %c0_15] : memref<16x4x32xf32, #tpu.memory_space<vmem>>, vector<1x4x32xf32>
    %28 = vector.shape_cast %27 : vector<1x4x32xf32> to vector<4x32xf32>
    %cst_16 = arith.constant dense<0.000000e+00> : vector<128x32xf32>
    %29 = tpu.matmul %13, %28, %cst_16 {dimension_numbers = #tpu.dot_dimension_numbers<[1], [0], [0], [1], [0, 0, 1, 1], [], []>} : vector<128x4xf32>, vector<4x32xf32>, vector<128x32xf32> -> vector<128x32xf32>
    %30 = arith.addf %26, %29 : vector<128x32xf32>
    %c2 = arith.constant 2 : index
    %c0_17 = arith.constant 0 : index
    %c0_18 = arith.constant 0 : index
    %31 = vector.load %arg5[%c2, %c0_17, %c0_18] : memref<16x4x32xf32, #tpu.memory_space<vmem>>, vector<1x4x32xf32>
    %32 = vector.shape_cast %31 : vector<1x4x32xf32> to vector<4x32xf32>
    %cst_19 = arith.constant dense<0.000000e+00> : vector<128x32xf32>
    %33 = tpu.matmul %9, %32, %cst_19 {dimension_numbers = #tpu.dot_dimension_numbers<[1], [0], [0], [1], [0, 0, 1, 1], [], []>} : vector<128x4xf32>, vector<4x32xf32>, vector<128x32xf32> -> vector<128x32xf32>
    %34 = arith.addf %30, %33 : vector<128x32xf32>
    %c3 = arith.constant 3 : index
    %c0_20 = arith.constant 0 : index
    %c0_21 = arith.constant 0 : index
    %35 = vector.load %arg5[%c3, %c0_20, %c0_21] : memref<16x4x32xf32, #tpu.memory_space<vmem>>, vector<1x4x32xf32>
    %36 = vector.shape_cast %35 : vector<1x4x32xf32> to vector<4x32xf32>
    %cst_22 = arith.constant dense<0.000000e+00> : vector<128x32xf32>
    %37 = tpu.matmul %7, %36, %cst_22 {dimension_numbers = #tpu.dot_dimension_numbers<[1], [0], [0], [1], [0, 0, 1, 1], [], []>} : vector<128x4xf32>, vector<4x32xf32>, vector<128x32xf32> -> vector<128x32xf32>
    %38 = arith.addf %34, %37 : vector<128x32xf32>
    %c4 = arith.constant 4 : index
    %c0_23 = arith.constant 0 : index
    %c0_24 = arith.constant 0 : index
    %39 = vector.load %arg5[%c4, %c0_23, %c0_24] : memref<16x4x32xf32, #tpu.memory_space<vmem>>, vector<1x4x32xf32>
    %40 = vector.shape_cast %39 : vector<1x4x32xf32> to vector<4x32xf32>
    %cst_25 = arith.constant dense<0.000000e+00> : vector<128x32xf32>
    %41 = tpu.matmul %17, %40, %cst_25 {dimension_numbers = #tpu.dot_dimension_numbers<[1], [0], [0], [1], [0, 0, 1, 1], [], []>} : vector<128x4xf32>, vector<4x32xf32>, vector<128x32xf32> -> vector<128x32xf32>
    %c5 = arith.constant 5 : index
    %c0_26 = arith.constant 0 : index
    %c0_27 = arith.constant 0 : index
    %42 = vector.load %arg5[%c5, %c0_26, %c0_27] : memref<16x4x32xf32, #tpu.memory_space<vmem>>, vector<1x4x32xf32>
    %43 = vector.shape_cast %42 : vector<1x4x32xf32> to vector<4x32xf32>
    %cst_28 = arith.constant dense<0.000000e+00> : vector<128x32xf32>
    %44 = tpu.matmul %15, %43, %cst_28 {dimension_numbers = #tpu.dot_dimension_numbers<[1], [0], [0], [1], [0, 0, 1, 1], [], []>} : vector<128x4xf32>, vector<4x32xf32>, vector<128x32xf32> -> vector<128x32xf32>
    %45 = arith.addf %41, %44 : vector<128x32xf32>
    %c6 = arith.constant 6 : index
    %c0_29 = arith.constant 0 : index
    %c0_30 = arith.constant 0 : index
    %46 = vector.load %arg5[%c6, %c0_29, %c0_30] : memref<16x4x32xf32, #tpu.memory_space<vmem>>, vector<1x4x32xf32>
    %47 = vector.shape_cast %46 : vector<1x4x32xf32> to vector<4x32xf32>
    %cst_31 = arith.constant dense<0.000000e+00> : vector<128x32xf32>
    %48 = tpu.matmul %11, %47, %cst_31 {dimension_numbers = #tpu.dot_dimension_numbers<[1], [0], [0], [1], [0, 0, 1, 1], [], []>} : vector<128x4xf32>, vector<4x32xf32>, vector<128x32xf32> -> vector<128x32xf32>
    %49 = arith.addf %45, %48 : vector<128x32xf32>
    %c7 = arith.constant 7 : index
    %c0_32 = arith.constant 0 : index
    %c0_33 = arith.constant 0 : index
    %50 = vector.load %arg5[%c7, %c0_32, %c0_33] : memref<16x4x32xf32, #tpu.memory_space<vmem>>, vector<1x4x32xf32>
    %51 = vector.shape_cast %50 : vector<1x4x32xf32> to vector<4x32xf32>
    %cst_34 = arith.constant dense<0.000000e+00> : vector<128x32xf32>
    %52 = tpu.matmul %9, %51, %cst_34 {dimension_numbers = #tpu.dot_dimension_numbers<[1], [0], [0], [1], [0, 0, 1, 1], [], []>} : vector<128x4xf32>, vector<4x32xf32>, vector<128x32xf32> -> vector<128x32xf32>
    %53 = arith.addf %49, %52 : vector<128x32xf32>
    %c8 = arith.constant 8 : index
    %c0_35 = arith.constant 0 : index
    %c0_36 = arith.constant 0 : index
    %54 = vector.load %arg5[%c8, %c0_35, %c0_36] : memref<16x4x32xf32, #tpu.memory_space<vmem>>, vector<1x4x32xf32>
    %55 = vector.shape_cast %54 : vector<1x4x32xf32> to vector<4x32xf32>
    %cst_37 = arith.constant dense<0.000000e+00> : vector<128x32xf32>
    %56 = tpu.matmul %21, %55, %cst_37 {dimension_numbers = #tpu.dot_dimension_numbers<[1], [0], [0], [1], [0, 0, 1, 1], [], []>} : vector<128x4xf32>, vector<4x32xf32>, vector<128x32xf32> -> vector<128x32xf32>
    %c9 = arith.constant 9 : index
    %c0_38 = arith.constant 0 : index
    %c0_39 = arith.constant 0 : index
    %57 = vector.load %arg5[%c9, %c0_38, %c0_39] : memref<16x4x32xf32, #tpu.memory_space<vmem>>, vector<1x4x32xf32>
    %58 = vector.shape_cast %57 : vector<1x4x32xf32> to vector<4x32xf32>
    %cst_40 = arith.constant dense<0.000000e+00> : vector<128x32xf32>
    %59 = tpu.matmul %19, %58, %cst_40 {dimension_numbers = #tpu.dot_dimension_numbers<[1], [0], [0], [1], [0, 0, 1, 1], [], []>} : vector<128x4xf32>, vector<4x32xf32>, vector<128x32xf32> -> vector<128x32xf32>
    %60 = arith.addf %56, %59 : vector<128x32xf32>
    %c10 = arith.constant 10 : index
    %c0_41 = arith.constant 0 : index
    %c0_42 = arith.constant 0 : index
    %61 = vector.load %arg5[%c10, %c0_41, %c0_42] : memref<16x4x32xf32, #tpu.memory_space<vmem>>, vector<1x4x32xf32>
    %62 = vector.shape_cast %61 : vector<1x4x32xf32> to vector<4x32xf32>
    %cst_43 = arith.constant dense<0.000000e+00> : vector<128x32xf32>
    %63 = tpu.matmul %15, %62, %cst_43 {dimension_numbers = #tpu.dot_dimension_numbers<[1], [0], [0], [1], [0, 0, 1, 1], [], []>} : vector<128x4xf32>, vector<4x32xf32>, vector<128x32xf32> -> vector<128x32xf32>
    %64 = arith.addf %60, %63 : vector<128x32xf32>
    %c11 = arith.constant 11 : index
    %c0_44 = arith.constant 0 : index
    %c0_45 = arith.constant 0 : index
    %65 = vector.load %arg5[%c11, %c0_44, %c0_45] : memref<16x4x32xf32, #tpu.memory_space<vmem>>, vector<1x4x32xf32>
    %66 = vector.shape_cast %65 : vector<1x4x32xf32> to vector<4x32xf32>
    %cst_46 = arith.constant dense<0.000000e+00> : vector<128x32xf32>
    %67 = tpu.matmul %13, %66, %cst_46 {dimension_numbers = #tpu.dot_dimension_numbers<[1], [0], [0], [1], [0, 0, 1, 1], [], []>} : vector<128x4xf32>, vector<4x32xf32>, vector<128x32xf32> -> vector<128x32xf32>
    %68 = arith.addf %64, %67 : vector<128x32xf32>
    %c12 = arith.constant 12 : index
    %c0_47 = arith.constant 0 : index
    %c0_48 = arith.constant 0 : index
    %69 = vector.load %arg5[%c12, %c0_47, %c0_48] : memref<16x4x32xf32, #tpu.memory_space<vmem>>, vector<1x4x32xf32>
    %70 = vector.shape_cast %69 : vector<1x4x32xf32> to vector<4x32xf32>
    %cst_49 = arith.constant dense<0.000000e+00> : vector<128x32xf32>
    %71 = tpu.matmul %23, %70, %cst_49 {dimension_numbers = #tpu.dot_dimension_numbers<[1], [0], [0], [1], [0, 0, 1, 1], [], []>} : vector<128x4xf32>, vector<4x32xf32>, vector<128x32xf32> -> vector<128x32xf32>
    %c13 = arith.constant 13 : index
    %c0_50 = arith.constant 0 : index
    %c0_51 = arith.constant 0 : index
    %72 = vector.load %arg5[%c13, %c0_50, %c0_51] : memref<16x4x32xf32, #tpu.memory_space<vmem>>, vector<1x4x32xf32>
    %73 = vector.shape_cast %72 : vector<1x4x32xf32> to vector<4x32xf32>
    %cst_52 = arith.constant dense<0.000000e+00> : vector<128x32xf32>
    %74 = tpu.matmul %21, %73, %cst_52 {dimension_numbers = #tpu.dot_dimension_numbers<[1], [0], [0], [1], [0, 0, 1, 1], [], []>} : vector<128x4xf32>, vector<4x32xf32>, vector<128x32xf32> -> vector<128x32xf32>
    %75 = arith.addf %71, %74 : vector<128x32xf32>
    %c14 = arith.constant 14 : index
    %c0_53 = arith.constant 0 : index
    %c0_54 = arith.constant 0 : index
    %76 = vector.load %arg5[%c14, %c0_53, %c0_54] : memref<16x4x32xf32, #tpu.memory_space<vmem>>, vector<1x4x32xf32>
    %77 = vector.shape_cast %76 : vector<1x4x32xf32> to vector<4x32xf32>
    %cst_55 = arith.constant dense<0.000000e+00> : vector<128x32xf32>
    %78 = tpu.matmul %17, %77, %cst_55 {dimension_numbers = #tpu.dot_dimension_numbers<[1], [0], [0], [1], [0, 0, 1, 1], [], []>} : vector<128x4xf32>, vector<4x32xf32>, vector<128x32xf32> -> vector<128x32xf32>
    %79 = arith.addf %75, %78 : vector<128x32xf32>
    %c15 = arith.constant 15 : index
    %c0_56 = arith.constant 0 : index
    %c0_57 = arith.constant 0 : index
    %80 = vector.load %arg5[%c15, %c0_56, %c0_57] : memref<16x4x32xf32, #tpu.memory_space<vmem>>, vector<1x4x32xf32>
    %81 = vector.shape_cast %80 : vector<1x4x32xf32> to vector<4x32xf32>
    %cst_58 = arith.constant dense<0.000000e+00> : vector<128x32xf32>
    %82 = tpu.matmul %15, %81, %cst_58 {dimension_numbers = #tpu.dot_dimension_numbers<[1], [0], [0], [1], [0, 0, 1, 1], [], []>} : vector<128x4xf32>, vector<4x32xf32>, vector<128x32xf32> -> vector<128x32xf32>
    %83 = arith.addf %79, %82 : vector<128x32xf32>
    %84 = tpu.concatenate %38, %53, %68, %83 in 1 : vector<128x32xf32>, vector<128x32xf32>, vector<128x32xf32>, vector<128x32xf32> -> vector<128x128xf32>
    %c0_59 = arith.constant 0 : index
    %c0_60 = arith.constant 0 : index
    %85 = vector.load %arg6[%c0_59, %c0_60] : memref<1x128xf32, #tpu.memory_space<vmem>>, vector<1x128xf32>
    %86 = vector.broadcast %85 : vector<1x128xf32> to vector<128x128xf32>
    %87 = arith.addf %84, %86 : vector<128x128xf32>
    %88 = vector.shape_cast %87 : vector<128x128xf32> to vector<8x16x128xf32>
    %c0_61 = arith.constant 0 : index
    %c0_62 = arith.constant 0 : index
    %c0_63 = arith.constant 0 : index
    %c0_64 = arith.constant 0 : index
    %89 = vector.load %arg7[%c0_61, %c0_62, %c0_63, %c0_64] : memref<1x8x16x128xf32, #tpu.memory_space<vmem>>, vector<1x8x16x128xf32>
    %90 = vector.shape_cast %89 : vector<1x8x16x128xf32> to vector<8x16x128xf32>
    %91 = vector.shape_cast %88 : vector<8x16x128xf32> to vector<1x8x16x128xf32>
    tpu.vector_store %arg7[%c0_61, %c0_62, %c0_63, %c0_64], %91 {strides = array<i32>} : memref<1x8x16x128xf32, #tpu.memory_space<vmem>>, vector<1x8x16x128xf32>,
    return
  }
  func.func @transform_0(%arg0: i32, %arg1: i32) -> (i32, i32, i32, i32) {
    %c0_i32 = arith.constant 0 : i32
    %c0_i32_0 = arith.constant 0 : i32
    %c0_i32_1 = arith.constant 0 : i32
    return %arg0, %arg1, %c0_i32, %c0_i32_0 : i32, i32, i32, i32
  }
  func.func @transform_1(%arg0: i32, %arg1: i32) -> (i32, i32, i32, i32) {
    %c0_i32 = arith.constant 0 : i32
    %c0_i32_0 = arith.constant 0 : i32
    %c0_i32_1 = arith.constant 0 : i32
    return %arg0, %arg1, %c0_i32, %c0_i32_0 : i32, i32, i32, i32
  }
  func.func @transform_2(%arg0: i32, %arg1: i32) -> (i32, i32, i32, i32) {
    %c0_i32 = arith.constant 0 : i32
    %c0_i32_0 = arith.constant 0 : i32
    %c0_i32_1 = arith.constant 0 : i32
    return %arg0, %arg1, %c0_i32, %c0_i32_0 : i32, i32, i32, i32
  }
  func.func @transform_3(%arg0: i32, %arg1: i32) -> (i32, i32, i32) {
    %c0_i32 = arith.constant 0 : i32
    %c0_i32_0 = arith.constant 0 : i32
    %c0_i32_1 = arith.constant 0 : i32
    %c0_i32_2 = arith.constant 0 : i32
    return %c0_i32, %c0_i32_0, %c0_i32_1 : i32, i32, i32
  }
  func.func @transform_4(%arg0: i32, %arg1: i32) -> (i32, i32) {
    %c0_i32 = arith.constant 0 : i32
    %c0_i32_0 = arith.constant 0 : i32
    %c0_i32_1 = arith.constant 0 : i32
    return %c0_i32, %c0_i32_0 : i32, i32
  }
  func.func @transform_5(%arg0: i32, %arg1: i32) -> (i32, i32, i32, i32) {
    %c0_i32 = arith.constant 0 : i32
    %c0_i32_0 = arith.constant 0 : i32
    %c0_i32_1 = arith.constant 0 : i32
    return %arg0, %arg1, %c0_i32, %c0_i32_0 : i32, i32, i32, i32
  }
}

</mosaic_0001>

<bundles_post_ra>
// kernel: tpu_custom_call.1
= control target key start
LH: loop header
LB: loop body
LE: loop exit
PB: predicated region body
PF: predicated region fallthrough
CT: control target
= control target key end

     0   :  { %10 = vsyncpa [#allocation3], 0  ;;  %s4753_s0 = inlined_call_operand.vmem [shape: f32[2,16,18,4], index: 0, kind: input, shape index: {}]   ;;  %s4754_s1 = inlined_call_operand.vmem [shape: f32[2,16,18,4], index: 1, kind: input, shape index: {}]   ;;  %s4755_s2 = inlined_call_operand.vmem [shape: f32[2,16,18,4], index: 2, kind: input, shape index: {}]   ;;  %s4756_s3 = inlined_call_operand.vmem [shape: f32[16,4,32], index: 3, kind: input, shape index: {}]   ;;  %s4757_s4 = inlined_call_operand.vmem [shape: f32[1,128], index: 4, kind: input, shape index: {}]   ;;  %s4758_s5 = inlined_call_operand.hbm [shape: f32[2,16,16,128], index: 5, kind: output, shape index: {}]  }
   0x1   :  { %12 = vsyncpa [#allocation3 + $0x1], 0  ;;  %s3206_s18 = smov 0   ;;  %s3208_s19 = smov 0  }
   0x2   :  { %s3210_s20 = smov 0   ;;  %s3212_s21 = smov 0  }
   0x3   :  { %s3214_s22 = smov 0   ;;  %s3216_s23 = smov 0  }
   0x4   :  { %s3218_s24 = smov 0   ;;  %s3220_s25 = smov 0  }
   0x5 LB: > { %s2683_s26 = sadd.s32 4294967295, %s3169_s25   ;;  %s2684_s27 = sadd.s32 4294967294, %s3169_s25   ;;  %s3169_s25 = sphi %s3220_s25, %s18_s25   ;;  %s3165_s24 = sphi %s3218_s24, %s4953_s24   ;;  %s3161_s23 = sphi %s3216_s23, %s4952_s23   ;;  %s3157_s22 = sphi %s3214_s22, %s4951_s22   ;;  %s3153_s21 = sphi %s3212_s21, %s4950_s21   ;;  %s3149_s20 = sphi %s3210_s20, %s4949_s20   ;;  %s3145_s19 = sphi %s3208_s19, %s4948_s19   ;;  %s3141_s18 = sphi %s3206_s18, %s4947_s18  }
   0x6   : > { %s27_s28 = sadd.s32 1, %s3161_s23  ;;  %s30_s29 = sadd.s32 1, %s3165_s24 }
   0x7   : > { %p28_p0 = scmp.ge.s32.totalorder %s27_s28, 2  ;;  %p175_p1 = scmp.ne.s32.totalorder %s3149_s20, %s3145_s19 }
   0x8   : > { %p176_p2 = scmp.eq.s32.totalorder %s2683_s26, 3  ;;  %p181_p5 = scmp.ne.s32.totalorder %s3145_s19, %s3141_s18 }
   0x9   : > { %s4955_s28 = smov (%p28_p0, %s27_s28), 0  ;;  %s4957_s29 = smov (!%p28_p0, %s30_s29), %s3165_s24 }
   0xa   : > { %s161_s30 = ssub.s32 %s3161_s23, %s4955_s28  ;;  %p3257_p3 = por %p176_p2, %p175_p1 }
   0xb   : > { %p32_p4 = scmp.ge.s32.totalorder %s4957_s29, 2  ;;  %p182_p6 = scmp.eq.s32.totalorder %s2684_s27, 3 }
   0xc   : > { %p2687_p7 = scmp.ge.s32.totalorder %s3169_s25, 1  ;;  %p248_p9 = scmp.lt.s32.totalorder %s3169_s25, 5 }
   0xd   : > { %s4959_s29 = smov (%p32_p4, %s4957_s29), 0  ;;  %p3266_p8 = por %p182_p6, %p181_p5 }
   0xe   : > { %s160_s8 = ssub.s32 %s3165_s24, %s4959_s29  ;;  %s165_s9 = sadd.s32 1, %s3149_s20 }
   0xf   : > { %s162_s10 = sor.u32 %s161_s30, %s160_s8  ;;  %p249_p10 = pnand %p2687_p7, %p248_p9 }
  0x10   : > { %p163_p11 = scmp.eq.s32.totalorder %s162_s10, 0 }
  0x11   : > { %252 = sbr.rel (%p249_p10) target bundleno = 790 (0x316), region = 40 }
  0x12   : > { %s3275_s11 = scalar_select %p163_p11, %s3149_s20, %s165_s9  }
  0x16   : > { %vm757_vm0 = vcmask 1043456   ;;  %v2730_v0 = vld [vmem:[%s4756_s3 + $0x8] sm:$0xf]  ;;  %s2689_s14 = sshll.u32 %s3153_s21, 3  ;;  %p302_p12 = scmp.lt.s32.totalorder %s3157_s22, 1  ;;  %vm431_vm1 = vcmask 1046528  }
  0x17   : > { %2731 = vmatpush.msk.msra.mxu2 %vm757_vm0, %v2730_v0  ;;  %p304_p13 = scmp.lt.s32.totalorder %s2689_s14, 15  ;;  %v2802_v1 = vld [vmem:[%s4756_s3 + $0x18] sm:$0xf]  ;;  %v2748_v2 = vld [vmem:[%s4756_s3 + $0xc] sm:$0xf]  ;;  %vm724_vm2 = vcmask 31744  }
  0x18   : > { %s303_s27 = scalar_select %p302_p12, %s3157_s22, 1  ;;  %2749 = vmatpush.msk.msra.mxu3 %vm757_vm0, %v2748_v2  ;;  %v2820_v3 = vld [vmem:[%s4756_s3 + $0x1c] sm:$0xf]  ;;  %v2695_v4 = vld [vmem:[%s4756_s3 + $0x4] sm:$0xf]  ;;  %vm472_vm3 = vcmask 1045504  }
  0x19   : > { %2803 = vmatpush.msk.msrb.mxu2 %vm757_vm0, %v2802_v1  ;;  %s4961_s14 = smov (!%p304_p13, %s2689_s14), 15  ;;  %2696 = vmatpush.msk.msra.mxu0 %vm757_vm0, %v2695_v4  ;;  %v721_v5 = vld [vmem:[%s4756_s3] sm:$0xf]  ;;  %v2767_v6 = vld [vmem:[%s4756_s3 + $0x14] sm:$0xf]  ;;  %vm2450_vm4 = vcmask 261120  }
  0x1a   : > { %2821 = vmatpush.msk.msrb.mxu3 %vm757_vm0, %v2820_v3  ;;  %s2991_s17 = smul.u32 48, %s303_s27  ;;  %2713 = vmatpush.msk.msra.mxu1 %vm757_vm0, %v721_v5  ;;  %v2766_v7 = vld [vmem:[%s4756_s3 + $0x10] sm:$0xf]  ;;  %vm2467_vm5 = vcmask 523264   ;;  %s3173_s16 = smov 96   ;;  %vm2484_vm6 = vcmask 785408  }
  0x1b   : > { %2768 = vmatpush.msk.msrb.mxu0 %vm757_vm0, %v2767_v6  ;;  %s2990_s8 = smul.u32 3, %s4961_s14  ;;  %s298_s14 = sand.u32 1, %s3145_s19  }
  0x1c   : > { %2785 = vmatpush.msk.msrb.mxu1 %vm757_vm0, %v2766_v7  ;;  %s2989_s12 = sshll.u32 %s3153_s21, 4  ;;  %s2985_s13 = sshll.u32 %s3157_s22, 5 }
  0x1d   : > { %s308_s9 = sadd.s32 %s2991_s17, %s2990_s8  ;;  %s2688_s8 = sshll.u32 %s298_s14, 7 }
  0x1e   : > { %s3312_s10 = sshll.u32 %s308_s9, 3  ;;  %s4620_s9 = scalar_lea.vmem [#allocation2], %s2688_s8 }
  0x1f   : > { %s3318_s27 = scalar_lea.vmem %s4753_s0, %s3312_s10  ;;  %s3324_s26 = scalar_lea.vmem %s4754_s1, %s3312_s10 }
  0x20   : > { %v3327_v8 = vld [vmem:[%s3318_s27] sm:$0xff]  ;;  %v3330_v9 = vld [vmem:[%s3318_s27 + $0x8] sm:$0xff]  ;;  %v3347_v16 = vld [vmem:[%s3318_s27 + $0x10] sm:$0x3]  ;;  %s2550_s15 = sadd.s32 %s2989_s12, %s2985_s13  ;;  %s2553_s17 = sshll.u32 %s4620_s9, 4  ;;  %s2554_s17 = int_to_ptr.vmem [resolvable:$true] %s2553_s17 }
  0x21   : > { %v3333_v10 = vld [vmem:[%s3324_s26] sm:$0xff]  ;;  %v432_v11 = vrot.slane %v3327_v8, 1  ;;  %v433_v12 = vrot.slane %v3330_v9, 1  ;;  %2750 = vmatmul.msk.f32.vlgmr.msra.gmra.mxu3 %vm724_vm2, %v3327_v8  ;;  %v3343_v14 = vld [vmem:[%s3324_s26 + $0x8] sm:$0xff]  ;;  %v3353_v18 = vld [vmem:[%s3324_s26 + $0x10] sm:$0x3] }
  0x22   : > { %4824 = vst [vmem:[#allocation5_spill] sm:$0xff] %v3333_v10  ;;  %v537_v13 = vrot.slane %v3333_v10, 1  ;;  %2697 = vmatmul.msk.f32.vlgmr.msra.gmra.mxu0 %vm724_vm2, %v3333_v10  ;;  %v538_v15 = vrot.slane %v3343_v14, 1  ;;  %v435_v20 = vrot.slane %v3347_v16, 1  ;;  %v540_v21 = vrot.slane %v3353_v18, 1  ;;  %v3375_v24 = vld [vmem:[%s3318_s27 + $0x18] sm:$0xff] }
  0x23   : > { %4825 = vst [vmem:[#allocation6_spill] sm:$0xff] %v3343_v14  ;;  %v3350_v17 = vsel %vm431_vm1, %v432_v11, %v433_v12  ;;  %v3378_v25 = vld [vmem:[%s3318_s27 + $0x20] sm:$0xff]  ;;  %v3381_v26 = vld [vmem:[%s3324_s26 + $0x18] sm:$0xff]  ;;  %v437_v28 = vrot.slane %v3375_v24, 1  ;;  %v3405_v34 = vld [vmem:[%s3318_s27 + $0x28] sm:$0x3] }
  0x24   : > { %2732 = vmatmul.msk.f32.vlgmr.msra.gmra.mxu2 %vm724_vm2, %v3350_v17  ;;  %v3358_v19 = vsel %vm431_vm1, %v537_v13, %v538_v15  ;;  %v3365_v22 = vsel %vm431_vm1, %v433_v12, %v435_v20  ;;  %v3372_v23 = vsel %vm431_vm1, %v538_v15, %v540_v21  ;;  %v3384_v27 = vld [vmem:[%s3324_s26 + $0x20] sm:$0xff]  ;;  %v438_v29 = vrot.slane %v3378_v25, 1  ;;  %v3408_v35 = vld [vmem:[%s3324_s26 + $0x28] sm:$0x3]  ;;  %v3427_v40 = vld [vmem:[%s3318_s27 + $0x30] sm:$0xff]  ;;  %s2538_s22 = scalar_lea.sflag [#allocation3], %s298_s14 }
  0x25   : > { %4826 = vst [vmem:[#allocation7_spill] sm:$0xff] %v3358_v19  ;;  %2714 = vmatmul.msk.f32.vlgmr.msra.gmra.mxu1 %vm724_vm2, %v3358_v19  ;;  %v542_v30 = vrot.slane %v3381_v26, 1  ;;  %v543_v31 = vrot.slane %v3384_v27, 1  ;;  %v440_v36 = vrot.slane %v3405_v34, 1  ;;  %v545_v37 = vrot.slane %v3408_v35, 1  ;;  %v3430_v41 = vld [vmem:[%s3318_s27 + $0x38] sm:$0xff] }
  0x26   : > { %v3395_v32 = vsel %vm431_vm1, %v437_v28, %v438_v29  ;;  %v3433_v42 = vld [vmem:[%s3324_s26 + $0x30] sm:$0xff]  ;;  %v3436_v43 = vld [vmem:[%s3324_s26 + $0x38] sm:$0xff]  ;;  %v442_v44 = vrot.slane %v3427_v40, 1  ;;  %v443_v45 = vrot.slane %v3430_v41, 1  ;;  %v3457_v50 = vld [vmem:[%s3318_s27 + $0x40] sm:$0x3] }
  0x27   : > { %v3402_v33 = vsel %vm431_vm1, %v542_v30, %v543_v31  ;;  %v3417_v38 = vsel %vm431_vm1, %v438_v29, %v440_v36  ;;  %v3424_v39 = vsel %vm431_vm1, %v543_v31, %v545_v37  ;;  %v547_v46 = vrot.slane %v3433_v42, 1  ;;  %v3460_v51 = vld [vmem:[%s3324_s26 + $0x40] sm:$0x3]  ;;  %v3479_v56 = vld [vmem:[%s3318_s27 + $0x48] sm:$0xff]  ;;  %v3482_v57 = vld [vmem:[%s3318_s27 + $0x50] sm:$0xff] }
  0x28   : > { %v548_v47 = vrot.slane %v3436_v43, 1  ;;  %v3447_v48 = vsel %vm431_vm1, %v442_v44, %v443_v45  ;;  %v445_v52 = vrot.slane %v3457_v50, 1  ;;  %v550_v53 = vrot.slane %v3460_v51, 1  ;;  %v3485_v58 = vld [vmem:[%s3324_s26 + $0x48] sm:$0xff]  ;;  %v3488_v59 = vld [vmem:[%s3324_s26 + $0x50] sm:$0xff]  ;;  %v3531_v11 = vld [vmem:[%s3318_s27 + $0x60] sm:$0xff] }
  0x29   : > { %2751 = vmatmul.msk.f32.gmra.mxu3 %vm724_vm2, %v3330_v9  ;;  %v447_v60 = vrot.slane %v3479_v56, 1  ;;  %v448_v61 = vrot.slane %v3482_v57, 1  ;;  %v552_v62 = vrot.slane %v3485_v58, 1  ;;  %v553_v63 = vrot.slane %v3488_v59, 1  ;;  %v3509_v2 = vld [vmem:[%s3318_s27 + $0x58] sm:$0x3] }
  0x2a   : > { %2698 = vmatmul.msk.f32.gmra.mxu0 %vm724_vm2, %v3343_v14  ;;  %v3454_v49 = vsel %vm431_vm1, %v547_v46, %v548_v47  ;;  %v3469_v54 = vsel %vm431_vm1, %v443_v45, %v445_v52  ;;  %v3476_v55 = vsel %vm431_vm1, %v548_v47, %v550_v53  ;;  %v3512_v3 = vld [vmem:[%s3324_s26 + $0x58] sm:$0x3]  ;;  %v450_v4 = vrot.slane %v3509_v2, 1  ;;  %v3534_v12 = vld [vmem:[%s3318_s27 + $0x68] sm:$0xff]  ;;  %v3537_v13 = vld [vmem:[%s3324_s26 + $0x60] sm:$0xff] }
  0x2b   : > { %v3499_v0 = vsel %vm431_vm1, %v447_v60, %v448_v61  ;;  %v3506_v1 = vsel %vm431_vm1, %v552_v62, %v553_v63  ;;  %v555_v5 = vrot.slane %v3512_v3, 1  ;;  %v3540_v15 = vld [vmem:[%s3324_s26 + $0x68] sm:$0xff]  ;;  %v452_v20 = vrot.slane %v3531_v11, 1  ;;  %v3561_v36 = vld [vmem:[%s3318_s27 + $0x70] sm:$0x3]  ;;  %v3583_v52 = vld [vmem:[%s3318_s27 + $0x78] sm:$0xff] }
  0x2c   : > { %2733 = vmatmul.msk.f32.gmra.mxu2 %vm724_vm2, %v3365_v22  ;;  %v3521_v6 = vsel %vm431_vm1, %v448_v61, %v450_v4  ;;  %v453_v21 = vrot.slane %v3534_v12, 1  ;;  %v557_v28 = vrot.slane %v3537_v13, 1  ;;  %v558_v29 = vrot.slane %v3540_v15, 1  ;;  %v3564_v37 = vld [vmem:[%s3324_s26 + $0x70] sm:$0x3]  ;;  %4830 = vst [vmem:[#allocation11_spill] sm:$0xff] %v3583_v52 }
  0x2d   : > { %2715 = vmatmul.msk.f32.gmra.mxu1 %vm724_vm2, %v3372_v23  ;;  %v3528_v7 = vsel %vm431_vm1, %v553_v63, %v555_v5  ;;  %v455_v44 = vrot.slane %v3561_v36, 1  ;;  %v560_v45 = vrot.slane %v3564_v37, 1  ;;  %v3586_v53 = vld [vmem:[%s3318_s27 + $0x80] sm:$0xff]  ;;  %v3589_v60 = vld [vmem:[%s3324_s26 + $0x78] sm:$0xff]  ;;  %v457_v62 = vrot.slane %v3583_v52, 1 }
  0x2e   : > { %4827 = vst [vmem:[#allocation8_spill] sm:$0xff] %v3528_v7  ;;  %v3551_v30 = vsel %vm431_vm1, %v452_v20, %v453_v21  ;;  %v3558_v31 = vsel %vm431_vm1, %v557_v28, %v558_v29  ;;  %v3592_v61 = vld [vmem:[%s3324_s26 + $0x80] sm:$0xff]  ;;  %v458_v63 = vrot.slane %v3586_v53, 1  ;;  %v562_v4 = vrot.slane %v3589_v60, 1  ;;  %v3613_v28 = vld [vmem:[%s3318_s27 + $0x88] sm:$0x3] }
  0x2f   : > { %4828 = vst [vmem:[#allocation9_spill] sm:$0xff] %v3558_v31  ;;  %v3573_v46 = vsel %vm431_vm1, %v453_v21, %v455_v44  ;;  %v3580_v47 = vsel %vm431_vm1, %v558_v29, %v560_v45  ;;  %v563_v5 = vrot.slane %v3592_v61, 1  ;;  %v3616_v29 = vld [vmem:[%s3324_s26 + $0x88] sm:$0x3]  ;;  %v460_v44 = vrot.slane %v3613_v28, 1 }
  0x30   : > { %4829 = vst [vmem:[#allocation10_spill] sm:$0xff] %v3580_v47  ;;  %v3603_v20 = vsel %vm431_vm1, %v457_v62, %v458_v63  ;;  %v565_v45 = vrot.slane %v3616_v29, 1 }
  0x31   : > { %2752 = vmatmul.msk.f32.gmra.mxu3 %vm724_vm2, %v3375_v24  ;;  %4831 = vst [vmem:[#allocation12_spill] sm:$0xff] %v3586_v53  ;;  %v3610_v21 = vsel %vm431_vm1, %v562_v4, %v563_v5  ;;  %v3625_v62 = vsel %vm431_vm1, %v458_v63, %v460_v44 }
  0x32   : > { %2699 = vmatmul.msk.f32.gmra.mxu0 %vm724_vm2, %v3381_v26  ;;  %4832 = vst [vmem:[#allocation13_spill] sm:$0xff] %v3589_v60  ;;  %v3632_v4 = vsel %vm431_vm1, %v563_v5, %v565_v45 }
  0x33   : > { %4833 = vst [vmem:[#allocation14_spill] sm:$0xff] %v3592_v61 }
  0x34   : > { %2734 = vmatmul.msk.f32.gmra.mxu2 %vm724_vm2, %v3395_v32  ;;  %4834 = vst [vmem:[#allocation15_spill] sm:$0xff] %v3603_v20 }
  0x35   : > { %2716 = vmatmul.msk.f32.gmra.mxu1 %vm724_vm2, %v3402_v33  ;;  %4835 = vst [vmem:[#allocation16_spill] sm:$0xff] %v3610_v21 }
  0x36   : > { %4836 = vst [vmem:[#allocation17_spill] sm:$0xff] %v3613_v28  ;;  %v3641_v28 = vld [vmem:[%s3324_s26 + $0x90] sm:$0xff] }
  0x37   : > { %4837 = vst [vmem:[#allocation18_spill] sm:$0xff] %v3616_v29  ;;  %v3644_v29 = vld [vmem:[%s3324_s26 + $0x98] sm:$0xff]  ;;  %v567_v44 = vrot.slane %v3641_v28, 1 }
  0x38   : > { %4838 = vst [vmem:[#allocation19_spill] sm:$0xff] %v3625_v62  ;;  %v568_v45 = vrot.slane %v3644_v29, 1 }
  0x39   : > { %2753 = vmatmul.msk.f32.gmra.mxu3 %vm724_vm2, %v3378_v25  ;;  %4839 = vst [vmem:[#allocation20_spill] sm:$0xff] %v3632_v4 }
  0x3a   : > { %2700 = vmatmul.msk.f32.gmra.mxu0 %vm724_vm2, %v3384_v27  ;;  %4841 = vst [vmem:[#allocation22_spill] sm:$0xff] %v3641_v28 }
  0x3b   : > { %4842 = vst [vmem:[#allocation23_spill] sm:$0xff] %v3644_v29 }
  0x3c   : > { %2735 = vmatmul.msk.f32.gmra.mxu2 %vm724_vm2, %v3417_v38 }
  0x3d   : > { %2717 = vmatmul.msk.f32.gmra.mxu1 %vm724_vm2, %v3424_v39 }
  0x41   : > { %2754 = vmatmul.msk.f32.gmra.mxu3 %vm724_vm2, %v3427_v40 }
  0x42   : > { %2701 = vmatmul.msk.f32.gmra.mxu0 %vm724_vm2, %v3433_v42 }
  0x44   : > { %2736 = vmatmul.msk.f32.gmra.mxu2 %vm724_vm2, %v3447_v48 }
  0x45   : > { %2718 = vmatmul.msk.f32.gmra.mxu1 %vm724_vm2, %v3454_v49 }
  0x49   : > { %2755 = vmatmul.msk.f32.gmra.mxu3 %vm724_vm2, %v3430_v41 }
  0x4a   : > { %2702 = vmatmul.msk.f32.gmra.mxu0 %vm724_vm2, %v3436_v43 }
  0x4c   : > { %2737 = vmatmul.msk.f32.gmra.mxu2 %vm724_vm2, %v3469_v54 }
  0x4d   : > { %2719 = vmatmul.msk.f32.gmra.mxu1 %vm724_vm2, %v3476_v55 }
  0x51   : > { %2756 = vmatmul.msk.f32.gmra.mxu3 %vm724_vm2, %v3479_v56 }
  0x52   : > { %2703 = vmatmul.msk.f32.gmra.mxu0 %vm724_vm2, %v3485_v58 }
  0x54   : > { %2738 = vmatmul.msk.f32.gmra.mxu2 %vm724_vm2, %v3499_v0 }
  0x55   : > { %2720 = vmatmul.msk.f32.gmra.mxu1 %vm724_vm2, %v3506_v1 }
  0x59   : > { %2757 = vmatmul.msk.f32.gmra.mxu3 %vm724_vm2, %v3482_v57 }
  0x5a   : > { %2704 = vmatmul.msk.f32.gmra.mxu0 %vm724_vm2, %v3488_v59 }
  0x5c   : > { %2739 = vmatmul.msk.f32.gmra.mxu2 %vm724_vm2, %v3521_v6 }
  0x5d   : > { %2721 = vmatmul.msk.f32.gmra.mxu1 %vm724_vm2, %v3528_v7 }
  0x61   : > { %2758 = vmatmul.msk.f32.gmra.mxu3 %vm724_vm2, %v3531_v11 }
  0x62   : > { %2705 = vmatmul.msk.f32.gmra.mxu0 %vm724_vm2, %v3537_v13 }
  0x64   : > { %2740 = vmatmul.msk.f32.gmra.mxu2 %vm724_vm2, %v3551_v30 }
  0x65   : > { %2722 = vmatmul.msk.f32.gmra.mxu1 %vm724_vm2, %v3558_v31 }
  0x69   : > { %2759 = vmatmul.msk.f32.gmra.mxu3 %vm724_vm2, %v3534_v12 }
  0x6a   : > { %2706 = vmatmul.msk.f32.gmra.mxu0 %vm724_vm2, %v3540_v15 }
  0x6c   : > { %2741 = vmatmul.msk.f32.gmra.mxu2 %vm724_vm2, %v3573_v46 }
  0x6d   : > { %2723 = vmatmul.msk.f32.gmra.mxu1 %vm724_vm2, %v3580_v47 }
  0x71   : > { %2760 = vmatmul.msk.f32.gmra.mxu3 %vm724_vm2, %v3583_v52 }
  0x72   : > { %2707 = vmatmul.msk.f32.gmra.mxu0 %vm724_vm2, %v3589_v60  ;;  %v3668_v60 = vld [vmem:[%s3324_s26 + $0xa0] sm:$0x3] }
  0x73   : > { %4846 = vst [vmem:[#allocation27_spill] sm:$0xff] %v3668_v60 }
  0x74   : > { %2742 = vmatmul.msk.f32.gmra.mxu2 %vm724_vm2, %v3603_v20  ;;  %v3635_v20 = vld [vmem:[%s3318_s27 + $0x90] sm:$0xff] }
  0x75   : > { %2724 = vmatmul.msk.f32.gmra.mxu1 %vm724_vm2, %v3610_v21  ;;  %4840 = vst [vmem:[#allocation21_spill] sm:$0xff] %v3635_v20  ;;  %v3638_v21 = vld [vmem:[%s3318_s27 + $0x98] sm:$0xff]  ;;  %v462_v63 = vrot.slane %v3635_v20, 1 }
  0x76   : > { %v463_v5 = vrot.slane %v3638_v21, 1 }
  0x79   : > { %2761 = vmatmul.msk.f32.gmra.mxu3 %vm724_vm2, %v3586_v53  ;;  %v2838_v53 = vld [vmem:[%s4756_s3 + $0x20] sm:$0xf] }
  0x7a   : > { %2708 = vmatmul.msk.f32.gmra.mxu0 %vm724_vm2, %v3592_v61  ;;  %v3655_v61 = vsel %vm431_vm1, %v462_v63, %v463_v5  ;;  %v2874_v63 = vld [vmem:[%s4756_s3 + $0x28] sm:$0xf]  ;;  %2857 = vmatpush.msk.msra.mxu1 %vm757_vm0, %v2838_v53 }
  0x7b   : > { %4843 = vst [vmem:[#allocation24_spill] sm:$0xff] %v3655_v61  ;;  %2875 = vmatpush.msk.msra.mxu2 %vm757_vm0, %v2874_v63 }
  0x7c   : > { %2743 = vmatmul.msk.f32.gmra.mxu2 %vm724_vm2, %v3625_v62  ;;  %v3662_v62 = vsel %vm431_vm1, %v567_v44, %v568_v45 }
  0x7d   : > { %2725 = vmatmul.msk.f32.gmra.mxu1 %vm724_vm2, %v3632_v4  ;;  %4844 = vst [vmem:[#allocation25_spill] sm:$0xff] %v3662_v62  ;;  %v3665_v4 = vld [vmem:[%s3318_s27 + $0xa0] sm:$0x3] }
  0x7e   : > { %4845 = vst [vmem:[#allocation26_spill] sm:$0xff] %v3665_v4  ;;  %v465_v44 = vrot.slane %v3665_v4, 1 }
  0x80   : > { %v3691_v52 = vsel %vm431_vm1, %v463_v5, %v465_v44  ;;  %v3709_v5 = vld [vmem:[%s3324_s26 + $0xa8] sm:$0xff]  ;;  %v3712_v44 = vld [vmem:[%s3324_s26 + $0xb0] sm:$0xff] }
  0x81   : > { %2762 = vmatmul.msk.f32.gmra.mxu3 %vm724_vm2, %v3635_v20  ;;  %v570_v20 = vrot.slane %v3668_v60, 1  ;;  %4847 = vst [vmem:[#allocation28_spill] sm:$0xff] %v3691_v52  ;;  %v3704_v60 = vld [vmem:[%s3318_s27 + $0xb0] sm:$0xff]  ;;  %v572_v4 = vrot.slane %v3709_v5, 1 }
  0x82   : > { %2709 = vmatmul.msk.f32.gmra.mxu0 %vm724_vm2, %v3641_v28  ;;  %v2892_v28 = vld [vmem:[%s4756_s3 + $0x2c] sm:$0xf] }
  0x83   : > { %2893 = vmatpush.msk.msra.mxu3 %vm757_vm0, %v2892_v28  ;;  %v3698_v63 = vsel %vm431_vm1, %v568_v45, %v570_v20  ;;  %v3701_v28 = vld [vmem:[%s3318_s27 + $0xa8] sm:$0xff]  ;;  %v468_v45 = vrot.slane %v3704_v60, 1 }
  0x84   : > { %2744 = vmatmul.msk.f32.gmra.mxu2 %vm724_vm2, %v3655_v61  ;;  %v2839_v61 = vld [vmem:[%s4756_s3 + $0x24] sm:$0xf]  ;;  %4848 = vst [vmem:[#allocation29_spill] sm:$0xff] %v3698_v63  ;;  %v467_v20 = vrot.slane %v3701_v28, 1 }
  0x85   : > { %2726 = vmatmul.msk.f32.gmra.mxu1 %vm724_vm2, %v3662_v62  ;;  %4849 = vst [vmem:[#allocation30_spill] sm:$0xff] %v3701_v28  ;;  %2840 = vmatpush.msk.msra.mxu0 %vm757_vm0, %v2839_v61  ;;  %v573_v61 = vrot.slane %v3712_v44, 1  ;;  %v3736_v62 = vld [vmem:[%s3324_s26 + $0xb8] sm:$0x3] }
  0x86   : > { %v3723_v53 = vsel %vm431_vm1, %v467_v20, %v468_v45  ;;  %4853 = vst [vmem:[#allocation34_spill] sm:$0xff] %v3736_v62 }
  0x87   : > { %4850 = vst [vmem:[#allocation31_spill] sm:$0xff] %v3723_v53 }
  0x89   : > { %2763 = vmatmul.msk.f32.gmra.mxu3 %vm724_vm2, %v3638_v21 }
  0x8a   : > { %2710 = vmatmul.msk.f32.gmra.mxu0 %vm724_vm2, %v3644_v29 }
  0x8c   : > { %2745 = vmatmul.msk.f32.gmra.mxu2 %vm724_vm2, %v3691_v52  ;;  %v3730_v52 = vsel %vm431_vm1, %v572_v4, %v573_v61 }
  0x8d   : > { %2727 = vmatmul.msk.f32.gmra.mxu1 %vm724_vm2, %v3698_v63  ;;  %4851 = vst [vmem:[#allocation32_spill] sm:$0xff] %v3730_v52  ;;  %v3733_v63 = vld [vmem:[%s3318_s27 + $0xb8] sm:$0x3]  ;;  %s4019_s27 = scalar_lea.vmem %s4755_s2, %s3312_s10  ;;  %s3171_s10 = smov 32  }
  0x8e   : > { %4852 = vst [vmem:[#allocation33_spill] sm:$0xff] %v3733_v63  ;;  %v470_v20 = vrot.slane %v3733_v63, 1 }
  0x90   : > { %v3745_v29 = vsel %vm431_vm1, %v468_v45, %v470_v20  ;;  %v474_v45 = vrot.slane %v3330_v9, 2  ;;  %v577_v20 = vrot.slane %v3333_v10, 2  ;;  %v580_v10 = vrot.slane %v3353_v18, 2 }
  0x91   : > { %2764 = vmatmul.msk.f32.gmra.mxu3 %vm724_vm2, %v3701_v28  ;;  %v575_v28 = vrot.slane %v3736_v62, 1  ;;  %v473_v62 = vrot.slane %v3327_v8, 2 }
  0x92   : > { %2711 = vmatmul.msk.f32.gmra.mxu0 %vm724_vm2, %v3709_v5 }
  0x93   : > { %v3752_v4 = vsel %vm431_vm1, %v573_v61, %v575_v28 }
  0x94   : > { %2746 = vmatmul.msk.f32.gmra.mxu2 %vm724_vm2, %v3723_v53  ;;  %4854 = vst [vmem:[#allocation35_spill] sm:$0xff] %v3752_v4  ;;  %v475_v53 = vsel %vm472_vm3, %v473_v62, %v474_v45 }
  0x95   : > { %2728 = vmatmul.msk.f32.gmra.mxu1 %vm724_vm2, %v3730_v52  ;;  %v578_v52 = vrot.slane %v3343_v14, 2  ;;  %v476_v14 = vrot.slane %v3347_v16, 2 }
  0x97   : > { %v3768_v61 = vsel %vm472_vm3, %v577_v20, %v578_v52  ;;  %v3783_v20 = vsel %vm472_vm3, %v578_v52, %v580_v10 }
  0x99   : > { %2765 = vmatmul.msk.f32.gmra.mxu3 %vm724_vm2, %v3704_v60 }
  0x9a   : > { %2712 = vmatmul.msk.f32.gmra.mxu0 %vm724_vm2, %v3712_v44 }
  0x9c   : > { %2747 = vmatmul.msk.f32.gmra.mxu2 %vm724_vm2, %v3745_v29 }
  0x9d   : > { %2729 = vmatmul.msk.f32.gmra.mxu1 %vm724_vm2, %v3752_v4 }
  0x9f   : > { %v778_v63 = vpop.f32.mrf.mxu0 }
  0xa1   : > { %2822 = vmatmul.msk.f32.vlgmr.msrb.gmra.mxu3 %vm724_vm2, %v3350_v17 }
  0xa2   : > { %2769 = vmatmul.msk.f32.vlgmr.msrb.gmra.mxu0 %vm724_vm2, %v3358_v19  ;;  %v878_v28 = vpop.f32.mrf.mxu1  ;;  %v477_v19 = vsel %vm472_vm3, %v474_v45, %v476_v14  ;;  %v478_v14 = vrot.slane %v3375_v24, 2 }
  0xa3   : > { %v879_v8 = vadd.f32 %v878_v28, %v778_v63  ;;  %v582_v28 = vrot.slane %v3381_v26, 2 }
  0xa4   : > { %2804 = vmatmul.msk.f32.vlgmr.msrb.gmra.mxu2 %vm724_vm2, %v475_v53  ;;  %v1098_v9 = vpop.f32.mrf.mxu3 }
  0xa5   : > { %2786 = vmatmul.msk.f32.vlgmr.msrb.gmra.mxu1 %vm724_vm2, %v3768_v61 }
  0xa7   : > { %v781_v62 = vpop.f32.mrf.mxu0  ;;  %v980_v17 = vpop.f32.mrf.mxu2 }
  0xa8   : > { %v1028_v4 = vadd.f32 %v980_v17, %v879_v8  ;;  %v481_v17 = vrot.slane %v3405_v34, 2 }
  0xa9   : > { %2823 = vmatmul.msk.f32.gmra.mxu3 %vm724_vm2, %v3365_v22  ;;  %v479_v22 = vrot.slane %v3378_v25, 2 }
  0xaa   : > { %2770 = vmatmul.msk.f32.gmra.mxu0 %vm724_vm2, %v3372_v23  ;;  %v3780_v63 = vadd.f32 %v1098_v9, %v1028_v4  ;;  %v881_v53 = vpop.f32.mrf.mxu1  ;;  %v583_v4 = vrot.slane %v3384_v27, 2 }
  0xab   : > { %v882_v16 = vadd.f32 %v881_v53, %v781_v62  ;;  %v480_v10 = vsel %vm472_vm3, %v478_v14, %v479_v22 }
  0xac   : > { %4855 = vst [vmem:[#allocation36_spill] sm:$0xff] %v3780_v63  ;;  %2805 = vmatmul.msk.f32.gmra.mxu2 %vm724_vm2, %v477_v19  ;;  %v1101_v18 = vpop.f32.mrf.mxu3  ;;  %v3800_v25 = vsel %vm472_vm3, %v582_v28, %v583_v4 }
  0xad   : > { %2787 = vmatmul.msk.f32.gmra.mxu1 %vm724_vm2, %v3783_v20 }
  0xaf   : > { %v784_v45 = vpop.f32.mrf.mxu0  ;;  %v983_v8 = vpop.f32.mrf.mxu2 }
  0xb0   : > { %v1029_v9 = vadd.f32 %v983_v8, %v882_v16 }
  0xb1   : > { %2824 = vmatmul.msk.f32.gmra.mxu3 %vm724_vm2, %v3395_v32  ;;  %v585_v32 = vrot.slane %v3408_v35, 2 }
  0xb2   : > { %2771 = vmatmul.msk.f32.gmra.mxu0 %vm724_vm2, %v3402_v33  ;;  %v3797_v19 = vadd.f32 %v1101_v18, %v1029_v9  ;;  %v884_v24 = vpop.f32.mrf.mxu1  ;;  %v482_v18 = vsel %vm472_vm3, %v479_v22, %v481_v17  ;;  %v483_v22 = vrot.slane %v3427_v40, 2 }
  0xb3   : > { %v885_v52 = vadd.f32 %v884_v24, %v784_v45  ;;  %v3815_v8 = vsel %vm472_vm3, %v583_v4, %v585_v32  ;;  %v588_v24 = vrot.slane %v3436_v43, 2 }
  0xb4   : > { %2806 = vmatmul.msk.f32.gmra.mxu2 %vm724_vm2, %v480_v10  ;;  %v1104_v62 = vpop.f32.mrf.mxu3  ;;  %v587_v10 = vrot.slane %v3433_v42, 2 }
  0xb5   : > { %2788 = vmatmul.msk.f32.gmra.mxu1 %vm724_vm2, %v3800_v25 }
  0xb7   : > { %v787_v53 = vpop.f32.mrf.mxu0  ;;  %v986_v16 = vpop.f32.mrf.mxu2 }
  0xb8   : > { %v1030_v14 = vadd.f32 %v986_v16, %v885_v52  ;;  %v486_v16 = vrot.slane %v3457_v50, 2 }
  0xb9   : > { %2825 = vmatmul.msk.f32.gmra.mxu3 %vm724_vm2, %v3417_v38  ;;  %v484_v38 = vrot.slane %v3430_v41, 2  ;;  %v3832_v41 = vsel %vm472_vm3, %v587_v10, %v588_v24 }
  0xba   : > { %2772 = vmatmul.msk.f32.gmra.mxu0 %vm724_vm2, %v3424_v39  ;;  %v3812_v45 = vadd.f32 %v1104_v62, %v1030_v14  ;;  %v887_v28 = vpop.f32.mrf.mxu1 }
  0xbb   : > { %v888_v34 = vadd.f32 %v887_v28, %v787_v53  ;;  %v485_v4 = vsel %vm472_vm3, %v483_v22, %v484_v38 }
  0xbc   : > { %2807 = vmatmul.msk.f32.gmra.mxu2 %vm724_vm2, %v482_v18  ;;  %v1107_v35 = vpop.f32.mrf.mxu3 }
  0xbd   : > { %2789 = vmatmul.msk.f32.gmra.mxu1 %vm724_vm2, %v3815_v8 }
  0xbf   : > { %v790_v9 = vpop.f32.mrf.mxu0  ;;  %v989_v52 = vpop.f32.mrf.mxu2 }
  0xc0   : > { %v1031_v62 = vadd.f32 %v989_v52, %v888_v34  ;;  %v487_v34 = vsel %vm472_vm3, %v484_v38, %v486_v16  ;;  %v488_v38 = vrot.slane %v3479_v56, 2  ;;  %v592_v52 = vrot.slane %v3485_v58, 2 }
  0xc1   : > { %2826 = vmatmul.msk.f32.gmra.mxu3 %vm724_vm2, %v3447_v48  ;;  %v590_v48 = vrot.slane %v3460_v51, 2 }
  0xc2   : > { %2773 = vmatmul.msk.f32.gmra.mxu0 %vm724_vm2, %v3454_v49  ;;  %v3829_v17 = vadd.f32 %v1107_v35, %v1031_v62  ;;  %v890_v40 = vpop.f32.mrf.mxu1  ;;  %v593_v62 = vrot.slane %v3488_v59, 2 }
  0xc3   : > { %v891_v53 = vadd.f32 %v890_v40, %v790_v9  ;;  %v3847_v9 = vsel %vm472_vm3, %v588_v24, %v590_v48 }
  0xc4   : > { %4856 = vst [vmem:[#allocation37_spill] sm:$0xff] %v3829_v17  ;;  %2808 = vmatmul.msk.f32.gmra.mxu2 %vm724_vm2, %v485_v4  ;;  %v1110_v32 = vpop.f32.mrf.mxu3 }
  0xc5   : > { %2790 = vmatmul.msk.f32.gmra.mxu1 %vm724_vm2, %v3832_v41 }
  0xc7   : > { %v793_v14 = vpop.f32.mrf.mxu0  ;;  %v992_v18 = vpop.f32.mrf.mxu2 }
  0xc8   : > { %v1032_v28 = vadd.f32 %v992_v18, %v891_v53 }
  0xc9   : > { %2827 = vmatmul.msk.f32.gmra.mxu3 %vm724_vm2, %v3469_v54  ;;  %v489_v54 = vrot.slane %v3482_v57, 2  ;;  %v3864_v57 = vsel %vm472_vm3, %v592_v52, %v593_v62  ;;  %v598_v52 = vrot.slane %v3540_v15, 2 }
  0xca   : > { %2774 = vmatmul.msk.f32.gmra.mxu0 %vm724_vm2, %v3476_v55  ;;  %v3844_v35 = vadd.f32 %v1110_v32, %v1032_v28  ;;  %v893_v22 = vpop.f32.mrf.mxu1 }
  0xcb   : > { %v894_v50 = vadd.f32 %v893_v22, %v793_v14  ;;  %v490_v24 = vsel %vm472_vm3, %v488_v38, %v489_v54  ;;  %v491_v14 = vrot.slane %v3509_v2, 2  ;;  %v493_v38 = vrot.slane %v3531_v11, 2 }
  0xcc   : > { %2809 = vmatmul.msk.f32.gmra.mxu2 %vm724_vm2, %v487_v34  ;;  %v1113_v51 = vpop.f32.mrf.mxu3 }
  0xcd   : > { %2791 = vmatmul.msk.f32.gmra.mxu1 %vm724_vm2, %v3847_v9  ;;  %v492_v34 = vsel %vm472_vm3, %v489_v54, %v491_v14  ;;  %v597_v54 = vrot.slane %v3537_v13, 2 }
  0xcf   : > { %v796_v10 = vpop.f32.mrf.mxu0  ;;  %v995_v4 = vpop.f32.mrf.mxu2 }
  0xd0   : > { %v1033_v40 = vadd.f32 %v995_v4, %v894_v50 }
  0xd1   : > { %2828 = vmatmul.msk.f32.gmra.mxu3 %vm724_vm2, %v3499_v0  ;;  %v595_v0 = vrot.slane %v3512_v3, 2 }
  0xd2   : > { %2775 = vmatmul.msk.f32.gmra.mxu0 %vm724_vm2, %v3506_v1  ;;  %v3861_v53 = vadd.f32 %v1113_v51, %v1033_v40  ;;  %v896_v56 = vpop.f32.mrf.mxu1 }
  0xd3   : > { %v897_v32 = vadd.f32 %v896_v56, %v796_v10  ;;  %v3879_v51 = vsel %vm472_vm3, %v593_v62, %v595_v0 }
  0xd4   : > { %2810 = vmatmul.msk.f32.gmra.mxu2 %vm724_vm2, %v490_v24  ;;  %v1116_v16 = vpop.f32.mrf.mxu3  ;;  %4857 = vst [vmem:[#allocation38_spill] sm:$0xff] %v3879_v51 }
  0xd5   : > { %2792 = vmatmul.msk.f32.gmra.mxu1 %vm724_vm2, %v3864_v57 }
  0xd7   : > { %v799_v48 = vpop.f32.mrf.mxu0  ;;  %v998_v18 = vpop.f32.mrf.mxu2 }
  0xd8   : > { %v1034_v28 = vadd.f32 %v998_v18, %v897_v32  ;;  %v496_v32 = vrot.slane %v3561_v36, 2 }
  0xd9   : > { %2829 = vmatmul.msk.f32.gmra.mxu3 %vm724_vm2, %v3521_v6  ;;  %v494_v6 = vrot.slane %v3534_v12, 2  ;;  %v3896_v12 = vsel %vm472_vm3, %v597_v54, %v598_v52 }
  0xda   : > { %2776 = vmatmul.msk.f32.gmra.mxu0 %vm724_vm2, %v3528_v7  ;;  %v3876_v22 = vadd.f32 %v1116_v16, %v1034_v28  ;;  %v899_v50 = vpop.f32.mrf.mxu1  ;;  %4858 = vst [vmem:[#allocation39_spill] sm:$0xff] %v3896_v12 }
  0xdb   : > { %v900_v2 = vadd.f32 %v899_v50, %v799_v48  ;;  %v495_v62 = vsel %vm472_vm3, %v493_v38, %v494_v6  ;;  %v497_v0 = vsel %vm472_vm3, %v494_v6, %v496_v32  ;;  %v4860_v50 = vld [vmem:[#allocation11_spill] sm:$0xff]  ;;  %v4862_v38 = vld [vmem:[#allocation13_spill] sm:$0xff] }
  0xdc   : > { %2811 = vmatmul.msk.f32.gmra.mxu2 %vm724_vm2, %v492_v34  ;;  %v1119_v3 = vpop.f32.mrf.mxu3  ;;  %v602_v6 = vrot.slane %v4862_v38, 2 }
  0xdd   : > { %2793 = vmatmul.msk.f32.gmra.mxu1 %vm724_vm2, %v3879_v51 }
  0xdf   : > { %v802_v10 = vpop.f32.mrf.mxu0  ;;  %v1001_v4 = vpop.f32.mrf.mxu2 }
  0xe0   : > { %v1035_v40 = vadd.f32 %v1001_v4, %v900_v2  ;;  %v498_v2 = vrot.slane %v4860_v50, 2 }
  0xe1   : > { %2830 = vmatmul.msk.f32.gmra.mxu3 %vm724_vm2, %v3551_v30  ;;  %v600_v30 = vrot.slane %v3564_v37, 2 }
  0xe2   : > { %2777 = vmatmul.msk.f32.gmra.mxu0 %vm724_vm2, %v3558_v31  ;;  %v3893_v24 = vadd.f32 %v1119_v3, %v1035_v40  ;;  %v902_v11 = vpop.f32.mrf.mxu1  ;;  %v4861_v3 = vld [vmem:[#allocation12_spill] sm:$0xff] }
  0xe3   : > { %v903_v56 = vadd.f32 %v902_v11, %v802_v10  ;;  %v3911_v34 = vsel %vm472_vm3, %v598_v52, %v600_v30  ;;  %v4863_v10 = vld [vmem:[#allocation14_spill] sm:$0xff]  ;;  %v4864_v11 = vld [vmem:[#allocation15_spill] sm:$0xff] }
  0xe4   : > { %2812 = vmatmul.msk.f32.gmra.mxu2 %vm724_vm2, %v495_v62  ;;  %v1122_v15 = vpop.f32.mrf.mxu3  ;;  %4859 = vst [vmem:[#allocation40_spill] sm:$0xff] %v3911_v34  ;;  %v603_v4 = vrot.slane %v4863_v10, 2  ;;  %v4870_v10 = vld [vmem:[#allocation19_spill] sm:$0xff] }
  0xe5   : > { %2794 = vmatmul.msk.f32.gmra.mxu1 %vm724_vm2, %v3896_v12 }
  0xe7   : > { %v805_v16 = vpop.f32.mrf.mxu0  ;;  %v1004_v14 = vpop.f32.mrf.mxu2 }
  0xe8   : > { %v1036_v48 = vadd.f32 %v1004_v14, %v903_v56  ;;  %v4865_v56 = vld [vmem:[#allocation16_spill] sm:$0xff] }
  0xe9   : > { %2831 = vmatmul.msk.f32.gmra.mxu3 %vm724_vm2, %v3573_v46  ;;  %v499_v46 = vrot.slane %v4861_v3, 2 }
  0xea   : > { %2778 = vmatmul.msk.f32.gmra.mxu0 %vm724_vm2, %v3580_v47  ;;  %v3908_v18 = vadd.f32 %v1122_v15, %v1036_v48  ;;  %v905_v28 = vpop.f32.mrf.mxu1  ;;  %v4868_v48 = vld [vmem:[#allocation17_spill] sm:$0xff] }
  0xeb   : > { %v906_v36 = vadd.f32 %v905_v28, %v805_v16  ;;  %v500_v52 = vsel %vm472_vm3, %v498_v2, %v499_v46  ;;  %v3928_v16 = vsel %vm472_vm3, %v602_v6, %v603_v4  ;;  %v4871_v6 = vld [vmem:[#allocation20_spill] sm:$0xff] }
  0xec   : > { %2813 = vmatmul.msk.f32.gmra.mxu2 %vm724_vm2, %v497_v0  ;;  %v1125_v37 = vpop.f32.mrf.mxu3  ;;  %4867 = vst [vmem:[#allocation12_spill] sm:$0xff] %v3928_v16  ;;  %v501_v0 = vrot.slane %v4868_v48, 2  ;;  %v4875_v48 = vld [vmem:[#allocation22_spill] sm:$0xff] }
  0xed   : > { %2795 = vmatmul.msk.f32.gmra.mxu1 %vm724_vm2, %v3911_v34 }
  0xef   : > { %v808_v54 = vpop.f32.mrf.mxu0  ;;  %v1007_v40 = vpop.f32.mrf.mxu2 }
  0xf0   : > { %v1037_v62 = vadd.f32 %v1007_v40, %v906_v36  ;;  %v4869_v36 = vld [vmem:[#allocation18_spill] sm:$0xff] }
  0xf1   : > { %2832 = vmatmul.msk.f32.gmra.mxu3 %vm724_vm2, %v4864_v11  ;;  %v605_v50 = vrot.slane %v4869_v36, 2 }
  0xf2   : > { %2779 = vmatmul.msk.f32.gmra.mxu0 %vm724_vm2, %v4865_v56  ;;  %v3925_v15 = vadd.f32 %v1125_v37, %v1037_v62  ;;  %v908_v32 = vpop.f32.mrf.mxu1  ;;  %v502_v37 = vsel %vm472_vm3, %v499_v46, %v501_v0  ;;  %v4874_v46 = vld [vmem:[#allocation21_spill] sm:$0xff]  ;;  %v607_v0 = vrot.slane %v4875_v48, 2 }
  0xf3   : > { %v909_v30 = vadd.f32 %v908_v32, %v808_v54  ;;  %v3943_v62 = vsel %vm472_vm3, %v603_v4, %v605_v50  ;;  %v503_v32 = vrot.slane %v4874_v46, 2  ;;  %v4877_v50 = vld [vmem:[#allocation24_spill] sm:$0xff] }
  0xf4   : > { %4866 = vst [vmem:[#allocation11_spill] sm:$0xff] %v3925_v15  ;;  %2814 = vmatmul.msk.f32.gmra.mxu2 %vm724_vm2, %v500_v52  ;;  %v1128_v14 = vpop.f32.mrf.mxu3 }
  0xf5   : > { %2796 = vmatmul.msk.f32.gmra.mxu1 %vm724_vm2, %v3928_v16  ;;  %4873 = vst [vmem:[#allocation14_spill] sm:$0xff] %v3943_v62 }
  0xf7   : > { %v811_v28 = vpop.f32.mrf.mxu0  ;;  %v1010_v2 = vpop.f32.mrf.mxu2 }
  0xf8   : > { %v1038_v3 = vadd.f32 %v1010_v2, %v909_v30  ;;  %v504_v30 = vrot.slane %v3638_v21, 2 }
  0xf9   : > { %2833 = vmatmul.msk.f32.gmra.mxu3 %vm724_vm2, %v4870_v10 }
  0xfa   : > { %2780 = vmatmul.msk.f32.gmra.mxu0 %vm724_vm2, %v4871_v6  ;;  %v3940_v54 = vadd.f32 %v1128_v14, %v1038_v3  ;;  %v911_v40 = vpop.f32.mrf.mxu1  ;;  %v4876_v14 = vld [vmem:[#allocation23_spill] sm:$0xff]  ;;  %v505_v4 = vsel %vm472_vm3, %v503_v32, %v504_v30  ;;  %v2964_v32 = vld [vmem:[%s4756_s3 + $0x3c] sm:$0xf] }
  0xfb   : > { %v912_v52 = vadd.f32 %v911_v40, %v811_v28  ;;  %v608_v2 = vrot.slane %v4876_v14, 2  ;;  %v4878_v28 = vld [vmem:[#allocation25_spill] sm:$0xff]  ;;  %2965 = vmatpush.msk.msrb.mxu3 %vm757_vm0, %v2964_v32 }
  0xfc   : > { %4872 = vst [vmem:[#allocation13_spill] sm:$0xff] %v3940_v54  ;;  %2815 = vmatmul.msk.f32.gmra.mxu2 %vm724_vm2, %v502_v37  ;;  %v1131_v11 = vpop.f32.mrf.mxu3 }
  0xfd   : > { %2797 = vmatmul.msk.f32.gmra.mxu1 %vm724_vm2, %v3943_v62  ;;  %v3960_v21 = vsel %vm472_vm3, %v607_v0, %v608_v2 }
  0xfe   : > { %4880 = vst [vmem:[#allocation17_spill] sm:$0xff] %v3960_v21 }
  0xff   : > { %v814_v36 = vpop.f32.mrf.mxu0  ;;  %v1013_v3 = vpop.f32.mrf.mxu2 }
 0x100   : > { %v1039_v10 = vadd.f32 %v1013_v3, %v912_v52  ;;  %v2946_v52 = vld [vmem:[%s4756_s3 + $0x38] sm:$0xf]  ;;  %v4882_v3 = vld [vmem:[#allocation27_spill] sm:$0xff] }
 0x101   : > { %2834 = vmatmul.msk.f32.gmra.mxu3 %vm724_vm2, %v4877_v50  ;;  %2947 = vmatpush.msk.msrb.mxu2 %vm757_vm0, %v2946_v52  ;;  %v2911_v50 = vld [vmem:[%s4756_s3 + $0x34] sm:$0xf]  ;;  %v4884_v52 = vld [vmem:[#allocation29_spill] sm:$0xff] }
 0x102   : > { %2781 = vmatmul.msk.f32.gmra.mxu0 %vm724_vm2, %v4878_v28  ;;  %v3957_v37 = vadd.f32 %v1131_v11, %v1039_v10  ;;  %v914_v40 = vpop.f32.mrf.mxu1  ;;  %v4881_v11 = vld [vmem:[#allocation26_spill] sm:$0xff]  ;;  %v610_v10 = vrot.slane %v4882_v3, 2 }
 0x103   : > { %v915_v46 = vadd.f32 %v914_v40, %v814_v36  ;;  %v506_v14 = vrot.slane %v4881_v11, 2  ;;  %v2910_v40 = vld [vmem:[%s4756_s3 + $0x30] sm:$0xf]  ;;  %v4883_v11 = vld [vmem:[#allocation28_spill] sm:$0xff]  ;;  %2912 = vmatpush.msk.msrb.mxu0 %vm757_vm0, %v2911_v50 }
 0x104   : > { %4879 = vst [vmem:[#allocation15_spill] sm:$0xff] %v3957_v37  ;;  %2816 = vmatmul.msk.f32.gmra.mxu2 %vm724_vm2, %v505_v4  ;;  %v1134_v48 = vpop.f32.mrf.mxu3  ;;  %2929 = vmatpush.msk.msrb.mxu1 %vm757_vm0, %v2910_v40 }
 0x105   : > { %2798 = vmatmul.msk.f32.gmra.mxu1 %vm724_vm2, %v3960_v21  ;;  %v507_v17 = vsel %vm472_vm3, %v504_v30, %v506_v14  ;;  %v4887_v14 = vld [vmem:[#allocation30_spill] sm:$0xff] }
 0x107   : > { %v817_v0 = vpop.f32.mrf.mxu0  ;;  %v1016_v36 = vpop.f32.mrf.mxu2 }
 0x108   : > { %v1040_v4 = vadd.f32 %v1016_v36, %v915_v46  ;;  %v3989_v46 = vsel %vm472_vm3, %v608_v2, %v610_v10  ;;  %v613_v2 = vrot.slane %v3712_v44, 2 }
 0x109   : > { %2835 = vmatmul.msk.f32.gmra.mxu3 %vm724_vm2, %v4883_v11  ;;  %4886 = vst [vmem:[#allocation19_spill] sm:$0xff] %v3989_v46  ;;  %v508_v11 = vrot.slane %v4887_v14, 2 }
 0x10a   : > { %2782 = vmatmul.msk.f32.gmra.mxu0 %vm724_vm2, %v4884_v52  ;;  %v3986_v3 = vadd.f32 %v1134_v48, %v1040_v4  ;;  %v917_v32 = vpop.f32.mrf.mxu1  ;;  %v509_v48 = vrot.slane %v3704_v60, 2  ;;  %v612_v4 = vrot.slane %v3709_v5, 2 }
 0x10b   : > { %v918_v36 = vadd.f32 %v917_v32, %v817_v0  ;;  %v4889_v0 = vld [vmem:[#allocation32_spill] sm:$0xff] }
 0x10c   : > { %4885 = vst [vmem:[#allocation18_spill] sm:$0xff] %v3986_v3  ;;  %2817 = vmatmul.msk.f32.gmra.mxu2 %vm724_vm2, %v507_v17  ;;  %v1137_v30 = vpop.f32.mrf.mxu3  ;;  %v510_v40 = vsel %vm472_vm3, %v508_v11, %v509_v48  ;;  %v4888_v17 = vld [vmem:[#allocation31_spill] sm:$0xff]  ;;  %v4008_v60 = vsel %vm472_vm3, %v612_v4, %v613_v2 }
 0x10d   : > { %2799 = vmatmul.msk.f32.gmra.mxu1 %vm724_vm2, %v3989_v46  ;;  %4891 = vst [vmem:[#allocation22_spill] sm:$0xff] %v4008_v60 }
 0x10f   : > { %v820_v63 = vpop.f32.mrf.mxu0  ;;  %v1019_v10 = vpop.f32.mrf.mxu2 }
 0x110   : > { %v1041_v50 = vadd.f32 %v1019_v10, %v918_v36  ;;  %v4892_v36 = vld [vmem:[#allocation33_spill] sm:$0xff] }
 0x111   : > { %2836 = vmatmul.msk.f32.gmra.mxu3 %vm724_vm2, %v4888_v17  ;;  %v511_v11 = vrot.slane %v4892_v36, 2  ;;  %v4893_v17 = vld [vmem:[#allocation34_spill] sm:$0xff] }
 0x112   : > { %2783 = vmatmul.msk.f32.gmra.mxu0 %vm724_vm2, %v4889_v0  ;;  %v4005_v32 = vadd.f32 %v1137_v30, %v1041_v50  ;;  %v920_v14 = vpop.f32.mrf.mxu1  ;;  %v615_v46 = vrot.slane %v4893_v17, 2  ;;  %v4894_v30 = vld [vmem:[#allocation35_spill] sm:$0xff] }
 0x113   : > { %v921_v5 = vadd.f32 %v920_v14, %v820_v63  ;;  %v512_v63 = vsel %vm472_vm3, %v509_v48, %v511_v11  ;;  %v4035_v14 = vld [vmem:[%s4019_s27 + $0x8] sm:$0xff] }
 0x114   : > { %4890 = vst [vmem:[#allocation21_spill] sm:$0xff] %v4005_v32  ;;  %2818 = vmatmul.msk.f32.gmra.mxu2 %vm724_vm2, %v510_v40  ;;  %v1140_v44 = vpop.f32.mrf.mxu3  ;;  %v4032_v40 = vld [vmem:[%s4019_s27] sm:$0xff] }
 0x115   : > { %2800 = vmatmul.msk.f32.gmra.mxu1 %vm724_vm2, %v4008_v60 }
 0x117   : > { %v823_v10 = vpop.f32.mrf.mxu0  ;;  %v1022_v21 = vpop.f32.mrf.mxu2 }
 0x118   : > { %v1042_v3 = vadd.f32 %v1022_v21, %v921_v5  ;;  %v4029_v21 = vsel %vm472_vm3, %v613_v2, %v615_v46  ;;  %v4897_v2 = vld [vmem:[#allocation5_spill] sm:$0xff] }
 0x119   : > { %2837 = vmatmul.msk.f32.gmra.mxu3 %vm724_vm2, %v3745_v29  ;;  %4896 = vst [vmem:[#allocation24_spill] sm:$0xff] %v4029_v21 }
 0x11a   : > { %2784 = vmatmul.msk.f32.gmra.mxu0 %vm724_vm2, %v4894_v30  ;;  %v4026_v4 = vadd.f32 %v1140_v44, %v1042_v3  ;;  %v923_v50 = vpop.f32.mrf.mxu1  ;;  %v641_v3 = vrot.slane %v4032_v40, 1  ;;  %v642_v44 = vrot.slane %v4035_v14, 1 }
 0x11b   : > { %v924_v48 = vadd.f32 %v923_v50, %v823_v10  ;;  %v4899_v50 = vld [vmem:[#allocation7_spill] sm:$0xff] }
 0x11c   : > { %4895 = vst [vmem:[#allocation23_spill] sm:$0xff] %v4026_v4  ;;  %2819 = vmatmul.msk.f32.gmra.mxu2 %vm724_vm2, %v512_v63  ;;  %v1143_v5 = vpop.f32.mrf.mxu3  ;;  %v4049_v17 = vsel %vm431_vm1, %v641_v3, %v642_v44  ;;  %v4052_v63 = vld [vmem:[%s4019_s27 + $0x10] sm:$0x3] }
 0x11d   : > { %2801 = vmatmul.msk.f32.gmra.mxu1 %vm724_vm2, %v4029_v21 }
 0x11f   : > { %v1186_v29 = vpop.f32.mrf.mxu0  ;;  %v1025_v36 = vpop.f32.mrf.mxu2 }
 0x120   : > { %v1043_v46 = vadd.f32 %v1025_v36, %v924_v48 }
 0x121   : > { %2894 = vmatmul.msk.f32.vlgmr.msra.gmra.mxu3 %vm724_vm2, %v4897_v2 }
 0x122   : > { %2841 = vmatmul.msk.f32.vlgmr.msra.gmra.mxu0 %vm724_vm2, %v4032_v40  ;;  %v4046_v11 = vadd.f32 %v1143_v5, %v1043_v46  ;;  %v1286_v10 = vpop.f32.mrf.mxu1  ;;  %v644_v5 = vrot.slane %v4052_v63, 1 }
 0x123   : > { %v1287_v48 = vadd.f32 %v1286_v10, %v1186_v29  ;;  %v4067_v29 = vld [vmem:[%s4019_s27 + $0x18] sm:$0xff]  ;;  %v4070_v10 = vld [vmem:[%s4019_s27 + $0x20] sm:$0xff] }
 0x124   : > { %4898 = vst [vmem:[#allocation26_spill] sm:$0xff] %v4046_v11  ;;  %2876 = vmatmul.msk.f32.vlgmr.msra.gmra.mxu2 %vm724_vm2, %v4899_v50  ;;  %v1474_v36 = vpop.f32.mrf.mxu3  ;;  %v4900_v11 = vld [vmem:[#allocation6_spill] sm:$0xff]  ;;  %v4064_v32 = vsel %vm431_vm1, %v642_v44, %v644_v5  ;;  %v646_v44 = vrot.slane %v4067_v29, 1 }
 0x125   : > { %2858 = vmatmul.msk.f32.vlgmr.msra.gmra.mxu1 %vm724_vm2, %v4049_v17 }
 0x127   : > { %v1189_v2 = vpop.f32.mrf.mxu0  ;;  %v1388_v46 = vpop.f32.mrf.mxu2 }
 0x128   : > { %v1436_v21 = vadd.f32 %v1388_v46, %v1287_v48 }
 0x129   : > { %2895 = vmatmul.msk.f32.gmra.mxu3 %vm724_vm2, %v4900_v11 }
 0x12a   : > { %2842 = vmatmul.msk.f32.gmra.mxu0 %vm724_vm2, %v4035_v14  ;;  %v1522_v3 = vadd.f32 %v1474_v36, %v1436_v21  ;;  %v1289_v60 = vpop.f32.mrf.mxu1  ;;  %v647_v36 = vrot.slane %v4070_v10, 1 }
 0x12b   : > { %v1290_v11 = vadd.f32 %v1289_v60, %v1189_v2  ;;  %v4087_v2 = vld [vmem:[%s4019_s27 + $0x28] sm:$0x3] }
 0x12c   : > { %2877 = vmatmul.msk.f32.gmra.mxu2 %vm724_vm2, %v3372_v23  ;;  %2274 = vrot.lane.b32.xlu0 %v1522_v3, %s3171_s10  ;;  %v1477_v48 = vpop.f32.mrf.mxu3  ;;  %v4084_v60 = vsel %vm431_vm1, %v646_v44, %v647_v36 }
 0x12d   : > { %2859 = vmatmul.msk.f32.gmra.mxu1 %vm724_vm2, %v4064_v32 }
 0x12f   : > { %v1192_v21 = vpop.f32.mrf.mxu0  ;;  %v1391_v5 = vpop.f32.mrf.mxu2 }
 0x130   : > { %v1437_v46 = vadd.f32 %v1391_v5, %v1290_v11 }
 0x131   : > { %2896 = vmatmul.msk.f32.gmra.mxu3 %vm724_vm2, %v3381_v26 }
 0x132   : > { %2843 = vmatmul.msk.f32.gmra.mxu0 %vm724_vm2, %v4067_v29  ;;  %v1523_v62 = vadd.f32 %v1477_v48, %v1437_v46  ;;  %v1292_v3 = vpop.f32.mrf.mxu1  ;;  %v649_v48 = vrot.slane %v4087_v2, 1 }
 0x133   : > { %v1293_v11 = vadd.f32 %v1292_v3, %v1192_v21  ;;  %v4103_v21 = vld [vmem:[%s4019_s27 + $0x30] sm:$0xff]  ;;  %v4106_v3 = vld [vmem:[%s4019_s27 + $0x38] sm:$0xff] }
 0x134   : > { %2878 = vmatmul.msk.f32.gmra.mxu2 %vm724_vm2, %v3402_v33  ;;  %2276 = vrot.lane.b32.xlu0 %v1523_v62, %s3171_s10  ;;  %v1480_v5 = vpop.f32.mrf.mxu3  ;;  %v4100_v62 = vsel %vm431_vm1, %v647_v36, %v649_v48  ;;  %v652_v36 = vrot.slane %v4106_v3, 1 }
 0x135   : > { %2860 = vmatmul.msk.f32.gmra.mxu1 %vm724_vm2, %v4084_v60 }
 0x137   : > { %v1195_v26 = vpop.f32.mrf.mxu0  ;;  %v1394_v46 = vpop.f32.mrf.mxu2 }
 0x138   : > { %v1438_v44 = vadd.f32 %v1394_v46, %v1293_v11  ;;  %v651_v46 = vrot.slane %v4103_v21, 1 }
 0x139   : > { %2897 = vmatmul.msk.f32.gmra.mxu3 %vm724_vm2, %v3384_v27 }
 0x13a   : > { %2844 = vmatmul.msk.f32.gmra.mxu0 %vm724_vm2, %v4070_v10  ;;  %v1524_v4 = vadd.f32 %v1480_v5, %v1438_v44  ;;  %v1295_v16 = vpop.f32.mrf.mxu1 }
 0x13b   : > { %v1296_v11 = vadd.f32 %v1295_v16, %v1195_v26  ;;  %v4120_v16 = vsel %vm431_vm1, %v651_v46, %v652_v36  ;;  %v4123_v26 = vld [vmem:[%s4019_s27 + $0x40] sm:$0x3] }
 0x13c   : > { %2879 = vmatmul.msk.f32.gmra.mxu2 %vm724_vm2, %v3424_v39  ;;  %2278 = vrot.lane.b32.xlu1 %v1524_v4, %s3171_s10  ;;  %v1483_v27 = vpop.f32.mrf.mxu3 }
 0x13d   : > { %2861 = vmatmul.msk.f32.gmra.mxu1 %vm724_vm2, %v4100_v62 }
 0x13f   : > { %v1198_v5 = vpop.f32.mrf.mxu0  ;;  %v1397_v48 = vpop.f32.mrf.mxu2 }
 0x140   : > { %v1439_v44 = vadd.f32 %v1397_v48, %v1296_v11 }
 0x141   : > { %2898 = vmatmul.msk.f32.gmra.mxu3 %vm724_vm2, %v3433_v42 }
 0x142   : > { %2845 = vmatmul.msk.f32.gmra.mxu0 %vm724_vm2, %v4103_v21  ;;  %v1525_v54 = vadd.f32 %v1483_v27, %v1439_v44  ;;  %v1298_v4 = vpop.f32.mrf.mxu1  ;;  %v654_v27 = vrot.slane %v4123_v26, 1 }
 0x143   : > { %v1299_v11 = vadd.f32 %v1298_v4, %v1198_v5  ;;  %v4139_v5 = vld [vmem:[%s4019_s27 + $0x48] sm:$0xff]  ;;  %v4142_v4 = vld [vmem:[%s4019_s27 + $0x50] sm:$0xff] }
 0x144   : > { %2880 = vmatmul.msk.f32.gmra.mxu2 %vm724_vm2, %v3454_v49  ;;  %2280 = vrot.lane.b32.xlu1 %v1525_v54, %s3171_s10  ;;  %v1486_v48 = vpop.f32.mrf.mxu3  ;;  %v4136_v54 = vsel %vm431_vm1, %v652_v36, %v654_v27  ;;  %v657_v36 = vrot.slane %v4142_v4, 1 }
 0x145   : > { %2862 = vmatmul.msk.f32.gmra.mxu1 %vm724_vm2, %v4120_v16 }
 0x147   : > { %v1201_v42 = vpop.f32.mrf.mxu0  ;;  %v1400_v44 = vpop.f32.mrf.mxu2 }
 0x148   : > { %v1440_v46 = vadd.f32 %v1400_v44, %v1299_v11  ;;  %v656_v44 = vrot.slane %v4139_v5, 1 }
 0x149   : > { %2899 = vmatmul.msk.f32.gmra.mxu3 %vm724_vm2, %v3436_v43 }
 0x14a   : > { %2846 = vmatmul.msk.f32.gmra.mxu0 %vm724_vm2, %v4106_v3  ;;  %v1526_v34 = vadd.f32 %v1486_v48, %v1440_v46  ;;  %v1301_v15 = vpop.f32.mrf.mxu1 }
 0x14b   : > { %v1302_v11 = vadd.f32 %v1301_v15, %v1201_v42  ;;  %v4156_v15 = vsel %vm431_vm1, %v656_v44, %v657_v36  ;;  %v4159_v42 = vld [vmem:[%s4019_s27 + $0x58] sm:$0x3] }
 0x14c   : > { %2881 = vmatmul.msk.f32.gmra.mxu2 %vm724_vm2, %v3476_v55  ;;  %2282 = vrot.lane.b32.xlu2 %v1526_v34, %s3171_s10  ;;  %v1489_v43 = vpop.f32.mrf.mxu3 }
 0x14d   : > { %2863 = vmatmul.msk.f32.gmra.mxu1 %vm724_vm2, %v4136_v54 }
 0x14f   : > { %v1204_v48 = vpop.f32.mrf.mxu0  ;;  %v1403_v27 = vpop.f32.mrf.mxu2 }
 0x150   : > { %v1441_v46 = vadd.f32 %v1403_v27, %v1302_v11 }
 0x151   : > { %2900 = vmatmul.msk.f32.gmra.mxu3 %vm724_vm2, %v3485_v58 }
 0x152   : > { %2847 = vmatmul.msk.f32.gmra.mxu0 %vm724_vm2, %v4139_v5  ;;  %v1527_v12 = vadd.f32 %v1489_v43, %v1441_v46  ;;  %v1304_v34 = vpop.f32.mrf.mxu1  ;;  %v659_v43 = vrot.slane %v4159_v42, 1 }
 0x153   : > { %v1305_v11 = vadd.f32 %v1304_v34, %v1204_v48  ;;  %v4175_v48 = vld [vmem:[%s4019_s27 + $0x60] sm:$0xff]  ;;  %v4178_v34 = vld [vmem:[%s4019_s27 + $0x68] sm:$0xff] }
 0x154   : > { %2882 = vmatmul.msk.f32.gmra.mxu2 %vm724_vm2, %v3506_v1  ;;  %2284 = vrot.lane.b32.xlu2 %v1527_v12, %s3171_s10  ;;  %v1492_v27 = vpop.f32.mrf.mxu3  ;;  %v4172_v12 = vsel %vm431_vm1, %v657_v36, %v659_v43  ;;  %4902 = vst [vmem:[#allocation28_spill] sm:$0xff] %v4175_v48  ;;  %v662_v36 = vrot.slane %v4178_v34, 1 }
 0x155   : > { %2864 = vmatmul.msk.f32.gmra.mxu1 %vm724_vm2, %v4156_v15  ;;  %4901 = vst [vmem:[#allocation27_spill] sm:$0xff] %v4172_v12 }
 0x157   : > { %v1207_v58 = vpop.f32.mrf.mxu0  ;;  %v1406_v46 = vpop.f32.mrf.mxu2 }
 0x158   : > { %v1442_v44 = vadd.f32 %v1406_v46, %v1305_v11  ;;  %v661_v46 = vrot.slane %v4175_v48, 1 }
 0x159   : > { %2901 = vmatmul.msk.f32.gmra.mxu3 %vm724_vm2, %v3488_v59 }
 0x15a   : > { %2848 = vmatmul.msk.f32.gmra.mxu0 %vm724_vm2, %v4142_v4  ;;  %v1528_v37 = vadd.f32 %v1492_v27, %v1442_v44  ;;  %v1307_v51 = vpop.f32.mrf.mxu1 }
 0x15b   : > { %v1308_v11 = vadd.f32 %v1307_v51, %v1207_v58  ;;  %v4192_v58 = vsel %vm431_vm1, %v661_v46, %v662_v36 }
 0x15c   : > { %2883 = vmatmul.msk.f32.gmra.mxu2 %vm724_vm2, %v3528_v7  ;;  %2286 = vrot.lane.b32.xlu0 %v1528_v37, %s3171_s10  ;;  %v1495_v59 = vpop.f32.mrf.mxu3 }
 0x15d   : > { %2865 = vmatmul.msk.f32.gmra.mxu1 %vm724_vm2, %v4172_v12  ;;  %v4195_v12 = vld [vmem:[%s4019_s27 + $0x70] sm:$0x3] }
 0x15f   : > { %v1210_v27 = vpop.f32.mrf.mxu0  ;;  %v1409_v43 = vpop.f32.mrf.mxu2 }
 0x160   : > { %v1443_v44 = vadd.f32 %v1409_v43, %v1308_v11 }
 0x161   : > { %2902 = vmatmul.msk.f32.gmra.mxu3 %vm724_vm2, %v3537_v13 }
 0x162   : > { %2849 = vmatmul.msk.f32.gmra.mxu0 %vm724_vm2, %v4175_v48  ;;  %v1529_v37 = vadd.f32 %v1495_v59, %v1443_v44  ;;  %v1310_v51 = vpop.f32.mrf.mxu1  ;;  %v664_v59 = vrot.slane %v4195_v12, 1  ;;  %v3069_v48 = vld [vmem:[%s3324_s26 + $0x68] sm:$0xff] }
 0x163   : > { %v1311_v11 = vadd.f32 %v1310_v51, %v1210_v27  ;;  %v4211_v27 = vld [vmem:[%s4019_s27 + $0x78] sm:$0xff]  ;;  %v4214_v51 = vld [vmem:[%s4019_s27 + $0x80] sm:$0xff] }
 0x164   : > { %2884 = vmatmul.msk.f32.gmra.mxu2 %vm724_vm2, %v3558_v31  ;;  %2288 = vrot.lane.b32.xlu1 %v1529_v37, %s3171_s10  ;;  %v1498_v43 = vpop.f32.mrf.mxu3  ;;  %v4208_v37 = vsel %vm431_vm1, %v662_v36, %v664_v59  ;;  %4904 = vst [vmem:[#allocation31_spill] sm:$0xff] %v4211_v27  ;;  %v667_v36 = vrot.slane %v4214_v51, 1 }
 0x165   : > { %2866 = vmatmul.msk.f32.gmra.mxu1 %vm724_vm2, %v4192_v58  ;;  %4903 = vst [vmem:[#allocation30_spill] sm:$0xff] %v4208_v37 }
 0x167   : > { %v1213_v13 = vpop.f32.mrf.mxu0  ;;  %v1412_v44 = vpop.f32.mrf.mxu2 }
 0x168   : > { %v1444_v46 = vadd.f32 %v1412_v44, %v1311_v11  ;;  %v666_v44 = vrot.slane %v4211_v27, 1 }
 0x169   : > { %2903 = vmatmul.msk.f32.gmra.mxu3 %vm724_vm2, %v3069_v48 }
 0x16a   : > { %2850 = vmatmul.msk.f32.gmra.mxu0 %vm724_vm2, %v4178_v34  ;;  %v1530_v31 = vadd.f32 %v1498_v43, %v1444_v46  ;;  %v1313_v7 = vpop.f32.mrf.mxu1 }
 0x16b   : > { %v1314_v11 = vadd.f32 %v1313_v7, %v1213_v13  ;;  %v4228_v13 = vsel %vm431_vm1, %v666_v44, %v667_v36 }
 0x16c   : > { %2885 = vmatmul.msk.f32.gmra.mxu2 %vm724_vm2, %v3580_v47  ;;  %2290 = vrot.lane.b32.xlu2 %v1530_v31, %s3171_s10  ;;  %v1501_v48 = vpop.f32.mrf.mxu3 }
 0x16d   : > { %2867 = vmatmul.msk.f32.gmra.mxu1 %vm724_vm2, %v4208_v37  ;;  %v4231_v37 = vld [vmem:[%s4019_s27 + $0x88] sm:$0x3] }
 0x16e   : > { %4905 = vst [vmem:[#allocation33_spill] sm:$0xff] %v4231_v37 }
 0x16f   : > { %v1216_v43 = vpop.f32.mrf.mxu0  ;;  %v1415_v59 = vpop.f32.mrf.mxu2 }
 0x170   : > { %v1445_v46 = vadd.f32 %v1415_v59, %v1314_v11 }
 0x171   : > { %2904 = vmatmul.msk.f32.gmra.mxu3 %vm724_vm2, %v4862_v38 }
 0x172   : > { %2851 = vmatmul.msk.f32.gmra.mxu0 %vm724_vm2, %v4211_v27  ;;  %v1531_v31 = vadd.f32 %v1501_v48, %v1445_v46  ;;  %v1316_v7 = vpop.f32.mrf.mxu1  ;;  %v669_v48 = vrot.slane %v4231_v37, 1  ;;  %v3070_v27 = vld [vmem:[%s3324_s26 + $0x80] sm:$0xff]  ;;  %v3071_v37 = vld [vmem:[%s3324_s26 + $0x90] sm:$0xff] }
 0x173   : > { %v1317_v11 = vadd.f32 %v1316_v7, %v1216_v43  ;;  %v4250_v7 = vld [vmem:[%s4019_s27 + $0x98] sm:$0xff] }
 0x174   : > { %2886 = vmatmul.msk.f32.gmra.mxu2 %vm724_vm2, %v4865_v56  ;;  %2292 = vrot.lane.b32.xlu0 %v1531_v31, %s3171_s10  ;;  %v1504_v59 = vpop.f32.mrf.mxu3  ;;  %v4244_v43 = vsel %vm431_vm1, %v667_v36, %v669_v48  ;;  %v4247_v31 = vld [vmem:[%s4019_s27 + $0x90] sm:$0xff]  ;;  %v672_v36 = vrot.slane %v4250_v7, 1 }
 0x175   : > { %2868 = vmatmul.msk.f32.gmra.mxu1 %vm724_vm2, %v4228_v13  ;;  %4906 = vst [vmem:[#allocation34_spill] sm:$0xff] %v4244_v43 }
 0x176   : > { %4907 = vst [vmem:[#allocation35_spill] sm:$0xff] %v4247_v31 }
 0x177   : > { %v1219_v38 = vpop.f32.mrf.mxu0  ;;  %v1418_v46 = vpop.f32.mrf.mxu2 }
 0x178   : > { %v1446_v44 = vadd.f32 %v1418_v46, %v1317_v11  ;;  %v671_v46 = vrot.slane %v4247_v31, 1 }
 0x179   : > { %2905 = vmatmul.msk.f32.gmra.mxu3 %vm724_vm2, %v3070_v27 }
 0x17a   : > { %2852 = vmatmul.msk.f32.gmra.mxu0 %vm724_vm2, %v4214_v51  ;;  %v1532_v56 = vadd.f32 %v1504_v59, %v1446_v44  ;;  %v1319_v47 = vpop.f32.mrf.mxu1 }
 0x17b   : > { %v1320_v27 = vadd.f32 %v1319_v47, %v1219_v38  ;;  %v4264_v38 = vsel %vm431_vm1, %v671_v46, %v672_v36 }
 0x17c   : > { %2887 = vmatmul.msk.f32.gmra.mxu2 %vm724_vm2, %v4871_v6  ;;  %2294 = vrot.lane.b32.xlu1 %v1532_v56, %s3171_s10  ;;  %v1507_v11 = vpop.f32.mrf.mxu3 }
 0x17d   : > { %2869 = vmatmul.msk.f32.gmra.mxu1 %vm724_vm2, %v4244_v43  ;;  %v4267_v43 = vld [vmem:[%s4019_s27 + $0xa0] sm:$0x3] }
 0x17e   : > { %4908 = vst [vmem:[#allocation5_spill] sm:$0xff] %v4267_v43 }
 0x17f   : > { %v1222_v59 = vpop.f32.mrf.mxu0  ;;  %v1421_v48 = vpop.f32.mrf.mxu2 }
 0x180   : > { %v1447_v44 = vadd.f32 %v1421_v48, %v1320_v27 }
 0x181   : > { %2906 = vmatmul.msk.f32.gmra.mxu3 %vm724_vm2, %v3071_v37 }
 0x182   : > { %2853 = vmatmul.msk.f32.gmra.mxu0 %vm724_vm2, %v4247_v31  ;;  %v1533_v56 = vadd.f32 %v1507_v11, %v1447_v44  ;;  %v1322_v47 = vpop.f32.mrf.mxu1  ;;  %v674_v11 = vrot.slane %v4267_v43, 1  ;;  %v3072_v31 = vld [vmem:[%s3324_s26 + $0x98] sm:$0xff]  ;;  %v3073_v43 = vld [vmem:[%s3324_s26 + $0xa8] sm:$0xff] }
 0x183   : > { %v1323_v27 = vadd.f32 %v1322_v47, %v1222_v59  ;;  %v4286_v47 = vld [vmem:[%s4019_s27 + $0xb0] sm:$0xff] }
 0x184   : > { %2888 = vmatmul.msk.f32.gmra.mxu2 %vm724_vm2, %v4878_v28  ;;  %2296 = vrot.lane.b32.xlu2 %v1533_v56, %s3171_s10  ;;  %v1510_v48 = vpop.f32.mrf.mxu3  ;;  %v4280_v59 = vsel %vm431_vm1, %v672_v36, %v674_v11  ;;  %v4283_v56 = vld [vmem:[%s4019_s27 + $0xa8] sm:$0xff]  ;;  %v677_v36 = vrot.slane %v4286_v47, 1 }
 0x185   : > { %2870 = vmatmul.msk.f32.gmra.mxu1 %vm724_vm2, %v4264_v38  ;;  %4909 = vst [vmem:[#allocation7_spill] sm:$0xff] %v4280_v59 }
 0x186   : > { %4910 = vst [vmem:[#allocation6_spill] sm:$0xff] %v4283_v56 }
 0x187   : > { %v1225_v37 = vpop.f32.mrf.mxu0  ;;  %v1424_v44 = vpop.f32.mrf.mxu2 }
 0x188   : > { %v1448_v46 = vadd.f32 %v1424_v44, %v1323_v27  ;;  %v676_v44 = vrot.slane %v4283_v56, 1 }
 0x189   : > { %2907 = vmatmul.msk.f32.gmra.mxu3 %vm724_vm2, %v3072_v31 }
 0x18a   : > { %2854 = vmatmul.msk.f32.gmra.mxu0 %vm724_vm2, %v4250_v7  ;;  %v1534_v28 = vadd.f32 %v1510_v48, %v1448_v46  ;;  %v1325_v6 = vpop.f32.mrf.mxu1 }
 0x18b   : > { %v1326_v31 = vadd.f32 %v1325_v6, %v1225_v37  ;;  %v4300_v37 = vsel %vm431_vm1, %v676_v44, %v677_v36 }
 0x18c   : > { %2889 = vmatmul.msk.f32.gmra.mxu2 %vm724_vm2, %v4884_v52  ;;  %2298 = vrot.lane.b32.xlu0 %v1534_v28, %s3171_s10  ;;  %v1513_v27 = vpop.f32.mrf.mxu3  ;;  %v3074_v52 = vld [vmem:[%s3324_s26 + $0xb0] sm:$0xff]  ;;  %s3172_s26 = smov 64  }
 0x18d   : > { %2871 = vmatmul.msk.f32.gmra.mxu1 %vm724_vm2, %v4280_v59  ;;  %v4303_v59 = vld [vmem:[%s4019_s27 + $0xb8] sm:$0x3]  ;;  %s2986_s27 = sshll.u32 %s2550_s15, 3  ;;  %s3095_s15 = scalar_lea.hbm %s4758_s5, 512 }
 0x18f   : > { %v1228_v48 = vpop.f32.mrf.mxu0  ;;  %v1427_v11 = vpop.f32.mrf.mxu2 }
 0x190   : > { %v1449_v46 = vadd.f32 %v1427_v11, %v1326_v31 }
 0x191   : > { %2908 = vmatmul.msk.f32.gmra.mxu3 %vm724_vm2, %v3073_v43 }
 0x192   : > { %2855 = vmatmul.msk.f32.gmra.mxu0 %vm724_vm2, %v4283_v56  ;;  %v1535_v28 = vadd.f32 %v1513_v27, %v1449_v46  ;;  %v1328_v6 = vpop.f32.mrf.mxu1  ;;  %v679_v56 = vrot.slane %v4303_v59, 1 }
 0x193   : > { %v1329_v31 = vadd.f32 %v1328_v6, %v1228_v48 }
 0x194   : > { %2890 = vmatmul.msk.f32.gmra.mxu2 %vm724_vm2, %v4889_v0  ;;  %2300 = vrot.lane.b32.xlu1 %v1535_v28, %s3171_s10  ;;  %v1516_v11 = vpop.f32.mrf.mxu3  ;;  %v4316_v28 = vsel %vm431_vm1, %v677_v36, %v679_v56 }
 0x195   : > { %2872 = vmatmul.msk.f32.gmra.mxu1 %vm724_vm2, %v4300_v37 }
 0x197   : > { %v1231_v43 = vpop.f32.mrf.mxu0  ;;  %v1430_v27 = vpop.f32.mrf.mxu2 }
 0x198   : > { %v1450_v46 = vadd.f32 %v1430_v27, %v1329_v31 }
 0x199   : > { %2909 = vmatmul.msk.f32.gmra.mxu3 %vm724_vm2, %v3074_v52  ;;  %v681_v52 = vrot.slane %v4032_v40, 2 }
 0x19a   : > { %2856 = vmatmul.msk.f32.gmra.mxu0 %vm724_vm2, %v4286_v47  ;;  %v1536_v44 = vadd.f32 %v1516_v11, %v1450_v46  ;;  %v1331_v0 = vpop.f32.mrf.mxu1  ;;  %v682_v11 = vrot.slane %v4035_v14, 2 }
 0x19b   : > { %v1332_v48 = vadd.f32 %v1331_v0, %v1231_v43 }
 0x19c   : > { %2891 = vmatmul.msk.f32.gmra.mxu2 %vm724_vm2, %v4894_v30  ;;  %2302 = vrot.lane.b32.xlu2 %v1536_v44, %s3171_s10  ;;  %v1519_v6 = vpop.f32.mrf.mxu3  ;;  %v683_v43 = vsel %vm472_vm3, %v681_v52, %v682_v11 }
 0x19d   : > { %2873 = vmatmul.msk.f32.gmra.mxu1 %vm724_vm2, %v4316_v28 }
 0x19e   : > { %v4324_v31 = vpop.permute.xlu0 %2274 }
 0x19f   : > { %v1594_v27 = vpop.f32.mrf.mxu0  ;;  %v1433_v46 = vpop.f32.mrf.mxu2 }
 0x1a0   : > { %v1451_v56 = vadd.f32 %v1433_v46, %v1332_v48 }
 0x1a1   : > { %2966 = vmatmul.msk.f32.vlgmr.msrb.gmra.mxu3 %vm724_vm2, %v4899_v50  ;;  %v684_v50 = vrot.slane %v4052_v63, 2 }
 0x1a2   : > { %2913 = vmatmul.msk.f32.vlgmr.msrb.gmra.mxu0 %vm724_vm2, %v4049_v17  ;;  %v1537_v0 = vadd.f32 %v1519_v6, %v1451_v56  ;;  %v1694_v36 = vpop.f32.mrf.mxu1 }
 0x1a3   : > { %v1695_v40 = vadd.f32 %v1694_v36, %v1594_v27  ;;  %v685_v63 = vsel %vm472_vm3, %v682_v11, %v684_v50 }
 0x1a4   : > { %2948 = vmatmul.msk.f32.vlgmr.msrb.gmra.mxu2 %vm724_vm2, %v3768_v61  ;;  %2304 = vrot.lane.b32.xlu0 %v1537_v0, %s3171_s10  ;;  %v1850_v44 = vpop.f32.mrf.mxu3  ;;  %v686_v0 = vrot.slane %v4067_v29, 2 }
 0x1a5   : > { %2930 = vmatmul.msk.f32.vlgmr.msrb.gmra.mxu1 %vm724_vm2, %v683_v43 }
 0x1a6   : > { %v2277_v14 = vpop.permute.xlu0 %2276  ;;  %v2283_v48 = vpop.permute.xlu2 %2282 }
 0x1a7   : > { %v4339_v17 = vsel %vm2450_vm4, %v3797_v19, %v2277_v14  ;;  %v4343_v6 = vsel %vm2450_vm4, %v3844_v35, %v2283_v48  ;;  %v1764_v61 = vpop.f32.mrf.mxu2  ;;  %v1597_v52 = vpop.f32.mrf.mxu0  ;;  %v689_v48 = vrot.slane %v4087_v2, 2 }
 0x1a8   : > { %v1812_v46 = vadd.f32 %v1764_v61, %v1695_v40 }
 0x1a9   : > { %2967 = vmatmul.msk.f32.gmra.mxu3 %vm724_vm2, %v3372_v23 }
 0x1aa   : > { %2914 = vmatmul.msk.f32.gmra.mxu0 %vm724_vm2, %v4064_v32  ;;  %v1898_v27 = vadd.f32 %v1850_v44, %v1812_v46  ;;  %v1697_v56 = vpop.f32.mrf.mxu1  ;;  %v687_v32 = vrot.slane %v4070_v10, 2 }
 0x1ab   : > { %v1698_v19 = vadd.f32 %v1697_v56, %v1597_v52 }
 0x1ac   : > { %2949 = vmatmul.msk.f32.gmra.mxu2 %vm724_vm2, %v3783_v20  ;;  %2338 = vrot.lane.b32.xlu1 %v1898_v27, %s3172_s26  ;;  %v1853_v35 = vpop.f32.mrf.mxu3  ;;  %v688_v10 = vsel %vm472_vm3, %v686_v0, %v687_v32  ;;  %v691_v27 = vrot.slane %v4103_v21, 2 }
 0x1ad   : > { %2931 = vmatmul.msk.f32.gmra.mxu1 %vm724_vm2, %v685_v63 }
 0x1ae   : > { %v2279_v23 = vpop.permute.xlu1 %2278  ;;  %v2285_v36 = vpop.permute.xlu2 %2284 }
 0x1af   : > { %v4358_v43 = vsel %vm2450_vm4, %v3812_v45, %v2279_v23  ;;  %v4362_v20 = vsel %vm2450_vm4, %v3861_v53, %v2285_v36  ;;  %v1767_v11 = vpop.f32.mrf.mxu2  ;;  %v1600_v40 = vpop.f32.mrf.mxu0  ;;  %v694_v23 = vrot.slane %v4123_v26, 2 }
 0x1b0   : > { %v1813_v44 = vadd.f32 %v1767_v11, %v1698_v19 }
 0x1b1   : > { %2968 = vmatmul.msk.f32.gmra.mxu3 %vm724_vm2, %v3402_v33 }
 0x1b2   : > { %2915 = vmatmul.msk.f32.gmra.mxu0 %vm724_vm2, %v4084_v60  ;;  %v1899_v29 = vadd.f32 %v1853_v35, %v1813_v44  ;;  %v1700_v14 = vpop.f32.mrf.mxu1  ;;  %v696_v44 = vrot.slane %v4139_v5, 2 }
 0x1b3   : > { %v1701_v45 = vadd.f32 %v1700_v14, %v1600_v40 }
 0x1b4   : > { %2950 = vmatmul.msk.f32.gmra.mxu2 %vm724_vm2, %v3800_v25  ;;  %2340 = vrot.lane.b32.xlu2 %v1899_v29, %s3172_s26  ;;  %v1856_v53 = vpop.f32.mrf.mxu3  ;;  %v690_v25 = vsel %vm472_vm3, %v687_v32, %v689_v48 }
 0x1b5   : > { %2932 = vmatmul.msk.f32.gmra.mxu1 %vm724_vm2, %v688_v10 }
 0x1b6   : > { %v4409_v29 = vpop.permute.xlu1 %2280 }
 0x1b7   : > { %v1770_v50 = vpop.f32.mrf.mxu2  ;;  %v1603_v33 = vpop.f32.mrf.mxu0 }
 0x1b8   : > { %v1814_v61 = vadd.f32 %v1770_v50, %v1701_v45 }
 0x1b9   : > { %2969 = vmatmul.msk.f32.gmra.mxu3 %vm724_vm2, %v3424_v39  ;;  %v692_v39 = vrot.slane %v4106_v3, 2 }
 0x1ba   : > { %2916 = vmatmul.msk.f32.gmra.mxu0 %vm724_vm2, %v4100_v62  ;;  %v1900_v60 = vadd.f32 %v1856_v53, %v1814_v61  ;;  %v1703_v52 = vpop.f32.mrf.mxu1 }
 0x1bb   : > { %v1704_v46 = vadd.f32 %v1703_v52, %v1603_v33  ;;  %v693_v35 = vsel %vm472_vm3, %v691_v27, %v692_v39  ;;  %v695_v40 = vsel %vm472_vm3, %v692_v39, %v694_v23  ;;  %v699_v33 = vrot.slane %v4159_v42, 2  ;;  %v4911_v52 = vld [vmem:[#allocation8_spill] sm:$0xff]  ;;  %v4913_v27 = vld [vmem:[#allocation38_spill] sm:$0xff] }
 0x1bc   : > { %2951 = vmatmul.msk.f32.gmra.mxu2 %vm724_vm2, %v3815_v8  ;;  %2342 = vrot.lane.b32.xlu0 %v1900_v60, %s3172_s26  ;;  %v1859_v2 = vpop.f32.mrf.mxu3  ;;  %v4914_v39 = vld [vmem:[#allocation28_spill] sm:$0xff] }
 0x1bd   : > { %2933 = vmatmul.msk.f32.gmra.mxu1 %vm724_vm2, %v690_v25 }
 0x1bf   : > { %v1773_v56 = vpop.f32.mrf.mxu2  ;;  %v1606_v63 = vpop.f32.mrf.mxu0 }
 0x1c0   : > { %v1815_v62 = vadd.f32 %v1773_v56, %v1704_v46  ;;  %v701_v56 = vrot.slane %v4914_v39, 2 }
 0x1c1   : > { %2970 = vmatmul.msk.f32.gmra.mxu3 %vm724_vm2, %v3454_v49 }
 0x1c2   : > { %2917 = vmatmul.msk.f32.gmra.mxu0 %vm724_vm2, %v4120_v16  ;;  %v1901_v8 = vadd.f32 %v1859_v2, %v1815_v62  ;;  %v1706_v19 = vpop.f32.mrf.mxu1  ;;  %v702_v62 = vrot.slane %v4178_v34, 2 }
 0x1c3   : > { %v1707_v21 = vadd.f32 %v1706_v19, %v1606_v63 }
 0x1c4   : > { %2952 = vmatmul.msk.f32.gmra.mxu2 %vm724_vm2, %v3832_v41  ;;  %2344 = vrot.lane.b32.xlu1 %v1901_v8, %s3172_s26  ;;  %v1862_v3 = vpop.f32.mrf.mxu3  ;;  %v4915_v8 = vld [vmem:[#allocation15_spill] sm:$0xff] }
 0x1c5   : > { %2934 = vmatmul.msk.f32.gmra.mxu1 %vm724_vm2, %v693_v35 }
 0x1c6   : > { %v2291_v0 = vpop.permute.xlu2 %2290 }
 0x1c7   : > { %v4397_v49 = vsel %vm2450_vm4, %v3908_v18, %v2291_v0  ;;  %v1776_v16 = vpop.f32.mrf.mxu2  ;;  %v1609_v36 = vpop.f32.mrf.mxu0  ;;  %v4916_v0 = vld [vmem:[#allocation9_spill] sm:$0xff] }
 0x1c8   : > { %v1816_v32 = vadd.f32 %v1776_v16, %v1707_v21 }
 0x1c9   : > { %2971 = vmatmul.msk.f32.gmra.mxu3 %vm724_vm2, %v3476_v55 }
 0x1ca   : > { %2918 = vmatmul.msk.f32.gmra.mxu0 %vm724_vm2, %v4136_v54  ;;  %v1902_v41 = vadd.f32 %v1862_v3, %v1816_v32  ;;  %v1709_v11 = vpop.f32.mrf.mxu1  ;;  %v697_v54 = vrot.slane %v4142_v4, 2  ;;  %v4917_v32 = vld [vmem:[#allocation39_spill] sm:$0xff] }
 0x1cb   : > { %v1710_v18 = vadd.f32 %v1709_v11, %v1609_v36  ;;  %v703_v36 = vsel %vm472_vm3, %v701_v56, %v702_v62  ;;  %v4926_v56 = vld [vmem:[#allocation33_spill] sm:$0xff] }
 0x1cc   : > { %2953 = vmatmul.msk.f32.gmra.mxu2 %vm724_vm2, %v3847_v9  ;;  %2346 = vrot.lane.b32.xlu2 %v1902_v41, %s3172_s26  ;;  %v1865_v26 = vpop.f32.mrf.mxu3  ;;  %v698_v48 = vsel %vm472_vm3, %v696_v44, %v697_v54  ;;  %v700_v2 = vsel %vm472_vm3, %v697_v54, %v699_v33  ;;  %v4919_v54 = vld [vmem:[#allocation10_spill] sm:$0xff]  ;;  %v707_v33 = vrot.slane %v4214_v51, 2 }
 0x1cd   : > { %2935 = vmatmul.msk.f32.gmra.mxu1 %vm724_vm2, %v695_v40  ;;  %v704_v40 = vrot.slane %v4195_v12, 2 }
 0x1ce   : > { %v2287_v55 = vpop.permute.xlu0 %2286 }
 0x1cf   : > { %v4414_v14 = vsel %vm2450_vm4, %v3876_v22, %v2287_v55  ;;  %v1779_v10 = vpop.f32.mrf.mxu2  ;;  %v1612_v45 = vpop.f32.mrf.mxu0 }
 0x1d0   : > { %v1817_v9 = vadd.f32 %v1779_v10, %v1710_v18  ;;  %v4918_v18 = vld [vmem:[#allocation11_spill] sm:$0xff]  ;;  %v4920_v10 = vld [vmem:[#allocation30_spill] sm:$0xff] }
 0x1d1   : > { %2972 = vmatmul.msk.f32.gmra.mxu3 %vm724_vm2, %v3506_v1 }
 0x1d2   : > { %2919 = vmatmul.msk.f32.gmra.mxu0 %vm724_vm2, %v4156_v15  ;;  %v1903_v53 = vadd.f32 %v1865_v26, %v1817_v9  ;;  %v1712_v5 = vpop.f32.mrf.mxu1 }
 0x1d3   : > { %v1713_v22 = vadd.f32 %v1712_v5, %v1612_v45  ;;  %v4921_v5 = vld [vmem:[#allocation40_spill] sm:$0xff] }
 0x1d4   : > { %2954 = vmatmul.msk.f32.gmra.mxu2 %vm724_vm2, %v3864_v57  ;;  %2348 = vrot.lane.b32.xlu0 %v1903_v53, %s3172_s26  ;;  %v1868_v4 = vpop.f32.mrf.mxu3  ;;  %v4912_v57 = vld [vmem:[#allocation27_spill] sm:$0xff]  ;;  %v705_v53 = vsel %vm472_vm3, %v702_v62, %v704_v40 }
 0x1d5   : > { %2936 = vmatmul.msk.f32.gmra.mxu1 %vm724_vm2, %v698_v48  ;;  %v4927_v62 = vld [vmem:[#allocation23_spill] sm:$0xff] }
 0x1d6   : > { %v2289_v50 = vpop.permute.xlu1 %2288 }
 0x1d7   : > { %v4428_v1 = vsel %vm2450_vm4, %v3893_v24, %v2289_v50  ;;  %v1782_v15 = vpop.f32.mrf.mxu2  ;;  %v1615_v61 = vpop.f32.mrf.mxu0 }
 0x1d8   : > { %v1818_v60 = vadd.f32 %v1782_v15, %v1713_v22  ;;  %v4922_v22 = vld [vmem:[#allocation31_spill] sm:$0xff]  ;;  %v4923_v15 = vld [vmem:[#allocation13_spill] sm:$0xff] }
 0x1d9   : > { %2973 = vmatmul.msk.f32.gmra.mxu3 %vm724_vm2, %v4911_v52 }
 0x1da   : > { %2920 = vmatmul.msk.f32.gmra.mxu0 %vm724_vm2, %v4912_v57  ;;  %v1904_v25 = vadd.f32 %v1868_v4, %v1818_v60  ;;  %v1715_v46 = vpop.f32.mrf.mxu1  ;;  %v706_v4 = vrot.slane %v4922_v22, 2 }
 0x1db   : > { %v1716_v24 = vadd.f32 %v1715_v46, %v1615_v61 }
 0x1dc   : > { %2955 = vmatmul.msk.f32.gmra.mxu2 %vm724_vm2, %v4913_v27  ;;  %2350 = vrot.lane.b32.xlu1 %v1904_v25, %s3172_s26  ;;  %v1871_v42 = vpop.f32.mrf.mxu3  ;;  %v4924_v25 = vld [vmem:[#allocation16_spill] sm:$0xff]  ;;  %v708_v27 = vsel %vm472_vm3, %v706_v4, %v707_v33 }
 0x1dd   : > { %2937 = vmatmul.msk.f32.gmra.mxu1 %vm724_vm2, %v700_v2 }
 0x1de   : > { %v2297_v63 = vpop.permute.xlu2 %2296 }
 0x1df   : > { %v4443_v19 = vsel %vm2450_vm4, %v4915_v8, %v2297_v63  ;;  %v1785_v35 = vpop.f32.mrf.mxu2  ;;  %v1618_v21 = vpop.f32.mrf.mxu0  ;;  %v709_v63 = vrot.slane %v4926_v56, 2  ;;  %v4940_v56 = vld [vmem:[#allocation6_spill] sm:$0xff] }
 0x1e0   : > { %v1819_v3 = vadd.f32 %v1785_v35, %v1716_v24  ;;  %v4925_v24 = vld [vmem:[#allocation12_spill] sm:$0xff] }
 0x1e1   : > { %2974 = vmatmul.msk.f32.gmra.mxu3 %vm724_vm2, %v4916_v0  ;;  %v4929_v0 = vld [vmem:[#allocation34_spill] sm:$0xff] }
 0x1e2   : > { %2921 = vmatmul.msk.f32.gmra.mxu0 %vm724_vm2, %v4192_v58  ;;  %v1905_v23 = vadd.f32 %v1871_v42, %v1819_v3  ;;  %v1718_v16 = vpop.f32.mrf.mxu1  ;;  %v4928_v3 = vld [vmem:[#allocation20_spill] sm:$0xff] }
 0x1e3   : > { %v1719_v34 = vadd.f32 %v1718_v16, %v1618_v21 }
 0x1e4   : > { %2956 = vmatmul.msk.f32.gmra.mxu2 %vm724_vm2, %v4917_v32  ;;  %2352 = vrot.lane.b32.xlu2 %v1905_v23, %s3172_s26  ;;  %v1874_v41 = vpop.f32.mrf.mxu3  ;;  %v4930_v32 = vld [vmem:[#allocation14_spill] sm:$0xff] }
 0x1e5   : > { %2938 = vmatmul.msk.f32.gmra.mxu1 %vm724_vm2, %v703_v36  ;;  %v710_v36 = vsel %vm472_vm3, %v707_v33, %v709_v63  ;;  %v716_v63 = vrot.slane %v4940_v56, 2 }
 0x1e6   : > { %v2293_v11 = vpop.permute.xlu0 %2292 }
 0x1e7   : > { %v4457_v26 = vsel %vm2450_vm4, %v4918_v18, %v2293_v11  ;;  %v1788_v58 = vpop.f32.mrf.mxu2  ;;  %v1621_v44 = vpop.f32.mrf.mxu0  ;;  %v4931_v11 = vld [vmem:[#allocation35_spill] sm:$0xff] }
 0x1e8   : > { %v1820_v55 = vadd.f32 %v1788_v58, %v1719_v34  ;;  %v711_v40 = vrot.slane %v4931_v11, 2  ;;  %v712_v58 = vrot.slane %v4250_v7, 2  ;;  %v719_v11 = vrot.slane %v4303_v59, 2 }
 0x1e9   : > { %2975 = vmatmul.msk.f32.gmra.mxu3 %vm724_vm2, %v4919_v54 }
 0x1ea   : > { %2922 = vmatmul.msk.f32.gmra.mxu0 %vm724_vm2, %v4920_v10  ;;  %v1906_v45 = vadd.f32 %v1874_v41, %v1820_v55  ;;  %v1721_v9 = vpop.f32.mrf.mxu1 }
 0x1eb   : > { %v1722_v12 = vadd.f32 %v1721_v9, %v1621_v44  ;;  %v4932_v44 = vld [vmem:[#allocation18_spill] sm:$0xff]  ;;  %v4933_v9 = vld [vmem:[#allocation25_spill] sm:$0xff] }
 0x1ec   : > { %2957 = vmatmul.msk.f32.gmra.mxu2 %vm724_vm2, %v4921_v5  ;;  %2354 = vrot.lane.b32.xlu0 %v1906_v45, %s3172_s26  ;;  %v1877_v48 = vpop.f32.mrf.mxu3 }
 0x1ed   : > { %2939 = vmatmul.msk.f32.gmra.mxu1 %vm724_vm2, %v705_v53 }
 0x1ee   : > { %v2295_v50 = vpop.permute.xlu1 %2294 }
 0x1ef   : > { %v4472_v61 = vsel %vm2450_vm4, %v4923_v15, %v2295_v50  ;;  %v1791_v60 = vpop.f32.mrf.mxu2  ;;  %v1624_v52 = vpop.f32.mrf.mxu0  ;;  %v4935_v50 = vld [vmem:[#allocation5_spill] sm:$0xff] }
 0x1f0   : > { %v1821_v57 = vadd.f32 %v1791_v60, %v1722_v12  ;;  %v713_v12 = vsel %vm472_vm3, %v711_v40, %v712_v58  ;;  %v714_v33 = vrot.slane %v4935_v50, 2  ;;  %v4936_v15 = vld [vmem:[#allocation21_spill] sm:$0xff]  ;;  %v4943_v40 = vld [vmem:[#allocation26_spill] sm:$0xff] }
 0x1f1   : > { %2976 = vmatmul.msk.f32.gmra.mxu3 %vm724_vm2, %v4924_v25  ;;  %v4937_v25 = vld [vmem:[#allocation29_spill] sm:$0xff] }
 0x1f2   : > { %2923 = vmatmul.msk.f32.gmra.mxu0 %vm724_vm2, %v4228_v13  ;;  %v1907_v46 = vadd.f32 %v1877_v48, %v1821_v57  ;;  %v1724_v2 = vpop.f32.mrf.mxu1  ;;  %v4934_v48 = vld [vmem:[#allocation17_spill] sm:$0xff] }
 0x1f3   : > { %v1725_v51 = vadd.f32 %v1724_v2, %v1624_v52 }
 0x1f4   : > { %2958 = vmatmul.msk.f32.gmra.mxu2 %vm724_vm2, %v4925_v24  ;;  %2356 = vrot.lane.b32.xlu1 %v1907_v46, %s3172_s26  ;;  %v1880_v42 = vpop.f32.mrf.mxu3  ;;  %v4938_v46 = vld [vmem:[#allocation7_spill] sm:$0xff]  ;;  %v715_v24 = vsel %vm472_vm3, %v712_v58, %v714_v33 }
 0x1f5   : > { %2940 = vmatmul.msk.f32.gmra.mxu1 %vm724_vm2, %v708_v27 }
 0x1f6   : > { %v2303_v39 = vpop.permute.xlu2 %2302 }
 0x1f7   : > { %v4486_v8 = vsel %vm2450_vm4, %v4927_v62, %v2303_v39  ;;  %v1794_v13 = vpop.f32.mrf.mxu2  ;;  %v1627_v35 = vpop.f32.mrf.mxu0 }
 0x1f8   : > { %v1822_v21 = vadd.f32 %v1794_v13, %v1725_v51  ;;  %v4939_v51 = vld [vmem:[#allocation19_spill] sm:$0xff]  ;;  %v717_v13 = vrot.slane %v4286_v47, 2 }
 0x1f9   : > { %2977 = vmatmul.msk.f32.gmra.mxu3 %vm724_vm2, %v4928_v3 }
 0x1fa   : > { %2924 = vmatmul.msk.f32.gmra.mxu0 %vm724_vm2, %v4929_v0  ;;  %v1908_v23 = vadd.f32 %v1880_v42, %v1822_v21  ;;  %v1727_v16 = vpop.f32.mrf.mxu1 }
 0x1fb   : > { %v1728_v34 = vadd.f32 %v1727_v16, %v1627_v35 }
 0x1fc   : > { %2959 = vmatmul.msk.f32.gmra.mxu2 %vm724_vm2, %v4930_v32  ;;  %2358 = vrot.lane.b32.xlu2 %v1908_v23, %s3172_s26  ;;  %v1883_v41 = vpop.f32.mrf.mxu3  ;;  %v4941_v23 = vld [vmem:[#allocation32_spill] sm:$0xff]  ;;  %v718_v32 = vsel %vm472_vm3, %v716_v63, %v717_v13 }
 0x1fd   : > { %2941 = vmatmul.msk.f32.gmra.mxu1 %vm724_vm2, %v710_v36 }
 0x1fe   : > { %v2299_v18 = vpop.permute.xlu0 %2298 }
 0x1ff   : > { %v4501_v55 = vsel %vm2450_vm4, %v4932_v44, %v2299_v18  ;;  %v1797_v54 = vpop.f32.mrf.mxu2  ;;  %v1630_v10 = vpop.f32.mrf.mxu0 }
 0x200   : > { %v1823_v45 = vadd.f32 %v1797_v54, %v1728_v34  ;;  %v4942_v34 = vld [vmem:[#allocation22_spill] sm:$0xff] }
 0x201   : > { %2978 = vmatmul.msk.f32.gmra.mxu3 %vm724_vm2, %v4933_v9  ;;  %v4944_v9 = vld [vmem:[#allocation24_spill] sm:$0xff] }
 0x202   : > { %2925 = vmatmul.msk.f32.gmra.mxu0 %vm724_vm2, %v4264_v38  ;;  %v1909_v53 = vadd.f32 %v1883_v41, %v1823_v45  ;;  %v1730_v5 = vpop.f32.mrf.mxu1  ;;  %v720_v45 = vsel %vm472_vm3, %v717_v13, %v719_v11 }
 0x203   : > { %v1731_v7 = vadd.f32 %v1730_v5, %v1630_v10 }
 0x204   : > { %2960 = vmatmul.msk.f32.gmra.mxu2 %vm724_vm2, %v4934_v48  ;;  %2360 = vrot.lane.b32.xlu0 %v1909_v53, %s3172_s26  ;;  %v1886_v22 = vpop.f32.mrf.mxu3 }
 0x205   : > { %2942 = vmatmul.msk.f32.gmra.mxu1 %vm724_vm2, %v713_v12 }
 0x206   : > { %v2301_v4 = vpop.permute.xlu1 %2300 }
 0x207   : > { %v4515_v60 = vsel %vm2450_vm4, %v4936_v15, %v2301_v4  ;;  %v1800_v38 = vpop.f32.mrf.mxu2  ;;  %v1633_v52 = vpop.f32.mrf.mxu0 }
 0x208   : > { %v1824_v57 = vadd.f32 %v1800_v38, %v1731_v7 }
 0x209   : > { %2979 = vmatmul.msk.f32.gmra.mxu3 %vm724_vm2, %v4937_v25 }
 0x20a   : > { %2926 = vmatmul.msk.f32.gmra.mxu0 %vm724_vm2, %v4938_v46  ;;  %v1910_v2 = vadd.f32 %v1886_v22, %v1824_v57  ;;  %v1733_v27 = vpop.f32.mrf.mxu1 }
 0x20b   : > { %v1734_v42 = vadd.f32 %v1733_v27, %v1633_v52 }
 0x20c   : > { %2961 = vmatmul.msk.f32.gmra.mxu2 %vm724_vm2, %v4939_v51  ;;  %2362 = vrot.lane.b32.xlu1 %v1910_v2, %s3172_s26  ;;  %v1889_v39 = vpop.f32.mrf.mxu3 }
 0x20d   : > { %2943 = vmatmul.msk.f32.gmra.mxu1 %vm724_vm2, %v715_v24 }
 0x20e   : > { %v2341_v62 = vpop.permute.xlu2 %2340 }
 0x20f   : > { %v4530_v35 = vsel %vm2467_vm5, %v4339_v17, %v2341_v62  ;;  %v1803_v21 = vpop.f32.mrf.mxu2  ;;  %v1636_v3 = vpop.f32.mrf.mxu0 }
 0x210   : > { %v1825_v0 = vadd.f32 %v1803_v21, %v1734_v42 }
 0x211   : > { %2980 = vmatmul.msk.f32.gmra.mxu3 %vm724_vm2, %v4941_v23 }
 0x212   : > { %2927 = vmatmul.msk.f32.gmra.mxu0 %vm724_vm2, %v4300_v37  ;;  %v1911_v16 = vadd.f32 %v1889_v39, %v1825_v0  ;;  %v1736_v36 = vpop.f32.mrf.mxu1 }
 0x213   : > { %v1737_v47 = vadd.f32 %v1736_v36, %v1636_v3 }
 0x214   : > { %2962 = vmatmul.msk.f32.gmra.mxu2 %vm724_vm2, %v4942_v34  ;;  %2364 = vrot.lane.b32.xlu2 %v1911_v16, %s3172_s26  ;;  %v1892_v17 = vpop.f32.mrf.mxu3 }
 0x215   : > { %2944 = vmatmul.msk.f32.gmra.mxu1 %vm724_vm2, %v718_v32 }
 0x216   : > { %v2305_v41 = vpop.permute.xlu0 %2304 }
 0x217   : > { %v4544_v18 = vsel %vm2450_vm4, %v4943_v40, %v2305_v41  ;;  %v1806_v37 = vpop.f32.mrf.mxu2  ;;  %v1639_v58 = vpop.f32.mrf.mxu0 }
 0x218   : > { %v1826_v44 = vadd.f32 %v1806_v37, %v1737_v47 }
 0x219   : > { %2981 = vmatmul.msk.f32.gmra.mxu3 %vm724_vm2, %v4894_v30 }
 0x21a   : > { %2928 = vmatmul.msk.f32.gmra.mxu0 %vm724_vm2, %v4316_v28  ;;  %v1912_v54 = vadd.f32 %v1892_v17, %v1826_v44  ;;  %v1739_v10 = vpop.f32.mrf.mxu1 }
 0x21b   : > { %v1740_v59 = vadd.f32 %v1739_v10, %v1639_v58 }
 0x21c   : > { %2963 = vmatmul.msk.f32.gmra.mxu2 %vm724_vm2, %v4944_v9  ;;  %2366 = vrot.lane.b32.xlu0 %v1912_v54, %s3172_s26  ;;  %v1895_v53 = vpop.f32.mrf.mxu3 }
 0x21d   : > { %2945 = vmatmul.msk.f32.gmra.mxu1 %vm724_vm2, %v720_v45 }
 0x21f   : > { %v1809_v5 = vpop.f32.mrf.mxu2  ;;  %v1938_v12 = vpop.f32.mrf.mxu0 }
 0x220   : > { %v1827_v48 = vadd.f32 %v1809_v5, %v1740_v59 }
 0x222   : > { %v1913_v30 = vadd.f32 %v1895_v53, %v1827_v48  ;;  %v2038_v7 = vpop.f32.mrf.mxu1 }
 0x223   : > { %v2039_v28 = vadd.f32 %v2038_v7, %v1938_v12 }
 0x224   : > { %2368 = vrot.lane.b32.xlu1 %v1913_v30, %s3172_s26  ;;  %v2194_v22 = vpop.f32.mrf.mxu3 }
 0x226   : > { %v2347_v4 = vpop.permute.xlu2 %2346 }
 0x227   : > { %v4558_v50 = vsel %vm2467_vm5, %v4343_v6, %v2347_v4  ;;  %v2108_v33 = vpop.f32.mrf.mxu2  ;;  %v1941_v15 = vpop.f32.mrf.mxu0 }
 0x228   : > { %v2156_v38 = vadd.f32 %v2108_v33, %v2039_v28 }
 0x22a   : > { %v2242_v52 = vadd.f32 %v2194_v22, %v2156_v38  ;;  %v2041_v57 = vpop.f32.mrf.mxu1 }
 0x22b   : > { %v2042_v25 = vadd.f32 %v2041_v57, %v1941_v15 }
 0x22c   : > { %2402 = vrot.lane.b32.xlu2 %v2242_v52, %s3173_s16  ;;  %v2197_v46 = vpop.f32.mrf.mxu3 }
 0x22f   : > { %v2111_v2 = vpop.f32.mrf.mxu2  ;;  %v1944_v27 = vpop.f32.mrf.mxu0 }
 0x230   : > { %v2157_v24 = vadd.f32 %v2111_v2, %v2042_v25 }
 0x232   : > { %v2243_v51 = vadd.f32 %v2197_v46, %v2157_v24  ;;  %v2044_v42 = vpop.f32.mrf.mxu1  ;;  %v2339_v46 = vpop.permute.xlu1 %2338 }
 0x233   : > { %v2045_v39 = vadd.f32 %v2044_v42, %v1944_v27 }
 0x234   : > { %2404 = vrot.lane.b32.xlu0 %v2243_v51, %s3173_s16  ;;  %v2200_v6 = vpop.f32.mrf.mxu3 }
 0x237   : > { %v2114_v56 = vpop.f32.mrf.mxu2  ;;  %v1947_v63 = vpop.f32.mrf.mxu0 }
 0x238   : > { %v2158_v62 = vadd.f32 %v2114_v56, %v2045_v39 }
 0x23a   : > { %v2244_v13 = vadd.f32 %v2200_v6, %v2158_v62  ;;  %v2047_v21 = vpop.f32.mrf.mxu1 }
 0x23b   : > { %v2048_v3 = vadd.f32 %v2047_v21, %v1947_v63  ;;  %v4584_v63 = vpop.permute.xlu1 %2344 }
 0x23c   : > { %2406 = vrot.lane.b32.xlu1 %v2244_v13, %s3173_s16  ;;  %v2203_v0 = vpop.f32.mrf.mxu3 }
 0x23e   : > { %v2353_v23 = vpop.permute.xlu2 %2352 }
 0x23f   : > { %v4565_v16 = vsel %vm2467_vm5, %v4428_v1, %v2353_v23  ;;  %v2117_v36 = vpop.f32.mrf.mxu2  ;;  %v1950_v32 = vpop.f32.mrf.mxu0 }
 0x240   : > { %v2159_v34 = vadd.f32 %v2117_v36, %v2048_v3  ;;  %v4569_v1 = vpop.permute.xlu0 %2342 }
 0x242   : > { %v2245_v47 = vadd.f32 %v2203_v0, %v2159_v34  ;;  %v2050_v17 = vpop.f32.mrf.mxu1 }
 0x243   : > { %v2051_v41 = vadd.f32 %v2050_v17, %v1950_v32 }
 0x244   : > { %2408 = vrot.lane.b32.xlu2 %v2245_v47, %s3173_s16  ;;  %v2206_v11 = vpop.f32.mrf.mxu3 }
 0x247   : > { %v2120_v40 = vpop.f32.mrf.mxu2  ;;  %v1953_v37 = vpop.f32.mrf.mxu0 }
 0x248   : > { %v2160_v58 = vadd.f32 %v2120_v40, %v2051_v41  ;;  %v4572_v7 = vpop.permute.xlu0 %2348 }
 0x24a   : > { %v2246_v44 = vadd.f32 %v2206_v11, %v2160_v58  ;;  %v2053_v54 = vpop.f32.mrf.mxu1 }
 0x24b   : > { %v2054_v10 = vadd.f32 %v2053_v54, %v1953_v37 }
 0x24c   : > { %2410 = vrot.lane.b32.xlu0 %v2246_v44, %s3173_s16  ;;  %v2209_v45 = vpop.f32.mrf.mxu3 }
 0x24e   : > { %v4587_v36 = vpop.permute.xlu1 %2350 }
 0x24f   : > { %v2123_v9 = vpop.f32.mrf.mxu2  ;;  %v1956_v59 = vpop.f32.mrf.mxu0 }
 0x250   : > { %v2161_v53 = vadd.f32 %v2123_v9, %v2054_v10 }
 0x252   : > { %v2247_v5 = vadd.f32 %v2209_v45, %v2161_v53  ;;  %v2056_v12 = vpop.f32.mrf.mxu1 }
 0x253   : > { %v2057_v48 = vadd.f32 %v2056_v12, %v1956_v59 }
 0x254   : > { %2412 = vrot.lane.b32.xlu1 %v2247_v5, %s3173_s16  ;;  %v2212_v30 = vpop.f32.mrf.mxu3 }
 0x256   : > { %v2359_v28 = vpop.permute.xlu2 %2358 }
 0x257   : > { %v4576_v22 = vsel %vm2467_vm5, %v4472_v61, %v2359_v28  ;;  %v2126_v4 = vpop.f32.mrf.mxu2  ;;  %v1959_v33 = vpop.f32.mrf.mxu0 }
 0x258   : > { %v2162_v15 = vadd.f32 %v2126_v4, %v2057_v48 }
 0x25a   : > { %v2248_v38 = vadd.f32 %v2212_v30, %v2162_v15  ;;  %v2059_v52 = vpop.f32.mrf.mxu1 }
 0x25b   : > { %v2060_v57 = vadd.f32 %v2059_v52, %v1959_v33  ;;  %v4610_v52 = vld [vmem:[%s4757_s4] ss:$0 sm:$0xff] }
 0x25c   : > { %2414 = vrot.lane.b32.xlu2 %v2248_v38, %s3173_s16  ;;  %v2215_v25 = vpop.f32.mrf.mxu3 }
 0x25e   : > { %v2355_v2 = vpop.permute.xlu0 %2354 }
 0x25f   : > { %v4581_v27 = vsel %vm2467_vm5, %v4397_v49, %v2355_v2  ;;  %v2129_v24 = vpop.f32.mrf.mxu2  ;;  %v1962_v51 = vpop.f32.mrf.mxu0 }
 0x260   : > { %v2163_v42 = vadd.f32 %v2129_v24, %v2060_v57 }
 0x262   : > { %v2249_v61 = vadd.f32 %v2215_v25, %v2163_v42  ;;  %v2062_v39 = vpop.f32.mrf.mxu1 }
 0x263   : > { %v2063_v6 = vadd.f32 %v2062_v39, %v1962_v51 }
 0x264   : > { %2416 = vrot.lane.b32.xlu0 %v2249_v61, %s3173_s16  ;;  %v2218_v56 = vpop.f32.mrf.mxu3 }
 0x266   : > { %v4594_v44 = vpop.permute.xlu1 %2356 }
 0x267   : > { %v2132_v62 = vpop.f32.mrf.mxu2  ;;  %v1965_v13 = vpop.f32.mrf.mxu0 }
 0x268   : > { %v2164_v21 = vadd.f32 %v2132_v62, %v2063_v6 }
 0x26a   : > { %v2250_v3 = vadd.f32 %v2218_v56, %v2164_v21  ;;  %v2065_v0 = vpop.f32.mrf.mxu1 }
 0x26b   : > { %v2066_v49 = vadd.f32 %v2065_v0, %v1965_v13 }
 0x26c   : > { %2418 = vrot.lane.b32.xlu1 %v2250_v3, %s3173_s16  ;;  %v2221_v23 = vpop.f32.mrf.mxu3 }
 0x26e   : > { %v2365_v32 = vpop.permute.xlu2 %2364 }
 0x26f   : > { %v4591_v34 = vsel %vm2467_vm5, %v4515_v60, %v2365_v32  ;;  %v2135_v47 = vpop.f32.mrf.mxu2  ;;  %v1968_v17 = vpop.f32.mrf.mxu0 }
 0x270   : > { %v2165_v41 = vadd.f32 %v2135_v47, %v2066_v49 }
 0x272   : > { %v2251_v11 = vadd.f32 %v2221_v23, %v2165_v41  ;;  %v2068_v40 = vpop.f32.mrf.mxu1 }
 0x273   : > { %v2069_v37 = vadd.f32 %v2068_v40, %v1968_v17 }
 0x274   : > { %2420 = vrot.lane.b32.xlu2 %v2251_v11, %s3173_s16  ;;  %v2224_v58 = vpop.f32.mrf.mxu3 }
 0x276   : > { %v2361_v54 = vpop.permute.xlu0 %2360 }
 0x277   : > { %v4598_v10 = vsel %vm2467_vm5, %v4443_v19, %v2361_v54  ;;  %v2138_v45 = vpop.f32.mrf.mxu2  ;;  %v1971_v60 = vpop.f32.mrf.mxu0 }
 0x278   : > { %v2166_v9 = vadd.f32 %v2138_v45, %v2069_v37 }
 0x27a   : > { %v2252_v59 = vadd.f32 %v2224_v58, %v2166_v9  ;;  %v2071_v53 = vpop.f32.mrf.mxu1 }
 0x27b   : > { %v2072_v5 = vadd.f32 %v2071_v53, %v1971_v60  ;;  %v4946_v60 = vld [vmem:[#allocation37_spill] sm:$0xff] }
 0x27c   : > { %2422 = vrot.lane.b32.xlu0 %v2252_v59, %s3173_s16  ;;  %v2227_v12 = vpop.f32.mrf.mxu3  ;;  %v2454_v9 = vsel %vm2450_vm4, %v4946_v60, %v4409_v29 }
 0x27d   : > { %v2471_v59 = vsel %vm2467_vm5, %v2454_v9, %v4584_v63 }
 0x27e   : > { %v2363_v48 = vpop.permute.xlu1 %2362 }
 0x27f   : > { %v4603_v30 = vsel %vm2467_vm5, %v4501_v55, %v2363_v48  ;;  %v2141_v28 = vpop.f32.mrf.mxu2  ;;  %v1974_v4 = vpop.f32.mrf.mxu0  ;;  %v4945_v55 = vld [vmem:[#allocation36_spill] sm:$0xff] }
 0x280   : > { %v2167_v33 = vadd.f32 %v2141_v28, %v2072_v5  ;;  %v2451_v25 = vsel %vm2450_vm4, %v4945_v55, %v4324_v31  ;;  %v2474_v55 = vsel %vm2467_vm5, %v4414_v14, %v4587_v36 }
 0x281   : > { %v2468_v2 = vsel %vm2467_vm5, %v2451_v25, %v2339_v46 }
 0x282   : > { %v2253_v19 = vadd.f32 %v2227_v12, %v2167_v33  ;;  %v2074_v15 = vpop.f32.mrf.mxu1 }
 0x283   : > { %v2075_v38 = vadd.f32 %v2074_v15, %v1974_v4 }
 0x284   : > { %2424 = vrot.lane.b32.xlu1 %v2253_v19, %s3173_s16  ;;  %v2230_v57 = vpop.f32.mrf.mxu3  ;;  %v2470_v19 = vsel %vm2467_vm5, %v4358_v43, %v4569_v1 }
 0x286   : > { %v2403_v24 = vpop.permute.xlu2 %2402 }
 0x287   : > { %v2485_v51 = vsel %vm2484_vm6, %v2468_v2, %v2403_v24  ;;  %v2144_v42 = vpop.f32.mrf.mxu2  ;;  %v1977_v61 = vpop.f32.mrf.mxu0 }
 0x288   : > { %v2505_v39 = vadd.f32 %v4610_v52, %v2485_v51  ;;  %v2168_v6 = vadd.f32 %v2144_v42, %v2075_v38  ;;  %v2473_v51 = vsel %vm2467_vm5, %v4362_v20, %v4572_v7 }
 0x28a   : > { %2521 = vst [vmem:[%s4620_s9] sm:$0xff] %v2505_v39  ;;  %v2254_v56 = vadd.f32 %v2230_v57, %v2168_v6  ;;  %v2077_v62 = vpop.f32.mrf.mxu1 }
 0x28b   : > { %v2078_v13 = vadd.f32 %v2077_v62, %v1977_v61  ;;  %v2477_v61 = vsel %vm2467_vm5, %v4457_v26, %v4594_v44 }
 0x28c   : > { %2426 = vrot.lane.b32.xlu2 %v2254_v56, %s3173_s16  ;;  %v2233_v31 = vpop.f32.mrf.mxu3 }
 0x28e   : > { %v2367_v21 = vpop.permute.xlu0 %2366 }
 0x28f   : > { %v4626_v46 = vsel %vm2467_vm5, %v4486_v8, %v2367_v21  ;;  %v2147_v3 = vpop.f32.mrf.mxu2  ;;  %v1980_v0 = vpop.f32.mrf.mxu0 }
 0x290   : > { %v2169_v49 = vadd.f32 %v2147_v3, %v2078_v13 }
 0x292   : > { %v2255_v23 = vadd.f32 %v2233_v31, %v2169_v49  ;;  %v2080_v32 = vpop.f32.mrf.mxu1 }
 0x293   : > { %v2081_v47 = vadd.f32 %v2080_v32, %v1980_v0 }
 0x294   : > { %2428 = vrot.lane.b32.xlu0 %v2255_v23, %s3173_s16  ;;  %v2236_v17 = vpop.f32.mrf.mxu3 }
 0x296   : > { %v2369_v41 = vpop.permute.xlu1 %2368 }
 0x297   : > { %v4631_v11 = vsel %vm2467_vm5, %v4544_v18, %v2369_v41  ;;  %v2150_v40 = vpop.f32.mrf.mxu2  ;;  %v1983_v58 = vpop.f32.mrf.mxu0 }
 0x298   : > { %v2170_v37 = vadd.f32 %v2150_v40, %v2081_v47 }
 0x29a   : > { %v2256_v8 = vadd.f32 %v2236_v17, %v2170_v37  ;;  %v2083_v54 = vpop.f32.mrf.mxu1 }
 0x29b   : > { %v2084_v45 = vadd.f32 %v2083_v54, %v1983_v58 }
 0x29c   : > { %2430 = vrot.lane.b32.xlu1 %v2256_v8, %s3173_s16  ;;  %v2239_v12 = vpop.f32.mrf.mxu3 }
 0x29e   : > { %v2409_v53 = vpop.permute.xlu2 %2408 }
 0x29f   : > { %v2488_v18 = vsel %vm2484_vm6, %v2471_v59, %v2409_v53  ;;  %v2153_v5 = vpop.f32.mrf.mxu2 }
 0x2a0   : > { %v2508_v48 = vadd.f32 %v4610_v52, %v2488_v18  ;;  %v2171_v28 = vadd.f32 %v2153_v5, %v2084_v45 }
 0x2a2   : > { %2524 = vst [vmem:[%s4620_s9 + $0x18] sm:$0xff] %v2508_v48  ;;  %v2257_v4 = vadd.f32 %v2239_v12, %v2171_v28 }
 0x2a4   : > { %2432 = vrot.lane.b32.xlu2 %v2257_v4, %s3173_s16  ;;  %s2552_s16 = scalar_lea.hbm %s4758_s5, %s2986_s27 }
 0x2a5   : > { %s2555_s21 = sshll.u32 %s2552_s16, 4  ;;  %s2556_s21 = int_to_ptr.hbm [resolvable:$true] %s2555_s21 }
 0x2a6   : > { %v2405_v33 = vpop.permute.xlu0 %2404  ;;  %s3089_s30 = sshra.s32 %s2556_s21, 4  ;;  %s3090_s30 = int_to_ptr.hbm [resolvable:$true] %s3089_s30 }
 0x2a7   : > { %v2486_v29 = vsel %vm2484_vm6, %v4530_v35, %v2405_v33  ;;  %s3091_s8 = scalar_lea.hbm %s3090_s30, 128  ;;  %p3096_p4 = scmp.lt.s32.totalorder %s3090_s30, %s4758_s5 }
 0x2a8   : > { %v2506_v63 = vadd.f32 %v4610_v52, %v2486_v29  ;;  %p3092_p0 = scmp.ne.s32.totalorder %s3090_s30, %s3091_s8  ;;  %p3097_p5 = scmp.lt.s32.totalorder %s3095_s15, %s3091_s8 }
 0x2aa   : > { %2522 = vst [vmem:[%s4620_s9 + $0x8] sm:$0xff] %v2506_v63  ;;  %p3093_p1 = pnand %p3092_p0, %p3257_p3  ;;  %p3098_p6 = por %p3097_p5, %p3096_p4 }
 0x2ac   : > { %p3094_p2 = pneg %p3093_p1 }
 0x2ae   : > { %v2407_v15 = vpop.permute.xlu1 %2406  ;;  %p3099_p7 = pnand %p3098_p6, %p3094_p2 }
 0x2af   : > { %v2487_v38 = vsel %vm2484_vm6, %v2470_v19, %v2407_v15 }
 0x2b0   : > { %v2507_v57 = vadd.f32 %v4610_v52, %v2487_v38 }
 0x2b2   : > { %2523 = vst [vmem:[%s4620_s9 + $0x10] sm:$0xff] %v2507_v57 }
 0x2b6   : > { %v2415_v35 = vpop.permute.xlu2 %2414 }
 0x2b7   : > { %v2491_v25 = vsel %vm2484_vm6, %v2474_v55, %v2415_v35 }
 0x2b8   : > { %v2511_v2 = vadd.f32 %v4610_v52, %v2491_v25 }
 0x2ba   : > { %2527 = vst [vmem:[%s4620_s9 + $0x30] sm:$0xff] %v2511_v2 }
 0x2be   : > { %v2411_v24 = vpop.permute.xlu0 %2410 }
 0x2bf   : > { %v2489_v43 = vsel %vm2484_vm6, %v4558_v50, %v2411_v24 }
 0x2c0   : > { %v2509_v1 = vadd.f32 %v4610_v52, %v2489_v43 }
 0x2c2   : > { %2525 = vst [vmem:[%s4620_s9 + $0x20] sm:$0xff] %v2509_v1 }
 0x2c6   : > { %v2413_v14 = vpop.permute.xlu1 %2412 }
 0x2c7   : > { %v2490_v36 = vsel %vm2484_vm6, %v2473_v51, %v2413_v14 }
 0x2c8   : > { %v2510_v42 = vadd.f32 %v4610_v52, %v2490_v36 }
 0x2ca   : > { %2526 = vst [vmem:[%s4620_s9 + $0x28] sm:$0xff] %v2510_v42 }
 0x2ce   : > { %v2421_v50 = vpop.permute.xlu2 %2420 }
 0x2cf   : > { %v2494_v39 = vsel %vm2484_vm6, %v2477_v61, %v2421_v50 }
 0x2d0   : > { %v2514_v6 = vadd.f32 %v4610_v52, %v2494_v39 }
 0x2d2   : > { %2530 = vst [vmem:[%s4620_s9 + $0x48] sm:$0xff] %v2514_v6 }
 0x2d6   : > { %v2417_v20 = vpop.permute.xlu0 %2416 }
 0x2d7   : > { %v2492_v7 = vsel %vm2484_vm6, %v4565_v16, %v2417_v20 }
 0x2d8   : > { %v2512_v56 = vadd.f32 %v4610_v52, %v2492_v7 }
 0x2da   : > { %2528 = vst [vmem:[%s4620_s9 + $0x38] sm:$0xff] %v2512_v56 }
 0x2de   : > { %v2419_v62 = vpop.permute.xlu1 %2418 }
 0x2df   : > { %v2493_v26 = vsel %vm2484_vm6, %v4581_v27, %v2419_v62 }
 0x2e0   : > { %v2513_v44 = vadd.f32 %v4610_v52, %v2493_v26 }
 0x2e2   : > { %2529 = vst [vmem:[%s4620_s9 + $0x40] sm:$0xff] %v2513_v44 }
 0x2e6   : > { %v2427_v13 = vpop.permute.xlu2 %2426 }
 0x2e7   : > { %v2497_v31 = vsel %vm2484_vm6, %v4603_v30, %v2427_v13 }
 0x2e8   : > { %v2517_v16 = vadd.f32 %v4610_v52, %v2497_v31 }
 0x2ea   : > { %2533 = vst [vmem:[%s4620_s9 + $0x60] sm:$0xff] %v2517_v16 }
 0x2ee   : > { %v2423_v21 = vpop.permute.xlu0 %2422 }
 0x2ef   : > { %v2495_v3 = vsel %vm2484_vm6, %v4576_v22, %v2423_v21 }
 0x2f0   : > { %v2515_v0 = vadd.f32 %v4610_v52, %v2495_v3 }
 0x2f2   : > { %2531 = vst [vmem:[%s4620_s9 + $0x50] sm:$0xff] %v2515_v0 }
 0x2f6   : > { %v2425_v27 = vpop.permute.xlu1 %2424 }
 0x2f7   : > { %v2496_v49 = vsel %vm2484_vm6, %v4598_v10, %v2425_v27 }
 0x2f8   : > { %v2516_v23 = vadd.f32 %v4610_v52, %v2496_v49 }
 0x2fa   : > { %2532 = vst [vmem:[%s4620_s9 + $0x58] sm:$0xff] %v2516_v23 }
 0x2fe   : > { %v2433_v30 = vpop.permute.xlu2 %2432 }
 0x2ff   : > { %v2500_v32 = vsel %vm2484_vm6, %v4631_v11, %v2433_v30 }
 0x300   : > { %v2520_v47 = vadd.f32 %v4610_v52, %v2500_v32 }
 0x302   : > { %2536 = vst [vmem:[%s4620_s9 + $0x78] sm:$0xff] %v2520_v47 }
 0x306   : > { %v2429_v22 = vpop.permute.xlu0 %2428 }
 0x307   : > { %v2498_v10 = vsel %vm2484_vm6, %v4591_v34, %v2429_v22 }
 0x308   : > { %v2518_v17 = vadd.f32 %v4610_v52, %v2498_v10 }
 0x30a   : > { %2534 = vst [vmem:[%s4620_s9 + $0x68] sm:$0xff] %v2518_v17 }
 0x30e   : > { %v2431_v41 = vpop.permute.xlu1 %2430 }
 0x30f   : > { %v2499_v11 = vsel %vm2484_vm6, %v4626_v46, %v2431_v41 }
 0x310   : > { %v2519_v40 = vadd.f32 %v4610_v52, %v2499_v11 }
 0x312   : > { %2535 = vst [vmem:[%s4620_s9 + $0x70] sm:$0xff] %v2519_v40 }
 0x313   : > { %3102 = shalt.err (!%p3099_p7)
}
 0x314   : > { %s3174_s14 = smov 128   ;;  %s3175_s9 = smov 8  }
 0x315   : > { %2992 = dma.vmem_to_hbm [thread:$0]  (%p3257_p3), %s2554_s17, 2048, %s2556_s21, %s2538_s22, %s3174_s14, %s3174_s14, %s3175_s9  }
 0x316 PF: > { %p2998_p9 = scmp.ge.s32.totalorder %s3169_s25, 2  ;;  %s2570_s26 = sand.u32 1, %s3141_s18  }
 0x317   : > { %s2571_s16 = scalar_lea.sflag [#allocation3], %s2570_s26 }
 0x318   : > { %p2995_p10 = pnand %p2998_p9, %p3266_p8 }
 0x31a   : > { %p2996_p11 = pneg %p2995_p10 }
 0x31c   : > { %3136 = dma.done.wait (%p2996_p11), %s2571_s16, 2048  }
 0x31d   : > { %3138 = vsyncadd (%p2996_p11), %s2571_s16, 4294965248  ;;  %s18_s25 = sadd.s32 1, %s3169_s25   ;;  %s4947_s18 = smov %s3145_s19 }
 0x31e   : > { %p15_p12 = scmp.ge.s32.totalorder %s18_s25, 6   ;;  %s4948_s19 = smov %s3149_s20 }
 0x31f   : > { %s4949_s20 = smov %s3275_s11  ;;  %s4950_s21 = smov %s3161_s23 }
 0x320   : > { %s4951_s22 = smov %s3165_s24  ;;  %s4952_s23 = smov %s4955_s28 }
 0x321   : > { %s4953_s24 = smov %s4959_s29  ;;  %17 = sbr.rel (!%p15_p12) target bundleno = 5 (0x5), region = 96 }
 0x326   :  { %2577 = vsyncpa [#allocation3], 1 }
 0x327   :  { %2579 = vsyncpa [#allocation3 + $0x1], 1 }

// kernel: tpu_custom_call.1
= control target key start
LH: loop header
LB: loop body
LE: loop exit
PB: predicated region body
PF: predicated region fallthrough
CT: control target
= control target key end

     0   :  { %10 = vsyncpa [#allocation3], 0  ;;  %s4753_s0 = inlined_call_operand.vmem [shape: f32[2,16,18,4], index: 0, kind: input, shape index: {}]   ;;  %s4754_s1 = inlined_call_operand.vmem [shape: f32[2,16,18,4], index: 1, kind: input, shape index: {}]   ;;  %s4755_s2 = inlined_call_operand.vmem [shape: f32[2,16,18,4], index: 2, kind: input, shape index: {}]   ;;  %s4756_s3 = inlined_call_operand.vmem [shape: f32[16,4,32], index: 3, kind: input, shape index: {}]   ;;  %s4757_s4 = inlined_call_operand.vmem [shape: f32[1,128], index: 4, kind: input, shape index: {}]   ;;  %s4758_s5 = inlined_call_operand.hbm [shape: f32[2,16,16,128], index: 5, kind: output, shape index: {}]  }
   0x1   :  { %12 = vsyncpa [#allocation3 + $0x1], 0  ;;  %s3206_s18 = smov 0   ;;  %s3208_s19 = smov 0  }
   0x2   :  { %s3210_s20 = smov 0   ;;  %s3212_s21 = smov 0  }
   0x3   :  { %s3214_s22 = smov 0   ;;  %s3216_s23 = smov 0  }
   0x4   :  { %s3218_s24 = smov 0   ;;  %s3220_s25 = smov 0  }
   0x5 LB: > { %s2683_s26 = sadd.s32 4294967295, %s3169_s25   ;;  %s2684_s27 = sadd.s32 4294967294, %s3169_s25   ;;  %s3169_s25 = sphi %s3220_s25, %s18_s25   ;;  %s3165_s24 = sphi %s3218_s24, %s4953_s24   ;;  %s3161_s23 = sphi %s3216_s23, %s4952_s23   ;;  %s3157_s22 = sphi %s3214_s22, %s4951_s22   ;;  %s3153_s21 = sphi %s3212_s21, %s4950_s21   ;;  %s3149_s20 = sphi %s3210_s20, %s4949_s20   ;;  %s3145_s19 = sphi %s3208_s19, %s4948_s19   ;;  %s3141_s18 = sphi %s3206_s18, %s4947_s18  }
   0x6   : > { %s27_s28 = sadd.s32 1, %s3161_s23  ;;  %s30_s29 = sadd.s32 1, %s3165_s24 }
   0x7   : > { %p28_p0 = scmp.ge.s32.totalorder %s27_s28, 2  ;;  %p175_p1 = scmp.ne.s32.totalorder %s3149_s20, %s3145_s19 }
   0x8   : > { %p176_p2 = scmp.eq.s32.totalorder %s2683_s26, 3  ;;  %p181_p5 = scmp.ne.s32.totalorder %s3145_s19, %s3141_s18 }
   0x9   : > { %s4955_s28 = smov (%p28_p0, %s27_s28), 0  ;;  %s4957_s29 = smov (!%p28_p0, %s30_s29), %s3165_s24 }
   0xa   : > { %s161_s30 = ssub.s32 %s3161_s23, %s4955_s28  ;;  %p3257_p3 = por %p176_p2, %p175_p1 }
   0xb   : > { %p32_p4 = scmp.ge.s32.totalorder %s4957_s29, 2  ;;  %p182_p6 = scmp.eq.s32.totalorder %s2684_s27, 3 }
   0xc   : > { %p2687_p7 = scmp.ge.s32.totalorder %s3169_s25, 1  ;;  %p248_p9 = scmp.lt.s32.totalorder %s3169_s25, 5 }
   0xd   : > { %s4959_s29 = smov (%p32_p4, %s4957_s29), 0  ;;  %p3266_p8 = por %p182_p6, %p181_p5 }
   0xe   : > { %s160_s8 = ssub.s32 %s3165_s24, %s4959_s29  ;;  %s165_s9 = sadd.s32 1, %s3149_s20 }
   0xf   : > { %s162_s10 = sor.u32 %s161_s30, %s160_s8  ;;  %p249_p10 = pnand %p2687_p7, %p248_p9 }
  0x10   : > { %p163_p11 = scmp.eq.s32.totalorder %s162_s10, 0 }
  0x11   : > { %252 = sbr.rel (%p249_p10) target bundleno = 790 (0x316), region = 40 }
  0x12   : > { %s3275_s11 = scalar_select %p163_p11, %s3149_s20, %s165_s9  }
  0x16   : > { %vm757_vm0 = vcmask 1043456   ;;  %v2730_v0 = vld [vmem:[%s4756_s3 + $0x8] sm:$0xf]  ;;  %s2689_s14 = sshll.u32 %s3153_s21, 3  ;;  %p302_p12 = scmp.lt.s32.totalorder %s3157_s22, 1  ;;  %vm431_vm1 = vcmask 1046528  }
  0x17   : > { %2731 = vmatpush.msk.msra.mxu2 %vm757_vm0, %v2730_v0  ;;  %p304_p13 = scmp.lt.s32.totalorder %s2689_s14, 15  ;;  %v2802_v1 = vld [vmem:[%s4756_s3 + $0x18] sm:$0xf]  ;;  %v2748_v2 = vld [vmem:[%s4756_s3 + $0xc] sm:$0xf]  ;;  %vm724_vm2 = vcmask 31744  }
  0x18   : > { %s303_s27 = scalar_select %p302_p12, %s3157_s22, 1  ;;  %2749 = vmatpush.msk.msra.mxu3 %vm757_vm0, %v2748_v2  ;;  %v2820_v3 = vld [vmem:[%s4756_s3 + $0x1c] sm:$0xf]  ;;  %v2695_v4 = vld [vmem:[%s4756_s3 + $0x4] sm:$0xf]  ;;  %vm472_vm3 = vcmask 1045504  }
  0x19   : > { %2803 = vmatpush.msk.msrb.mxu2 %vm757_vm0, %v2802_v1  ;;  %s4961_s14 = smov (!%p304_p13, %s2689_s14), 15  ;;  %2696 = vmatpush.msk.msra.mxu0 %vm757_vm0, %v2695_v4  ;;  %v721_v5 = vld [vmem:[%s4756_s3] sm:$0xf]  ;;  %v2767_v6 = vld [vmem:[%s4756_s3 + $0x14] sm:$0xf]  ;;  %vm2450_vm4 = vcmask 261120  }
  0x1a   : > { %2821 = vmatpush.msk.msrb.mxu3 %vm757_vm0, %v2820_v3  ;;  %s2991_s17 = smul.u32 48, %s303_s27  ;;  %2713 = vmatpush.msk.msra.mxu1 %vm757_vm0, %v721_v5  ;;  %v2766_v7 = vld [vmem:[%s4756_s3 + $0x10] sm:$0xf]  ;;  %vm2467_vm5 = vcmask 523264   ;;  %s3173_s16 = smov 96   ;;  %vm2484_vm6 = vcmask 785408  }
  0x1b   : > { %2768 = vmatpush.msk.msrb.mxu0 %vm757_vm0, %v2767_v6  ;;  %s2990_s8 = smul.u32 3, %s4961_s14  ;;  %s298_s14 = sand.u32 1, %s3145_s19  }
  0x1c   : > { %2785 = vmatpush.msk.msrb.mxu1 %vm757_vm0, %v2766_v7  ;;  %s2989_s12 = sshll.u32 %s3153_s21, 4  ;;  %s2985_s13 = sshll.u32 %s3157_s22, 5 }
  0x1d   : > { %s308_s9 = sadd.s32 %s2991_s17, %s2990_s8  ;;  %s2688_s8 = sshll.u32 %s298_s14, 7 }
  0x1e   : > { %s3312_s10 = sshll.u32 %s308_s9, 3  ;;  %s4620_s9 = scalar_lea.vmem [#allocation2], %s2688_s8 }
  0x1f   : > { %s3318_s27 = scalar_lea.vmem %s4753_s0, %s3312_s10  ;;  %s3324_s26 = scalar_lea.vmem %s4754_s1, %s3312_s10 }
  0x20   : > { %v3327_v8 = vld [vmem:[%s3318_s27] sm:$0xff]  ;;  %v3330_v9 = vld [vmem:[%s3318_s27 + $0x8] sm:$0xff]  ;;  %v3347_v16 = vld [vmem:[%s3318_s27 + $0x10] sm:$0x3]  ;;  %s2550_s15 = sadd.s32 %s2989_s12, %s2985_s13  ;;  %s2553_s17 = sshll.u32 %s4620_s9, 4  ;;  %s2554_s17 = int_to_ptr.vmem [resolvable:$true] %s2553_s17 }
  0x21   : > { %v3333_v10 = vld [vmem:[%s3324_s26] sm:$0xff]  ;;  %v432_v11 = vrot.slane %v3327_v8, 1  ;;  %v433_v12 = vrot.slane %v3330_v9, 1  ;;  %2750 = vmatmul.msk.f32.vlgmr.msra.gmra.mxu3 %vm724_vm2, %v3327_v8  ;;  %v3343_v14 = vld [vmem:[%s3324_s26 + $0x8] sm:$0xff]  ;;  %v3353_v18 = vld [vmem:[%s3324_s26 + $0x10] sm:$0x3] }
  0x22   : > { %4824 = vst [vmem:[#allocation5_spill] sm:$0xff] %v3333_v10  ;;  %v537_v13 = vrot.slane %v3333_v10, 1  ;;  %2697 = vmatmul.msk.f32.vlgmr.msra.gmra.mxu0 %vm724_vm2, %v3333_v10  ;;  %v538_v15 = vrot.slane %v3343_v14, 1  ;;  %v435_v20 = vrot.slane %v3347_v16, 1  ;;  %v540_v21 = vrot.slane %v3353_v18, 1  ;;  %v3375_v24 = vld [vmem:[%s3318_s27 + $0x18] sm:$0xff] }
  0x23   : > { %4825 = vst [vmem:[#allocation6_spill] sm:$0xff] %v3343_v14  ;;  %v3350_v17 = vsel %vm431_vm1, %v432_v11, %v433_v12  ;;  %v3378_v25 = vld [vmem:[%s3318_s27 + $0x20] sm:$0xff]  ;;  %v3381_v26 = vld [vmem:[%s3324_s26 + $0x18] sm:$0xff]  ;;  %v437_v28 = vrot.slane %v3375_v24, 1  ;;  %v3405_v34 = vld [vmem:[%s3318_s27 + $0x28] sm:$0x3] }
  0x24   : > { %2732 = vmatmul.msk.f32.vlgmr.msra.gmra.mxu2 %vm724_vm2, %v3350_v17  ;;  %v3358_v19 = vsel %vm431_vm1, %v537_v13, %v538_v15  ;;  %v3365_v22 = vsel %vm431_vm1, %v433_v12, %v435_v20  ;;  %v3372_v23 = vsel %vm431_vm1, %v538_v15, %v540_v21  ;;  %v3384_v27 = vld [vmem:[%s3324_s26 + $0x20] sm:$0xff]  ;;  %v438_v29 = vrot.slane %v3378_v25, 1  ;;  %v3408_v35 = vld [vmem:[%s3324_s26 + $0x28] sm:$0x3]  ;;  %v3427_v40 = vld [vmem:[%s3318_s27 + $0x30] sm:$0xff]  ;;  %s2538_s22 = scalar_lea.sflag [#allocation3], %s298_s14 }
  0x25   : > { %4826 = vst [vmem:[#allocation7_spill] sm:$0xff] %v3358_v19  ;;  %2714 = vmatmul.msk.f32.vlgmr.msra.gmra.mxu1 %vm724_vm2, %v3358_v19  ;;  %v542_v30 = vrot.slane %v3381_v26, 1  ;;  %v543_v31 = vrot.slane %v3384_v27, 1  ;;  %v440_v36 = vrot.slane %v3405_v34, 1  ;;  %v545_v37 = vrot.slane %v3408_v35, 1  ;;  %v3430_v41 = vld [vmem:[%s3318_s27 + $0x38] sm:$0xff] }
  0x26   : > { %v3395_v32 = vsel %vm431_vm1, %v437_v28, %v438_v29  ;;  %v3433_v42 = vld [vmem:[%s3324_s26 + $0x30] sm:$0xff]  ;;  %v3436_v43 = vld [vmem:[%s3324_s26 + $0x38] sm:$0xff]  ;;  %v442_v44 = vrot.slane %v3427_v40, 1  ;;  %v443_v45 = vrot.slane %v3430_v41, 1  ;;  %v3457_v50 = vld [vmem:[%s3318_s27 + $0x40] sm:$0x3] }
  0x27   : > { %v3402_v33 = vsel %vm431_vm1, %v542_v30, %v543_v31  ;;  %v3417_v38 = vsel %vm431_vm1, %v438_v29, %v440_v36  ;;  %v3424_v39 = vsel %vm431_vm1, %v543_v31, %v545_v37  ;;  %v547_v46 = vrot.slane %v3433_v42, 1  ;;  %v3460_v51 = vld [vmem:[%s3324_s26 + $0x40] sm:$0x3]  ;;  %v3479_v56 = vld [vmem:[%s3318_s27 + $0x48] sm:$0xff]  ;;  %v3482_v57 = vld [vmem:[%s3318_s27 + $0x50] sm:$0xff] }
  0x28   : > { %v548_v47 = vrot.slane %v3436_v43, 1  ;;  %v3447_v48 = vsel %vm431_vm1, %v442_v44, %v443_v45  ;;  %v445_v52 = vrot.slane %v3457_v50, 1  ;;  %v550_v53 = vrot.slane %v3460_v51, 1  ;;  %v3485_v58 = vld [vmem:[%s3324_s26 + $0x48] sm:$0xff]  ;;  %v3488_v59 = vld [vmem:[%s3324_s26 + $0x50] sm:$0xff]  ;;  %v3531_v11 = vld [vmem:[%s3318_s27 + $0x60] sm:$0xff] }
  0x29   : > { %2751 = vmatmul.msk.f32.gmra.mxu3 %vm724_vm2, %v3330_v9  ;;  %v447_v60 = vrot.slane %v3479_v56, 1  ;;  %v448_v61 = vrot.slane %v3482_v57, 1  ;;  %v552_v62 = vrot.slane %v3485_v58, 1  ;;  %v553_v63 = vrot.slane %v3488_v59, 1  ;;  %v3509_v2 = vld [vmem:[%s3318_s27 + $0x58] sm:$0x3] }
  0x2a   : > { %2698 = vmatmul.msk.f32.gmra.mxu0 %vm724_vm2, %v3343_v14  ;;  %v3454_v49 = vsel %vm431_vm1, %v547_v46, %v548_v47  ;;  %v3469_v54 = vsel %vm431_vm1, %v443_v45, %v445_v52  ;;  %v3476_v55 = vsel %vm431_vm1, %v548_v47, %v550_v53  ;;  %v3512_v3 = vld [vmem:[%s3324_s26 + $0x58] sm:$0x3]  ;;  %v450_v4 = vrot.slane %v3509_v2, 1  ;;  %v3534_v12 = vld [vmem:[%s3318_s27 + $0x68] sm:$0xff]  ;;  %v3537_v13 = vld [vmem:[%s3324_s26 + $0x60] sm:$0xff] }
  0x2b   : > { %v3499_v0 = vsel %vm431_vm1, %v447_v60, %v448_v61  ;;  %v3506_v1 = vsel %vm431_vm1, %v552_v62, %v553_v63  ;;  %v555_v5 = vrot.slane %v3512_v3, 1  ;;  %v3540_v15 = vld [vmem:[%s3324_s26 + $0x68] sm:$0xff]  ;;  %v452_v20 = vrot.slane %v3531_v11, 1  ;;  %v3561_v36 = vld [vmem:[%s3318_s27 + $0x70] sm:$0x3]  ;;  %v3583_v52 = vld [vmem:[%s3318_s27 + $0x78] sm:$0xff] }
  0x2c   : > { %2733 = vmatmul.msk.f32.gmra.mxu2 %vm724_vm2, %v3365_v22  ;;  %v3521_v6 = vsel %vm431_vm1, %v448_v61, %v450_v4  ;;  %v453_v21 = vrot.slane %v3534_v12, 1  ;;  %v557_v28 = vrot.slane %v3537_v13, 1  ;;  %v558_v29 = vrot.slane %v3540_v15, 1  ;;  %v3564_v37 = vld [vmem:[%s3324_s26 + $0x70] sm:$0x3]  ;;  %4830 = vst [vmem:[#allocation11_spill] sm:$0xff] %v3583_v52 }
  0x2d   : > { %2715 = vmatmul.msk.f32.gmra.mxu1 %vm724_vm2, %v3372_v23  ;;  %v3528_v7 = vsel %vm431_vm1, %v553_v63, %v555_v5  ;;  %v455_v44 = vrot.slane %v3561_v36, 1  ;;  %v560_v45 = vrot.slane %v3564_v37, 1  ;;  %v3586_v53 = vld [vmem:[%s3318_s27 + $0x80] sm:$0xff]  ;;  %v3589_v60 = vld [vmem:[%s3324_s26 + $0x78] sm:$0xff]  ;;  %v457_v62 = vrot.slane %v3583_v52, 1 }
  0x2e   : > { %4827 = vst [vmem:[#allocation8_spill] sm:$0xff] %v3528_v7  ;;  %v3551_v30 = vsel %vm431_vm1, %v452_v20, %v453_v21  ;;  %v3558_v31 = vsel %vm431_vm1, %v557_v28, %v558_v29  ;;  %v3592_v61 = vld [vmem:[%s3324_s26 + $0x80] sm:$0xff]  ;;  %v458_v63 = vrot.slane %v3586_v53, 1  ;;  %v562_v4 = vrot.slane %v3589_v60, 1  ;;  %v3613_v28 = vld [vmem:[%s3318_s27 + $0x88] sm:$0x3] }
  0x2f   : > { %4828 = vst [vmem:[#allocation9_spill] sm:$0xff] %v3558_v31  ;;  %v3573_v46 = vsel %vm431_vm1, %v453_v21, %v455_v44  ;;  %v3580_v47 = vsel %vm431_vm1, %v558_v29, %v560_v45  ;;  %v563_v5 = vrot.slane %v3592_v61, 1  ;;  %v3616_v29 = vld [vmem:[%s3324_s26 + $0x88] sm:$0x3]  ;;  %v460_v44 = vrot.slane %v3613_v28, 1 }
  0x30   : > { %4829 = vst [vmem:[#allocation10_spill] sm:$0xff] %v3580_v47  ;;  %v3603_v20 = vsel %vm431_vm1, %v457_v62, %v458_v63  ;;  %v565_v45 = vrot.slane %v3616_v29, 1 }
  0x31   : > { %2752 = vmatmul.msk.f32.gmra.mxu3 %vm724_vm2, %v3375_v24  ;;  %4831 = vst [vmem:[#allocation12_spill] sm:$0xff] %v3586_v53  ;;  %v3610_v21 = vsel %vm431_vm1, %v562_v4, %v563_v5  ;;  %v3625_v62 = vsel %vm431_vm1, %v458_v63, %v460_v44 }
  0x32   : > { %2699 = vmatmul.msk.f32.gmra.mxu0 %vm724_vm2, %v3381_v26  ;;  %4832 = vst [vmem:[#allocation13_spill] sm:$0xff] %v3589_v60  ;;  %v3632_v4 = vsel %vm431_vm1, %v563_v5, %v565_v45 }
  0x33   : > { %4833 = vst [vmem:[#allocation14_spill] sm:$0xff] %v3592_v61 }
  0x34   : > { %2734 = vmatmul.msk.f32.gmra.mxu2 %vm724_vm2, %v3395_v32  ;;  %4834 = vst [vmem:[#allocation15_spill] sm:$0xff] %v3603_v20 }
  0x35   : > { %2716 = vmatmul.msk.f32.gmra.mxu1 %vm724_vm2, %v3402_v33  ;;  %4835 = vst [vmem:[#allocation16_spill] sm:$0xff] %v3610_v21 }
  0x36   : > { %4836 = vst [vmem:[#allocation17_spill] sm:$0xff] %v3613_v28  ;;  %v3641_v28 = vld [vmem:[%s3324_s26 + $0x90] sm:$0xff] }
  0x37   : > { %4837 = vst [vmem:[#allocation18_spill] sm:$0xff] %v3616_v29  ;;  %v3644_v29 = vld [vmem:[%s3324_s26 + $0x98] sm:$0xff]  ;;  %v567_v44 = vrot.slane %v3641_v28, 1 }
  0x38   : > { %4838 = vst [vmem:[#allocation19_spill] sm:$0xff] %v3625_v62  ;;  %v568_v45 = vrot.slane %v3644_v29, 1 }
  0x39   : > { %2753 = vmatmul.msk.f32.gmra.mxu3 %vm724_vm2, %v3378_v25  ;;  %4839 = vst [vmem:[#allocation20_spill] sm:$0xff] %v3632_v4 }
  0x3a   : > { %2700 = vmatmul.msk.f32.gmra.mxu0 %vm724_vm2, %v3384_v27  ;;  %4841 = vst [vmem:[#allocation22_spill] sm:$0xff] %v3641_v28 }
  0x3b   : > { %4842 = vst [vmem:[#allocation23_spill] sm:$0xff] %v3644_v29 }
  0x3c   : > { %2735 = vmatmul.msk.f32.gmra.mxu2 %vm724_vm2, %v3417_v38 }
  0x3d   : > { %2717 = vmatmul.msk.f32.gmra.mxu1 %vm724_vm2, %v3424_v39 }
  0x41   : > { %2754 = vmatmul.msk.f32.gmra.mxu3 %vm724_vm2, %v3427_v40 }
  0x42   : > { %2701 = vmatmul.msk.f32.gmra.mxu0 %vm724_vm2, %v3433_v42 }
  0x44   : > { %2736 = vmatmul.msk.f32.gmra.mxu2 %vm724_vm2, %v3447_v48 }
  0x45   : > { %2718 = vmatmul.msk.f32.gmra.mxu1 %vm724_vm2, %v3454_v49 }
  0x49   : > { %2755 = vmatmul.msk.f32.gmra.mxu3 %vm724_vm2, %v3430_v41 }
  0x4a   : > { %2702 = vmatmul.msk.f32.gmra.mxu0 %vm724_vm2, %v3436_v43 }
  0x4c   : > { %2737 = vmatmul.msk.f32.gmra.mxu2 %vm724_vm2, %v3469_v54 }
  0x4d   : > { %2719 = vmatmul.msk.f32.gmra.mxu1 %vm724_vm2, %v3476_v55 }
  0x51   : > { %2756 = vmatmul.msk.f32.gmra.mxu3 %vm724_vm2, %v3479_v56 }
  0x52   : > { %2703 = vmatmul.msk.f32.gmra.mxu0 %vm724_vm2, %v3485_v58 }
  0x54   : > { %2738 = vmatmul.msk.f32.gmra.mxu2 %vm724_vm2, %v3499_v0 }
  0x55   : > { %2720 = vmatmul.msk.f32.gmra.mxu1 %vm724_vm2, %v3506_v1 }
  0x59   : > { %2757 = vmatmul.msk.f32.gmra.mxu3 %vm724_vm2, %v3482_v57 }
  0x5a   : > { %2704 = vmatmul.msk.f32.gmra.mxu0 %vm724_vm2, %v3488_v59 }
  0x5c   : > { %2739 = vmatmul.msk.f32.gmra.mxu2 %vm724_vm2, %v3521_v6 }
  0x5d   : > { %2721 = vmatmul.msk.f32.gmra.mxu1 %vm724_vm2, %v3528_v7 }
  0x61   : > { %2758 = vmatmul.msk.f32.gmra.mxu3 %vm724_vm2, %v3531_v11 }
  0x62   : > { %2705 = vmatmul.msk.f32.gmra.mxu0 %vm724_vm2, %v3537_v13 }
  0x64   : > { %2740 = vmatmul.msk.f32.gmra.mxu2 %vm724_vm2, %v3551_v30 }
  0x65   : > { %2722 = vmatmul.msk.f32.gmra.mxu1 %vm724_vm2, %v3558_v31 }
  0x69   : > { %2759 = vmatmul.msk.f32.gmra.mxu3 %vm724_vm2, %v3534_v12 }
  0x6a   : > { %2706 = vmatmul.msk.f32.gmra.mxu0 %vm724_vm2, %v3540_v15 }
  0x6c   : > { %2741 = vmatmul.msk.f32.gmra.mxu2 %vm724_vm2, %v3573_v46 }
  0x6d   : > { %2723 = vmatmul.msk.f32.gmra.mxu1 %vm724_vm2, %v3580_v47 }
  0x71   : > { %2760 = vmatmul.msk.f32.gmra.mxu3 %vm724_vm2, %v3583_v52 }
  0x72   : > { %2707 = vmatmul.msk.f32.gmra.mxu0 %vm724_vm2, %v3589_v60  ;;  %v3668_v60 = vld [vmem:[%s3324_s26 + $0xa0] sm:$0x3] }
  0x73   : > { %4846 = vst [vmem:[#allocation27_spill] sm:$0xff] %v3668_v60 }
  0x74   : > { %2742 = vmatmul.msk.f32.gmra.mxu2 %vm724_vm2, %v3603_v20  ;;  %v3635_v20 = vld [vmem:[%s3318_s27 + $0x90] sm:$0xff] }
  0x75   : > { %2724 = vmatmul.msk.f32.gmra.mxu1 %vm724_vm2, %v3610_v21  ;;  %4840 = vst [vmem:[#allocation21_spill] sm:$0xff] %v3635_v20  ;;  %v3638_v21 = vld [vmem:[%s3318_s27 + $0x98] sm:$0xff]  ;;  %v462_v63 = vrot.slane %v3635_v20, 1 }
  0x76   : > { %v463_v5 = vrot.slane %v3638_v21, 1 }
  0x79   : > { %2761 = vmatmul.msk.f32.gmra.mxu3 %vm724_vm2, %v3586_v53  ;;  %v2838_v53 = vld [vmem:[%s4756_s3 + $0x20] sm:$0xf] }
  0x7a   : > { %2708 = vmatmul.msk.f32.gmra.mxu0 %vm724_vm2, %v3592_v61  ;;  %v3655_v61 = vsel %vm431_vm1, %v462_v63, %v463_v5  ;;  %v2874_v63 = vld [vmem:[%s4756_s3 + $0x28] sm:$0xf]  ;;  %2857 = vmatpush.msk.msra.mxu1 %vm757_vm0, %v2838_v53 }
  0x7b   : > { %4843 = vst [vmem:[#allocation24_spill] sm:$0xff] %v3655_v61  ;;  %2875 = vmatpush.msk.msra.mxu2 %vm757_vm0, %v2874_v63 }
  0x7c   : > { %2743 = vmatmul.msk.f32.gmra.mxu2 %vm724_vm2, %v3625_v62  ;;  %v3662_v62 = vsel %vm431_vm1, %v567_v44, %v568_v45 }
  0x7d   : > { %2725 = vmatmul.msk.f32.gmra.mxu1 %vm724_vm2, %v3632_v4  ;;  %4844 = vst [vmem:[#allocation25_spill] sm:$0xff] %v3662_v62  ;;  %v3665_v4 = vld [vmem:[%s3318_s27 + $0xa0] sm:$0x3] }
  0x7e   : > { %4845 = vst [vmem:[#allocation26_spill] sm:$0xff] %v3665_v4  ;;  %v465_v44 = vrot.slane %v3665_v4, 1 }
  0x80   : > { %v3691_v52 = vsel %vm431_vm1, %v463_v5, %v465_v44  ;;  %v3709_v5 = vld [vmem:[%s3324_s26 + $0xa8] sm:$0xff]  ;;  %v3712_v44 = vld [vmem:[%s3324_s26 + $0xb0] sm:$0xff] }
  0x81   : > { %2762 = vmatmul.msk.f32.gmra.mxu3 %vm724_vm2, %v3635_v20  ;;  %v570_v20 = vrot.slane %v3668_v60, 1  ;;  %4847 = vst [vmem:[#allocation28_spill] sm:$0xff] %v3691_v52  ;;  %v3704_v60 = vld [vmem:[%s3318_s27 + $0xb0] sm:$0xff]  ;;  %v572_v4 = vrot.slane %v3709_v5, 1 }
  0x82   : > { %2709 = vmatmul.msk.f32.gmra.mxu0 %vm724_vm2, %v3641_v28  ;;  %v2892_v28 = vld [vmem:[%s4756_s3 + $0x2c] sm:$0xf] }
  0x83   : > { %2893 = vmatpush.msk.msra.mxu3 %vm757_vm0, %v2892_v28  ;;  %v3698_v63 = vsel %vm431_vm1, %v568_v45, %v570_v20  ;;  %v3701_v28 = vld [vmem:[%s3318_s27 + $0xa8] sm:$0xff]  ;;  %v468_v45 = vrot.slane %v3704_v60, 1 }
  0x84   : > { %2744 = vmatmul.msk.f32.gmra.mxu2 %vm724_vm2, %v3655_v61  ;;  %v2839_v61 = vld [vmem:[%s4756_s3 + $0x24] sm:$0xf]  ;;  %4848 = vst [vmem:[#allocation29_spill] sm:$0xff] %v3698_v63  ;;  %v467_v20 = vrot.slane %v3701_v28, 1 }
  0x85   : > { %2726 = vmatmul.msk.f32.gmra.mxu1 %vm724_vm2, %v3662_v62  ;;  %4849 = vst [vmem:[#allocation30_spill] sm:$0xff] %v3701_v28  ;;  %2840 = vmatpush.msk.msra.mxu0 %vm757_vm0, %v2839_v61  ;;  %v573_v61 = vrot.slane %v3712_v44, 1  ;;  %v3736_v62 = vld [vmem:[%s3324_s26 + $0xb8] sm:$0x3] }
  0x86   : > { %v3723_v53 = vsel %vm431_vm1, %v467_v20, %v468_v45  ;;  %4853 = vst [vmem:[#allocation34_spill] sm:$0xff] %v3736_v62 }
  0x87   : > { %4850 = vst [vmem:[#allocation31_spill] sm:$0xff] %v3723_v53 }
  0x89   : > { %2763 = vmatmul.msk.f32.gmra.mxu3 %vm724_vm2, %v3638_v21 }
  0x8a   : > { %2710 = vmatmul.msk.f32.gmra.mxu0 %vm724_vm2, %v3644_v29 }
  0x8c   : > { %2745 = vmatmul.msk.f32.gmra.mxu2 %vm724_vm2, %v3691_v52  ;;  %v3730_v52 = vsel %vm431_vm1, %v572_v4, %v573_v61 }
  0x8d   : > { %2727 = vmatmul.msk.f32.gmra.mxu1 %vm724_vm2, %v3698_v63  ;;  %4851 = vst [vmem:[#allocation32_spill] sm:$0xff] %v3730_v52  ;;  %v3733_v63 = vld [vmem:[%s3318_s27 + $0xb8] sm:$0x3]  ;;  %s4019_s27 = scalar_lea.vmem %s4755_s2, %s3312_s10  ;;  %s3171_s10 = smov 32  }
  0x8e   : > { %4852 = vst [vmem:[#allocation33_spill] sm:$0xff] %v3733_v63  ;;  %v470_v20 = vrot.slane %v3733_v63, 1 }
  0x90   : > { %v3745_v29 = vsel %vm431_vm1, %v468_v45, %v470_v20  ;;  %v474_v45 = vrot.slane %v3330_v9, 2  ;;  %v577_v20 = vrot.slane %v3333_v10, 2  ;;  %v580_v10 = vrot.slane %v3353_v18, 2 }
  0x91   : > { %2764 = vmatmul.msk.f32.gmra.mxu3 %vm724_vm2, %v3701_v28  ;;  %v575_v28 = vrot.slane %v3736_v62, 1  ;;  %v473_v62 = vrot.slane %v3327_v8, 2 }
  0x92   : > { %2711 = vmatmul.msk.f32.gmra.mxu0 %vm724_vm2, %v3709_v5 }
  0x93   : > { %v3752_v4 = vsel %vm431_vm1, %v573_v61, %v575_v28 }
  0x94   : > { %2746 = vmatmul.msk.f32.gmra.mxu2 %vm724_vm2, %v3723_v53  ;;  %4854 = vst [vmem:[#allocation35_spill] sm:$0xff] %v3752_v4  ;;  %v475_v53 = vsel %vm472_vm3, %v473_v62, %v474_v45 }
  0x95   : > { %2728 = vmatmul.msk.f32.gmra.mxu1 %vm724_vm2, %v3730_v52  ;;  %v578_v52 = vrot.slane %v3343_v14, 2  ;;  %v476_v14 = vrot.slane %v3347_v16, 2 }
  0x97   : > { %v3768_v61 = vsel %vm472_vm3, %v577_v20, %v578_v52  ;;  %v3783_v20 = vsel %vm472_vm3, %v578_v52, %v580_v10 }
  0x99   : > { %2765 = vmatmul.msk.f32.gmra.mxu3 %vm724_vm2, %v3704_v60 }
  0x9a   : > { %2712 = vmatmul.msk.f32.gmra.mxu0 %vm724_vm2, %v3712_v44 }
  0x9c   : > { %2747 = vmatmul.msk.f32.gmra.mxu2 %vm724_vm2, %v3745_v29 }
  0x9d   : > { %2729 = vmatmul.msk.f32.gmra.mxu1 %vm724_vm2, %v3752_v4 }
  0x9f   : > { %v778_v63 = vpop.f32.mrf.mxu0 }
  0xa1   : > { %2822 = vmatmul.msk.f32.vlgmr.msrb.gmra.mxu3 %vm724_vm2, %v3350_v17 }
  0xa2   : > { %2769 = vmatmul.msk.f32.vlgmr.msrb.gmra.mxu0 %vm724_vm2, %v3358_v19  ;;  %v878_v28 = vpop.f32.mrf.mxu1  ;;  %v477_v19 = vsel %vm472_vm3, %v474_v45, %v476_v14  ;;  %v478_v14 = vrot.slane %v3375_v24, 2 }
  0xa3   : > { %v879_v8 = vadd.f32 %v878_v28, %v778_v63  ;;  %v582_v28 = vrot.slane %v3381_v26, 2 }
  0xa4   : > { %2804 = vmatmul.msk.f32.vlgmr.msrb.gmra.mxu2 %vm724_vm2, %v475_v53  ;;  %v1098_v9 = vpop.f32.mrf.mxu3 }
  0xa5   : > { %2786 = vmatmul.msk.f32.vlgmr.msrb.gmra.mxu1 %vm724_vm2, %v3768_v61 }
  0xa7   : > { %v781_v62 = vpop.f32.mrf.mxu0  ;;  %v980_v17 = vpop.f32.mrf.mxu2 }
  0xa8   : > { %v1028_v4 = vadd.f32 %v980_v17, %v879_v8  ;;  %v481_v17 = vrot.slane %v3405_v34, 2 }
  0xa9   : > { %2823 = vmatmul.msk.f32.gmra.mxu3 %vm724_vm2, %v3365_v22  ;;  %v479_v22 = vrot.slane %v3378_v25, 2 }
  0xaa   : > { %2770 = vmatmul.msk.f32.gmra.mxu0 %vm724_vm2, %v3372_v23  ;;  %v3780_v63 = vadd.f32 %v1098_v9, %v1028_v4  ;;  %v881_v53 = vpop.f32.mrf.mxu1  ;;  %v583_v4 = vrot.slane %v3384_v27, 2 }
  0xab   : > { %v882_v16 = vadd.f32 %v881_v53, %v781_v62  ;;  %v480_v10 = vsel %vm472_vm3, %v478_v14, %v479_v22 }
  0xac   : > { %4855 = vst [vmem:[#allocation36_spill] sm:$0xff] %v3780_v63  ;;  %2805 = vmatmul.msk.f32.gmra.mxu2 %vm724_vm2, %v477_v19  ;;  %v1101_v18 = vpop.f32.mrf.mxu3  ;;  %v3800_v25 = vsel %vm472_vm3, %v582_v28, %v583_v4 }
  0xad   : > { %2787 = vmatmul.msk.f32.gmra.mxu1 %vm724_vm2, %v3783_v20 }
  0xaf   : > { %v784_v45 = vpop.f32.mrf.mxu0  ;;  %v983_v8 = vpop.f32.mrf.mxu2 }
  0xb0   : > { %v1029_v9 = vadd.f32 %v983_v8, %v882_v16 }
  0xb1   : > { %2824 = vmatmul.msk.f32.gmra.mxu3 %vm724_vm2, %v3395_v32  ;;  %v585_v32 = vrot.slane %v3408_v35, 2 }
  0xb2   : > { %2771 = vmatmul.msk.f32.gmra.mxu0 %vm724_vm2, %v3402_v33  ;;  %v3797_v19 = vadd.f32 %v1101_v18, %v1029_v9  ;;  %v884_v24 = vpop.f32.mrf.mxu1  ;;  %v482_v18 = vsel %vm472_vm3, %v479_v22, %v481_v17  ;;  %v483_v22 = vrot.slane %v3427_v40, 2 }
  0xb3   : > { %v885_v52 = vadd.f32 %v884_v24, %v784_v45  ;;  %v3815_v8 = vsel %vm472_vm3, %v583_v4, %v585_v32  ;;  %v588_v24 = vrot.slane %v3436_v43, 2 }
  0xb4   : > { %2806 = vmatmul.msk.f32.gmra.mxu2 %vm724_vm2, %v480_v10  ;;  %v1104_v62 = vpop.f32.mrf.mxu3  ;;  %v587_v10 = vrot.slane %v3433_v42, 2 }
  0xb5   : > { %2788 = vmatmul.msk.f32.gmra.mxu1 %vm724_vm2, %v3800_v25 }
  0xb7   : > { %v787_v53 = vpop.f32.mrf.mxu0  ;;  %v986_v16 = vpop.f32.mrf.mxu2 }
  0xb8   : > { %v1030_v14 = vadd.f32 %v986_v16, %v885_v52  ;;  %v486_v16 = vrot.slane %v3457_v50, 2 }
  0xb9   : > { %2825 = vmatmul.msk.f32.gmra.mxu3 %vm724_vm2, %v3417_v38  ;;  %v484_v38 = vrot.slane %v3430_v41, 2  ;;  %v3832_v41 = vsel %vm472_vm3, %v587_v10, %v588_v24 }
  0xba   : > { %2772 = vmatmul.msk.f32.gmra.mxu0 %vm724_vm2, %v3424_v39  ;;  %v3812_v45 = vadd.f32 %v1104_v62, %v1030_v14  ;;  %v887_v28 = vpop.f32.mrf.mxu1 }
  0xbb   : > { %v888_v34 = vadd.f32 %v887_v28, %v787_v53  ;;  %v485_v4 = vsel %vm472_vm3, %v483_v22, %v484_v38 }
  0xbc   : > { %2807 = vmatmul.msk.f32.gmra.mxu2 %vm724_vm2, %v482_v18  ;;  %v1107_v35 = vpop.f32.mrf.mxu3 }
  0xbd   : > { %2789 = vmatmul.msk.f32.gmra.mxu1 %vm724_vm2, %v3815_v8 }
  0xbf   : > { %v790_v9 = vpop.f32.mrf.mxu0  ;;  %v989_v52 = vpop.f32.mrf.mxu2 }
  0xc0   : > { %v1031_v62 = vadd.f32 %v989_v52, %v888_v34  ;;  %v487_v34 = vsel %vm472_vm3, %v484_v38, %v486_v16  ;;  %v488_v38 = vrot.slane %v3479_v56, 2  ;;  %v592_v52 = vrot.slane %v3485_v58, 2 }
  0xc1   : > { %2826 = vmatmul.msk.f32.gmra.mxu3 %vm724_vm2, %v3447_v48  ;;  %v590_v48 = vrot.slane %v3460_v51, 2 }
  0xc2   : > { %2773 = vmatmul.msk.f32.gmra.mxu0 %vm724_vm2, %v3454_v49  ;;  %v3829_v17 = vadd.f32 %v1107_v35, %v1031_v62  ;;  %v890_v40 = vpop.f32.mrf.mxu1  ;;  %v593_v62 = vrot.slane %v3488_v59, 2 }
  0xc3   : > { %v891_v53 = vadd.f32 %v890_v40, %v790_v9  ;;  %v3847_v9 = vsel %vm472_vm3, %v588_v24, %v590_v48 }
  0xc4   : > { %4856 = vst [vmem:[#allocation37_spill] sm:$0xff] %v3829_v17  ;;  %2808 = vmatmul.msk.f32.gmra.mxu2 %vm724_vm2, %v485_v4  ;;  %v1110_v32 = vpop.f32.mrf.mxu3 }
  0xc5   : > { %2790 = vmatmul.msk.f32.gmra.mxu1 %vm724_vm2, %v3832_v41 }
  0xc7   : > { %v793_v14 = vpop.f32.mrf.mxu0  ;;  %v992_v18 = vpop.f32.mrf.mxu2 }
  0xc8   : > { %v1032_v28 = vadd.f32 %v992_v18, %v891_v53 }
  0xc9   : > { %2827 = vmatmul.msk.f32.gmra.mxu3 %vm724_vm2, %v3469_v54  ;;  %v489_v54 = vrot.slane %v3482_v57, 2  ;;  %v3864_v57 = vsel %vm472_vm3, %v592_v52, %v593_v62  ;;  %v598_v52 = vrot.slane %v3540_v15, 2 }
  0xca   : > { %2774 = vmatmul.msk.f32.gmra.mxu0 %vm724_vm2, %v3476_v55  ;;  %v3844_v35 = vadd.f32 %v1110_v32, %v1032_v28  ;;  %v893_v22 = vpop.f32.mrf.mxu1 }
  0xcb   : > { %v894_v50 = vadd.f32 %v893_v22, %v793_v14  ;;  %v490_v24 = vsel %vm472_vm3, %v488_v38, %v489_v54  ;;  %v491_v14 = vrot.slane %v3509_v2, 2  ;;  %v493_v38 = vrot.slane %v3531_v11, 2 }
  0xcc   : > { %2809 = vmatmul.msk.f32.gmra.mxu2 %vm724_vm2, %v487_v34  ;;  %v1113_v51 = vpop.f32.mrf.mxu3 }
  0xcd   : > { %2791 = vmatmul.msk.f32.gmra.mxu1 %vm724_vm2, %v3847_v9  ;;  %v492_v34 = vsel %vm472_vm3, %v489_v54, %v491_v14  ;;  %v597_v54 = vrot.slane %v3537_v13, 2 }
  0xcf   : > { %v796_v10 = vpop.f32.mrf.mxu0  ;;  %v995_v4 = vpop.f32.mrf.mxu2 }
  0xd0   : > { %v1033_v40 = vadd.f32 %v995_v4, %v894_v50 }
  0xd1   : > { %2828 = vmatmul.msk.f32.gmra.mxu3 %vm724_vm2, %v3499_v0  ;;  %v595_v0 = vrot.slane %v3512_v3, 2 }
  0xd2   : > { %2775 = vmatmul.msk.f32.gmra.mxu0 %vm724_vm2, %v3506_v1  ;;  %v3861_v53 = vadd.f32 %v1113_v51, %v1033_v40  ;;  %v896_v56 = vpop.f32.mrf.mxu1 }
  0xd3   : > { %v897_v32 = vadd.f32 %v896_v56, %v796_v10  ;;  %v3879_v51 = vsel %vm472_vm3, %v593_v62, %v595_v0 }
  0xd4   : > { %2810 = vmatmul.msk.f32.gmra.mxu2 %vm724_vm2, %v490_v24  ;;  %v1116_v16 = vpop.f32.mrf.mxu3  ;;  %4857 = vst [vmem:[#allocation38_spill] sm:$0xff] %v3879_v51 }
  0xd5   : > { %2792 = vmatmul.msk.f32.gmra.mxu1 %vm724_vm2, %v3864_v57 }
  0xd7   : > { %v799_v48 = vpop.f32.mrf.mxu0  ;;  %v998_v18 = vpop.f32.mrf.mxu2 }
  0xd8   : > { %v1034_v28 = vadd.f32 %v998_v18, %v897_v32  ;;  %v496_v32 = vrot.slane %v3561_v36, 2 }
  0xd9   : > { %2829 = vmatmul.msk.f32.gmra.mxu3 %vm724_vm2, %v3521_v6  ;;  %v494_v6 = vrot.slane %v3534_v12, 2  ;;  %v3896_v12 = vsel %vm472_vm3, %v597_v54, %v598_v52 }
  0xda   : > { %2776 = vmatmul.msk.f32.gmra.mxu0 %vm724_vm2, %v3528_v7  ;;  %v3876_v22 = vadd.f32 %v1116_v16, %v1034_v28  ;;  %v899_v50 = vpop.f32.mrf.mxu1  ;;  %4858 = vst [vmem:[#allocation39_spill] sm:$0xff] %v3896_v12 }
  0xdb   : > { %v900_v2 = vadd.f32 %v899_v50, %v799_v48  ;;  %v495_v62 = vsel %vm472_vm3, %v493_v38, %v494_v6  ;;  %v497_v0 = vsel %vm472_vm3, %v494_v6, %v496_v32  ;;  %v4860_v50 = vld [vmem:[#allocation11_spill] sm:$0xff]  ;;  %v4862_v38 = vld [vmem:[#allocation13_spill] sm:$0xff] }
  0xdc   : > { %2811 = vmatmul.msk.f32.gmra.mxu2 %vm724_vm2, %v492_v34  ;;  %v1119_v3 = vpop.f32.mrf.mxu3  ;;  %v602_v6 = vrot.slane %v4862_v38, 2 }
  0xdd   : > { %2793 = vmatmul.msk.f32.gmra.mxu1 %vm724_vm2, %v3879_v51 }
  0xdf   : > { %v802_v10 = vpop.f32.mrf.mxu0  ;;  %v1001_v4 = vpop.f32.mrf.mxu2 }
  0xe0   : > { %v1035_v40 = vadd.f32 %v1001_v4, %v900_v2  ;;  %v498_v2 = vrot.slane %v4860_v50, 2 }
  0xe1   : > { %2830 = vmatmul.msk.f32.gmra.mxu3 %vm724_vm2, %v3551_v30  ;;  %v600_v30 = vrot.slane %v3564_v37, 2 }
  0xe2   : > { %2777 = vmatmul.msk.f32.gmra.mxu0 %vm724_vm2, %v3558_v31  ;;  %v3893_v24 = vadd.f32 %v1119_v3, %v1035_v40  ;;  %v902_v11 = vpop.f32.mrf.mxu1  ;;  %v4861_v3 = vld [vmem:[#allocation12_spill] sm:$0xff] }
  0xe3   : > { %v903_v56 = vadd.f32 %v902_v11, %v802_v10  ;;  %v3911_v34 = vsel %vm472_vm3, %v598_v52, %v600_v30  ;;  %v4863_v10 = vld [vmem:[#allocation14_spill] sm:$0xff]  ;;  %v4864_v11 = vld [vmem:[#allocation15_spill] sm:$0xff] }
  0xe4   : > { %2812 = vmatmul.msk.f32.gmra.mxu2 %vm724_vm2, %v495_v62  ;;  %v1122_v15 = vpop.f32.mrf.mxu3  ;;  %4859 = vst [vmem:[#allocation40_spill] sm:$0xff] %v3911_v34  ;;  %v603_v4 = vrot.slane %v4863_v10, 2  ;;  %v4870_v10 = vld [vmem:[#allocation19_spill] sm:$0xff] }
  0xe5   : > { %2794 = vmatmul.msk.f32.gmra.mxu1 %vm724_vm2, %v3896_v12 }
  0xe7   : > { %v805_v16 = vpop.f32.mrf.mxu0  ;;  %v1004_v14 = vpop.f32.mrf.mxu2 }
  0xe8   : > { %v1036_v48 = vadd.f32 %v1004_v14, %v903_v56  ;;  %v4865_v56 = vld [vmem:[#allocation16_spill] sm:$0xff] }
  0xe9   : > { %2831 = vmatmul.msk.f32.gmra.mxu3 %vm724_vm2, %v3573_v46  ;;  %v499_v46 = vrot.slane %v4861_v3, 2 }
  0xea   : > { %2778 = vmatmul.msk.f32.gmra.mxu0 %vm724_vm2, %v3580_v47  ;;  %v3908_v18 = vadd.f32 %v1122_v15, %v1036_v48  ;;  %v905_v28 = vpop.f32.mrf.mxu1  ;;  %v4868_v48 = vld [vmem:[#allocation17_spill] sm:$0xff] }
  0xeb   : > { %v906_v36 = vadd.f32 %v905_v28, %v805_v16  ;;  %v500_v52 = vsel %vm472_vm3, %v498_v2, %v499_v46  ;;  %v3928_v16 = vsel %vm472_vm3, %v602_v6, %v603_v4  ;;  %v4871_v6 = vld [vmem:[#allocation20_spill] sm:$0xff] }
  0xec   : > { %2813 = vmatmul.msk.f32.gmra.mxu2 %vm724_vm2, %v497_v0  ;;  %v1125_v37 = vpop.f32.mrf.mxu3  ;;  %4867 = vst [vmem:[#allocation12_spill] sm:$0xff] %v3928_v16  ;;  %v501_v0 = vrot.slane %v4868_v48, 2  ;;  %v4875_v48 = vld [vmem:[#allocation22_spill] sm:$0xff] }
  0xed   : > { %2795 = vmatmul.msk.f32.gmra.mxu1 %vm724_vm2, %v3911_v34 }
  0xef   : > { %v808_v54 = vpop.f32.mrf.mxu0  ;;  %v1007_v40 = vpop.f32.mrf.mxu2 }
  0xf0   : > { %v1037_v62 = vadd.f32 %v1007_v40, %v906_v36  ;;  %v4869_v36 = vld [vmem:[#allocation18_spill] sm:$0xff] }
  0xf1   : > { %2832 = vmatmul.msk.f32.gmra.mxu3 %vm724_vm2, %v4864_v11  ;;  %v605_v50 = vrot.slane %v4869_v36, 2 }
  0xf2   : > { %2779 = vmatmul.msk.f32.gmra.mxu0 %vm724_vm2, %v4865_v56  ;;  %v3925_v15 = vadd.f32 %v1125_v37, %v1037_v62  ;;  %v908_v32 = vpop.f32.mrf.mxu1  ;;  %v502_v37 = vsel %vm472_vm3, %v499_v46, %v501_v0  ;;  %v4874_v46 = vld [vmem:[#allocation21_spill] sm:$0xff]  ;;  %v607_v0 = vrot.slane %v4875_v48, 2 }
  0xf3   : > { %v909_v30 = vadd.f32 %v908_v32, %v808_v54  ;;  %v3943_v62 = vsel %vm472_vm3, %v603_v4, %v605_v50  ;;  %v503_v32 = vrot.slane %v4874_v46, 2  ;;  %v4877_v50 = vld [vmem:[#allocation24_spill] sm:$0xff] }
  0xf4   : > { %4866 = vst [vmem:[#allocation11_spill] sm:$0xff] %v3925_v15  ;;  %2814 = vmatmul.msk.f32.gmra.mxu2 %vm724_vm2, %v500_v52  ;;  %v1128_v14 = vpop.f32.mrf.mxu3 }
  0xf5   : > { %2796 = vmatmul.msk.f32.gmra.mxu1 %vm724_vm2, %v3928_v16  ;;  %4873 = vst [vmem:[#allocation14_spill] sm:$0xff] %v3943_v62 }
  0xf7   : > { %v811_v28 = vpop.f32.mrf.mxu0  ;;  %v1010_v2 = vpop.f32.mrf.mxu2 }
  0xf8   : > { %v1038_v3 = vadd.f32 %v1010_v2, %v909_v30  ;;  %v504_v30 = vrot.slane %v3638_v21, 2 }
  0xf9   : > { %2833 = vmatmul.msk.f32.gmra.mxu3 %vm724_vm2, %v4870_v10 }
  0xfa   : > { %2780 = vmatmul.msk.f32.gmra.mxu0 %vm724_vm2, %v4871_v6  ;;  %v3940_v54 = vadd.f32 %v1128_v14, %v1038_v3  ;;  %v911_v40 = vpop.f32.mrf.mxu1  ;;  %v4876_v14 = vld [vmem:[#allocation23_spill] sm:$0xff]  ;;  %v505_v4 = vsel %vm472_vm3, %v503_v32, %v504_v30  ;;  %v2964_v32 = vld [vmem:[%s4756_s3 + $0x3c] sm:$0xf] }
  0xfb   : > { %v912_v52 = vadd.f32 %v911_v40, %v811_v28  ;;  %v608_v2 = vrot.slane %v4876_v14, 2  ;;  %v4878_v28 = vld [vmem:[#allocation25_spill] sm:$0xff]  ;;  %2965 = vmatpush.msk.msrb.mxu3 %vm757_vm0, %v2964_v32 }
  0xfc   : > { %4872 = vst [vmem:[#allocation13_spill] sm:$0xff] %v3940_v54  ;;  %2815 = vmatmul.msk.f32.gmra.mxu2 %vm724_vm2, %v502_v37  ;;  %v1131_v11 = vpop.f32.mrf.mxu3 }
  0xfd   : > { %2797 = vmatmul.msk.f32.gmra.mxu1 %vm724_vm2, %v3943_v62  ;;  %v3960_v21 = vsel %vm472_vm3, %v607_v0, %v608_v2 }
  0xfe   : > { %4880 = vst [vmem:[#allocation17_spill] sm:$0xff] %v3960_v21 }
  0xff   : > { %v814_v36 = vpop.f32.mrf.mxu0  ;;  %v1013_v3 = vpop.f32.mrf.mxu2 }
 0x100   : > { %v1039_v10 = vadd.f32 %v1013_v3, %v912_v52  ;;  %v2946_v52 = vld [vmem:[%s4756_s3 + $0x38] sm:$0xf]  ;;  %v4882_v3 = vld [vmem:[#allocation27_spill] sm:$0xff] }
 0x101   : > { %2834 = vmatmul.msk.f32.gmra.mxu3 %vm724_vm2, %v4877_v50  ;;  %2947 = vmatpush.msk.msrb.mxu2 %vm757_vm0, %v2946_v52  ;;  %v2911_v50 = vld [vmem:[%s4756_s3 + $0x34] sm:$0xf]  ;;  %v4884_v52 = vld [vmem:[#allocation29_spill] sm:$0xff] }
 0x102   : > { %2781 = vmatmul.msk.f32.gmra.mxu0 %vm724_vm2, %v4878_v28  ;;  %v3957_v37 = vadd.f32 %v1131_v11, %v1039_v10  ;;  %v914_v40 = vpop.f32.mrf.mxu1  ;;  %v4881_v11 = vld [vmem:[#allocation26_spill] sm:$0xff]  ;;  %v610_v10 = vrot.slane %v4882_v3, 2 }
 0x103   : > { %v915_v46 = vadd.f32 %v914_v40, %v814_v36  ;;  %v506_v14 = vrot.slane %v4881_v11, 2  ;;  %v2910_v40 = vld [vmem:[%s4756_s3 + $0x30] sm:$0xf]  ;;  %v4883_v11 = vld [vmem:[#allocation28_spill] sm:$0xff]  ;;  %2912 = vmatpush.msk.msrb.mxu0 %vm757_vm0, %v2911_v50 }
 0x104   : > { %4879 = vst [vmem:[#allocation15_spill] sm:$0xff] %v3957_v37  ;;  %2816 = vmatmul.msk.f32.gmra.mxu2 %vm724_vm2, %v505_v4  ;;  %v1134_v48 = vpop.f32.mrf.mxu3  ;;  %2929 = vmatpush.msk.msrb.mxu1 %vm757_vm0, %v2910_v40 }
 0x105   : > { %2798 = vmatmul.msk.f32.gmra.mxu1 %vm724_vm2, %v3960_v21  ;;  %v507_v17 = vsel %vm472_vm3, %v504_v30, %v506_v14  ;;  %v4887_v14 = vld [vmem:[#allocation30_spill] sm:$0xff] }
 0x107   : > { %v817_v0 = vpop.f32.mrf.mxu0  ;;  %v1016_v36 = vpop.f32.mrf.mxu2 }
 0x108   : > { %v1040_v4 = vadd.f32 %v1016_v36, %v915_v46  ;;  %v3989_v46 = vsel %vm472_vm3, %v608_v2, %v610_v10  ;;  %v613_v2 = vrot.slane %v3712_v44, 2 }
 0x109   : > { %2835 = vmatmul.msk.f32.gmra.mxu3 %vm724_vm2, %v4883_v11  ;;  %4886 = vst [vmem:[#allocation19_spill] sm:$0xff] %v3989_v46  ;;  %v508_v11 = vrot.slane %v4887_v14, 2 }
 0x10a   : > { %2782 = vmatmul.msk.f32.gmra.mxu0 %vm724_vm2, %v4884_v52  ;;  %v3986_v3 = vadd.f32 %v1134_v48, %v1040_v4  ;;  %v917_v32 = vpop.f32.mrf.mxu1  ;;  %v509_v48 = vrot.slane %v3704_v60, 2  ;;  %v612_v4 = vrot.slane %v3709_v5, 2 }
 0x10b   : > { %v918_v36 = vadd.f32 %v917_v32, %v817_v0  ;;  %v4889_v0 = vld [vmem:[#allocation32_spill] sm:$0xff] }
 0x10c   : > { %4885 = vst [vmem:[#allocation18_spill] sm:$0xff] %v3986_v3  ;;  %2817 = vmatmul.msk.f32.gmra.mxu2 %vm724_vm2, %v507_v17  ;;  %v1137_v30 = vpop.f32.mrf.mxu3  ;;  %v510_v40 = vsel %vm472_vm3, %v508_v11, %v509_v48  ;;  %v4888_v17 = vld [vmem:[#allocation31_spill] sm:$0xff]  ;;  %v4008_v60 = vsel %vm472_vm3, %v612_v4, %v613_v2 }
 0x10d   : > { %2799 = vmatmul.msk.f32.gmra.mxu1 %vm724_vm2, %v3989_v46  ;;  %4891 = vst [vmem:[#allocation22_spill] sm:$0xff] %v4008_v60 }
 0x10f   : > { %v820_v63 = vpop.f32.mrf.mxu0  ;;  %v1019_v10 = vpop.f32.mrf.mxu2 }
 0x110   : > { %v1041_v50 = vadd.f32 %v1019_v10, %v918_v36  ;;  %v4892_v36 = vld [vmem:[#allocation33_spill] sm:$0xff] }
 0x111   : > { %2836 = vmatmul.msk.f32.gmra.mxu3 %vm724_vm2, %v4888_v17  ;;  %v511_v11 = vrot.slane %v4892_v36, 2  ;;  %v4893_v17 = vld [vmem:[#allocation34_spill] sm:$0xff] }
 0x112   : > { %2783 = vmatmul.msk.f32.gmra.mxu0 %vm724_vm2, %v4889_v0  ;;  %v4005_v32 = vadd.f32 %v1137_v30, %v1041_v50  ;;  %v920_v14 = vpop.f32.mrf.mxu1  ;;  %v615_v46 = vrot.slane %v4893_v17, 2  ;;  %v4894_v30 = vld [vmem:[#allocation35_spill] sm:$0xff] }
 0x113   : > { %v921_v5 = vadd.f32 %v920_v14, %v820_v63  ;;  %v512_v63 = vsel %vm472_vm3, %v509_v48, %v511_v11  ;;  %v4035_v14 = vld [vmem:[%s4019_s27 + $0x8] sm:$0xff] }
 0x114   : > { %4890 = vst [vmem:[#allocation21_spill] sm:$0xff] %v4005_v32  ;;  %2818 = vmatmul.msk.f32.gmra.mxu2 %vm724_vm2, %v510_v40  ;;  %v1140_v44 = vpop.f32.mrf.mxu3  ;;  %v4032_v40 = vld [vmem:[%s4019_s27] sm:$0xff] }
 0x115   : > { %2800 = vmatmul.msk.f32.gmra.mxu1 %vm724_vm2, %v4008_v60 }
 0x117   : > { %v823_v10 = vpop.f32.mrf.mxu0  ;;  %v1022_v21 = vpop.f32.mrf.mxu2 }
 0x118   : > { %v1042_v3 = vadd.f32 %v1022_v21, %v921_v5  ;;  %v4029_v21 = vsel %vm472_vm3, %v613_v2, %v615_v46  ;;  %v4897_v2 = vld [vmem:[#allocation5_spill] sm:$0xff] }
 0x119   : > { %2837 = vmatmul.msk.f32.gmra.mxu3 %vm724_vm2, %v3745_v29  ;;  %4896 = vst [vmem:[#allocation24_spill] sm:$0xff] %v4029_v21 }
 0x11a   : > { %2784 = vmatmul.msk.f32.gmra.mxu0 %vm724_vm2, %v4894_v30  ;;  %v4026_v4 = vadd.f32 %v1140_v44, %v1042_v3  ;;  %v923_v50 = vpop.f32.mrf.mxu1  ;;  %v641_v3 = vrot.slane %v4032_v40, 1  ;;  %v642_v44 = vrot.slane %v4035_v14, 1 }
 0x11b   : > { %v924_v48 = vadd.f32 %v923_v50, %v823_v10  ;;  %v4899_v50 = vld [vmem:[#allocation7_spill] sm:$0xff] }
 0x11c   : > { %4895 = vst [vmem:[#allocation23_spill] sm:$0xff] %v4026_v4  ;;  %2819 = vmatmul.msk.f32.gmra.mxu2 %vm724_vm2, %v512_v63  ;;  %v1143_v5 = vpop.f32.mrf.mxu3  ;;  %v4049_v17 = vsel %vm431_vm1, %v641_v3, %v642_v44  ;;  %v4052_v63 = vld [vmem:[%s4019_s27 + $0x10] sm:$0x3] }
 0x11d   : > { %2801 = vmatmul.msk.f32.gmra.mxu1 %vm724_vm2, %v4029_v21 }
 0x11f   : > { %v1186_v29 = vpop.f32.mrf.mxu0  ;;  %v1025_v36 = vpop.f32.mrf.mxu2 }
 0x120   : > { %v1043_v46 = vadd.f32 %v1025_v36, %v924_v48 }
 0x121   : > { %2894 = vmatmul.msk.f32.vlgmr.msra.gmra.mxu3 %vm724_vm2, %v4897_v2 }
 0x122   : > { %2841 = vmatmul.msk.f32.vlgmr.msra.gmra.mxu0 %vm724_vm2, %v4032_v40  ;;  %v4046_v11 = vadd.f32 %v1143_v5, %v1043_v46  ;;  %v1286_v10 = vpop.f32.mrf.mxu1  ;;  %v644_v5 = vrot.slane %v4052_v63, 1 }
 0x123   : > { %v1287_v48 = vadd.f32 %v1286_v10, %v1186_v29  ;;  %v4067_v29 = vld [vmem:[%s4019_s27 + $0x18] sm:$0xff]  ;;  %v4070_v10 = vld [vmem:[%s4019_s27 + $0x20] sm:$0xff] }
 0x124   : > { %4898 = vst [vmem:[#allocation26_spill] sm:$0xff] %v4046_v11  ;;  %2876 = vmatmul.msk.f32.vlgmr.msra.gmra.mxu2 %vm724_vm2, %v4899_v50  ;;  %v1474_v36 = vpop.f32.mrf.mxu3  ;;  %v4900_v11 = vld [vmem:[#allocation6_spill] sm:$0xff]  ;;  %v4064_v32 = vsel %vm431_vm1, %v642_v44, %v644_v5  ;;  %v646_v44 = vrot.slane %v4067_v29, 1 }
 0x125   : > { %2858 = vmatmul.msk.f32.vlgmr.msra.gmra.mxu1 %vm724_vm2, %v4049_v17 }
 0x127   : > { %v1189_v2 = vpop.f32.mrf.mxu0  ;;  %v1388_v46 = vpop.f32.mrf.mxu2 }
 0x128   : > { %v1436_v21 = vadd.f32 %v1388_v46, %v1287_v48 }
 0x129   : > { %2895 = vmatmul.msk.f32.gmra.mxu3 %vm724_vm2, %v4900_v11 }
 0x12a   : > { %2842 = vmatmul.msk.f32.gmra.mxu0 %vm724_vm2, %v4035_v14  ;;  %v1522_v3 = vadd.f32 %v1474_v36, %v1436_v21  ;;  %v1289_v60 = vpop.f32.mrf.mxu1  ;;  %v647_v36 = vrot.slane %v4070_v10, 1 }
 0x12b   : > { %v1290_v11 = vadd.f32 %v1289_v60, %v1189_v2  ;;  %v4087_v2 = vld [vmem:[%s4019_s27 + $0x28] sm:$0x3] }
 0x12c   : > { %2877 = vmatmul.msk.f32.gmra.mxu2 %vm724_vm2, %v3372_v23  ;;  %2274 = vrot.lane.b32.xlu0 %v1522_v3, %s3171_s10  ;;  %v1477_v48 = vpop.f32.mrf.mxu3  ;;  %v4084_v60 = vsel %vm431_vm1, %v646_v44, %v647_v36 }
 0x12d   : > { %2859 = vmatmul.msk.f32.gmra.mxu1 %vm724_vm2, %v4064_v32 }
 0x12f   : > { %v1192_v21 = vpop.f32.mrf.mxu0  ;;  %v1391_v5 = vpop.f32.mrf.mxu2 }
 0x130   : > { %v1437_v46 = vadd.f32 %v1391_v5, %v1290_v11 }
 0x131   : > { %2896 = vmatmul.msk.f32.gmra.mxu3 %vm724_vm2, %v3381_v26 }
 0x132   : > { %2843 = vmatmul.msk.f32.gmra.mxu0 %vm724_vm2, %v4067_v29  ;;  %v1523_v62 = vadd.f32 %v1477_v48, %v1437_v46  ;;  %v1292_v3 = vpop.f32.mrf.mxu1  ;;  %v649_v48 = vrot.slane %v4087_v2, 1 }
 0x133   : > { %v1293_v11 = vadd.f32 %v1292_v3, %v1192_v21  ;;  %v4103_v21 = vld [vmem:[%s4019_s27 + $0x30] sm:$0xff]  ;;  %v4106_v3 = vld [vmem:[%s4019_s27 + $0x38] sm:$0xff] }
 0x134   : > { %2878 = vmatmul.msk.f32.gmra.mxu2 %vm724_vm2, %v3402_v33  ;;  %2276 = vrot.lane.b32.xlu0 %v1523_v62, %s3171_s10  ;;  %v1480_v5 = vpop.f32.mrf.mxu3  ;;  %v4100_v62 = vsel %vm431_vm1, %v647_v36, %v649_v48  ;;  %v652_v36 = vrot.slane %v4106_v3, 1 }
 0x135   : > { %2860 = vmatmul.msk.f32.gmra.mxu1 %vm724_vm2, %v4084_v60 }
 0x137   : > { %v1195_v26 = vpop.f32.mrf.mxu0  ;;  %v1394_v46 = vpop.f32.mrf.mxu2 }
 0x138   : > { %v1438_v44 = vadd.f32 %v1394_v46, %v1293_v11  ;;  %v651_v46 = vrot.slane %v4103_v21, 1 }
 0x139   : > { %2897 = vmatmul.msk.f32.gmra.mxu3 %vm724_vm2, %v3384_v27 }
 0x13a   : > { %2844 = vmatmul.msk.f32.gmra.mxu0 %vm724_vm2, %v4070_v10  ;;  %v1524_v4 = vadd.f32 %v1480_v5, %v1438_v44  ;;  %v1295_v16 = vpop.f32.mrf.mxu1 }
 0x13b   : > { %v1296_v11 = vadd.f32 %v1295_v16, %v1195_v26  ;;  %v4120_v16 = vsel %vm431_vm1, %v651_v46, %v652_v36  ;;  %v4123_v26 = vld [vmem:[%s4019_s27 + $0x40] sm:$0x3] }
 0x13c   : > { %2879 = vmatmul.msk.f32.gmra.mxu2 %vm724_vm2, %v3424_v39  ;;  %2278 = vrot.lane.b32.xlu1 %v1524_v4, %s3171_s10  ;;  %v1483_v27 = vpop.f32.mrf.mxu3 }
 0x13d   : > { %2861 = vmatmul.msk.f32.gmra.mxu1 %vm724_vm2, %v4100_v62 }
 0x13f   : > { %v1198_v5 = vpop.f32.mrf.mxu0  ;;  %v1397_v48 = vpop.f32.mrf.mxu2 }
 0x140   : > { %v1439_v44 = vadd.f32 %v1397_v48, %v1296_v11 }
 0x141   : > { %2898 = vmatmul.msk.f32.gmra.mxu3 %vm724_vm2, %v3433_v42 }
 0x142   : > { %2845 = vmatmul.msk.f32.gmra.mxu0 %vm724_vm2, %v4103_v21  ;;  %v1525_v54 = vadd.f32 %v1483_v27, %v1439_v44  ;;  %v1298_v4 = vpop.f32.mrf.mxu1  ;;  %v654_v27 = vrot.slane %v4123_v26, 1 }
 0x143   : > { %v1299_v11 = vadd.f32 %v1298_v4, %v1198_v5  ;;  %v4139_v5 = vld [vmem:[%s4019_s27 + $0x48] sm:$0xff]  ;;  %v4142_v4 = vld [vmem:[%s4019_s27 + $0x50] sm:$0xff] }
 0x144   : > { %2880 = vmatmul.msk.f32.gmra.mxu2 %vm724_vm2, %v3454_v49  ;;  %2280 = vrot.lane.b32.xlu1 %v1525_v54, %s3171_s10  ;;  %v1486_v48 = vpop.f32.mrf.mxu3  ;;  %v4136_v54 = vsel %vm431_vm1, %v652_v36, %v654_v27  ;;  %v657_v36 = vrot.slane %v4142_v4, 1 }
 0x145   : > { %2862 = vmatmul.msk.f32.gmra.mxu1 %vm724_vm2, %v4120_v16 }
 0x147   : > { %v1201_v42 = vpop.f32.mrf.mxu0  ;;  %v1400_v44 = vpop.f32.mrf.mxu2 }
 0x148   : > { %v1440_v46 = vadd.f32 %v1400_v44, %v1299_v11  ;;  %v656_v44 = vrot.slane %v4139_v5, 1 }
 0x149   : > { %2899 = vmatmul.msk.f32.gmra.mxu3 %vm724_vm2, %v3436_v43 }
 0x14a   : > { %2846 = vmatmul.msk.f32.gmra.mxu0 %vm724_vm2, %v4106_v3  ;;  %v1526_v34 = vadd.f32 %v1486_v48, %v1440_v46  ;;  %v1301_v15 = vpop.f32.mrf.mxu1 }
 0x14b   : > { %v1302_v11 = vadd.f32 %v1301_v15, %v1201_v42  ;;  %v4156_v15 = vsel %vm431_vm1, %v656_v44, %v657_v36  ;;  %v4159_v42 = vld [vmem:[%s4019_s27 + $0x58] sm:$0x3] }
 0x14c   : > { %2881 = vmatmul.msk.f32.gmra.mxu2 %vm724_vm2, %v3476_v55  ;;  %2282 = vrot.lane.b32.xlu2 %v1526_v34, %s3171_s10  ;;  %v1489_v43 = vpop.f32.mrf.mxu3 }
 0x14d   : > { %2863 = vmatmul.msk.f32.gmra.mxu1 %vm724_vm2, %v4136_v54 }
 0x14f   : > { %v1204_v48 = vpop.f32.mrf.mxu0  ;;  %v1403_v27 = vpop.f32.mrf.mxu2 }
 0x150   : > { %v1441_v46 = vadd.f32 %v1403_v27, %v1302_v11 }
 0x151   : > { %2900 = vmatmul.msk.f32.gmra.mxu3 %vm724_vm2, %v3485_v58 }
 0x152   : > { %2847 = vmatmul.msk.f32.gmra.mxu0 %vm724_vm2, %v4139_v5  ;;  %v1527_v12 = vadd.f32 %v1489_v43, %v1441_v46  ;;  %v1304_v34 = vpop.f32.mrf.mxu1  ;;  %v659_v43 = vrot.slane %v4159_v42, 1 }
 0x153   : > { %v1305_v11 = vadd.f32 %v1304_v34, %v1204_v48  ;;  %v4175_v48 = vld [vmem:[%s4019_s27 + $0x60] sm:$0xff]  ;;  %v4178_v34 = vld [vmem:[%s4019_s27 + $0x68] sm:$0xff] }
 0x154   : > { %2882 = vmatmul.msk.f32.gmra.mxu2 %vm724_vm2, %v3506_v1  ;;  %2284 = vrot.lane.b32.xlu2 %v1527_v12, %s3171_s10  ;;  %v1492_v27 = vpop.f32.mrf.mxu3  ;;  %v4172_v12 = vsel %vm431_vm1, %v657_v36, %v659_v43  ;;  %4902 = vst [vmem:[#allocation28_spill] sm:$0xff] %v4175_v48  ;;  %v662_v36 = vrot.slane %v4178_v34, 1 }
 0x155   : > { %2864 = vmatmul.msk.f32.gmra.mxu1 %vm724_vm2, %v4156_v15  ;;  %4901 = vst [vmem:[#allocation27_spill] sm:$0xff] %v4172_v12 }
 0x157   : > { %v1207_v58 = vpop.f32.mrf.mxu0  ;;  %v1406_v46 = vpop.f32.mrf.mxu2 }
 0x158   : > { %v1442_v44 = vadd.f32 %v1406_v46, %v1305_v11  ;;  %v661_v46 = vrot.slane %v4175_v48, 1 }
 0x159   : > { %2901 = vmatmul.msk.f32.gmra.mxu3 %vm724_vm2, %v3488_v59 }
 0x15a   : > { %2848 = vmatmul.msk.f32.gmra.mxu0 %vm724_vm2, %v4142_v4  ;;  %v1528_v37 = vadd.f32 %v1492_v27, %v1442_v44  ;;  %v1307_v51 = vpop.f32.mrf.mxu1 }
 0x15b   : > { %v1308_v11 = vadd.f32 %v1307_v51, %v1207_v58  ;;  %v4192_v58 = vsel %vm431_vm1, %v661_v46, %v662_v36 }
 0x15c   : > { %2883 = vmatmul.msk.f32.gmra.mxu2 %vm724_vm2, %v3528_v7  ;;  %2286 = vrot.lane.b32.xlu0 %v1528_v37, %s3171_s10  ;;  %v1495_v59 = vpop.f32.mrf.mxu3 }
 0x15d   : > { %2865 = vmatmul.msk.f32.gmra.mxu1 %vm724_vm2, %v4172_v12  ;;  %v4195_v12 = vld [vmem:[%s4019_s27 + $0x70] sm:$0x3] }
 0x15f   : > { %v1210_v27 = vpop.f32.mrf.mxu0  ;;  %v1409_v43 = vpop.f32.mrf.mxu2 }
 0x160   : > { %v1443_v44 = vadd.f32 %v1409_v43, %v1308_v11 }
 0x161   : > { %2902 = vmatmul.msk.f32.gmra.mxu3 %vm724_vm2, %v3537_v13 }
 0x162   : > { %2849 = vmatmul.msk.f32.gmra.mxu0 %vm724_vm2, %v4175_v48  ;;  %v1529_v37 = vadd.f32 %v1495_v59, %v1443_v44  ;;  %v1310_v51 = vpop.f32.mrf.mxu1  ;;  %v664_v59 = vrot.slane %v4195_v12, 1  ;;  %v3069_v48 = vld [vmem:[%s3324_s26 + $0x68] sm:$0xff] }
 0x163   : > { %v1311_v11 = vadd.f32 %v1310_v51, %v1210_v27  ;;  %v4211_v27 = vld [vmem:[%s4019_s27 + $0x78] sm:$0xff]  ;;  %v4214_v51 = vld [vmem:[%s4019_s27 + $0x80] sm:$0xff] }
 0x164   : > { %2884 = vmatmul.msk.f32.gmra.mxu2 %vm724_vm2, %v3558_v31  ;;  %2288 = vrot.lane.b32.xlu1 %v1529_v37, %s3171_s10  ;;  %v1498_v43 = vpop.f32.mrf.mxu3  ;;  %v4208_v37 = vsel %vm431_vm1, %v662_v36, %v664_v59  ;;  %4904 = vst [vmem:[#allocation31_spill] sm:$0xff] %v4211_v27  ;;  %v667_v36 = vrot.slane %v4214_v51, 1 }
 0x165   : > { %2866 = vmatmul.msk.f32.gmra.mxu1 %vm724_vm2, %v4192_v58  ;;  %4903 = vst [vmem:[#allocation30_spill] sm:$0xff] %v4208_v37 }
 0x167   : > { %v1213_v13 = vpop.f32.mrf.mxu0  ;;  %v1412_v44 = vpop.f32.mrf.mxu2 }
 0x168   : > { %v1444_v46 = vadd.f32 %v1412_v44, %v1311_v11  ;;  %v666_v44 = vrot.slane %v4211_v27, 1 }
 0x169   : > { %2903 = vmatmul.msk.f32.gmra.mxu3 %vm724_vm2, %v3069_v48 }
 0x16a   : > { %2850 = vmatmul.msk.f32.gmra.mxu0 %vm724_vm2, %v4178_v34  ;;  %v1530_v31 = vadd.f32 %v1498_v43, %v1444_v46  ;;  %v1313_v7 = vpop.f32.mrf.mxu1 }
 0x16b   : > { %v1314_v11 = vadd.f32 %v1313_v7, %v1213_v13  ;;  %v4228_v13 = vsel %vm431_vm1, %v666_v44, %v667_v36 }
 0x16c   : > { %2885 = vmatmul.msk.f32.gmra.mxu2 %vm724_vm2, %v3580_v47  ;;  %2290 = vrot.lane.b32.xlu2 %v1530_v31, %s3171_s10  ;;  %v1501_v48 = vpop.f32.mrf.mxu3 }
 0x16d   : > { %2867 = vmatmul.msk.f32.gmra.mxu1 %vm724_vm2, %v4208_v37  ;;  %v4231_v37 = vld [vmem:[%s4019_s27 + $0x88] sm:$0x3] }
 0x16e   : > { %4905 = vst [vmem:[#allocation33_spill] sm:$0xff] %v4231_v37 }
 0x16f   : > { %v1216_v43 = vpop.f32.mrf.mxu0  ;;  %v1415_v59 = vpop.f32.mrf.mxu2 }
 0x170   : > { %v1445_v46 = vadd.f32 %v1415_v59, %v1314_v11 }
 0x171   : > { %2904 = vmatmul.msk.f32.gmra.mxu3 %vm724_vm2, %v4862_v38 }
 0x172   : > { %2851 = vmatmul.msk.f32.gmra.mxu0 %vm724_vm2, %v4211_v27  ;;  %v1531_v31 = vadd.f32 %v1501_v48, %v1445_v46  ;;  %v1316_v7 = vpop.f32.mrf.mxu1  ;;  %v669_v48 = vrot.slane %v4231_v37, 1  ;;  %v3070_v27 = vld [vmem:[%s3324_s26 + $0x80] sm:$0xff]  ;;  %v3071_v37 = vld [vmem:[%s3324_s26 + $0x90] sm:$0xff] }
 0x173   : > { %v1317_v11 = vadd.f32 %v1316_v7, %v1216_v43  ;;  %v4250_v7 = vld [vmem:[%s4019_s27 + $0x98] sm:$0xff] }
 0x174   : > { %2886 = vmatmul.msk.f32.gmra.mxu2 %vm724_vm2, %v4865_v56  ;;  %2292 = vrot.lane.b32.xlu0 %v1531_v31, %s3171_s10  ;;  %v1504_v59 = vpop.f32.mrf.mxu3  ;;  %v4244_v43 = vsel %vm431_vm1, %v667_v36, %v669_v48  ;;  %v4247_v31 = vld [vmem:[%s4019_s27 + $0x90] sm:$0xff]  ;;  %v672_v36 = vrot.slane %v4250_v7, 1 }
 0x175   : > { %2868 = vmatmul.msk.f32.gmra.mxu1 %vm724_vm2, %v4228_v13  ;;  %4906 = vst [vmem:[#allocation34_spill] sm:$0xff] %v4244_v43 }
 0x176   : > { %4907 = vst [vmem:[#allocation35_spill] sm:$0xff] %v4247_v31 }
 0x177   : > { %v1219_v38 = vpop.f32.mrf.mxu0  ;;  %v1418_v46 = vpop.f32.mrf.mxu2 }
 0x178   : > { %v1446_v44 = vadd.f32 %v1418_v46, %v1317_v11  ;;  %v671_v46 = vrot.slane %v4247_v31, 1 }
 0x179   : > { %2905 = vmatmul.msk.f32.gmra.mxu3 %vm724_vm2, %v3070_v27 }
 0x17a   : > { %2852 = vmatmul.msk.f32.gmra.mxu0 %vm724_vm2, %v4214_v51  ;;  %v1532_v56 = vadd.f32 %v1504_v59, %v1446_v44  ;;  %v1319_v47 = vpop.f32.mrf.mxu1 }
 0x17b   : > { %v1320_v27 = vadd.f32 %v1319_v47, %v1219_v38  ;;  %v4264_v38 = vsel %vm431_vm1, %v671_v46, %v672_v36 }
 0x17c   : > { %2887 = vmatmul.msk.f32.gmra.mxu2 %vm724_vm2, %v4871_v6  ;;  %2294 = vrot.lane.b32.xlu1 %v1532_v56, %s3171_s10  ;;  %v1507_v11 = vpop.f32.mrf.mxu3 }
 0x17d   : > { %2869 = vmatmul.msk.f32.gmra.mxu1 %vm724_vm2, %v4244_v43  ;;  %v4267_v43 = vld [vmem:[%s4019_s27 + $0xa0] sm:$0x3] }
 0x17e   : > { %4908 = vst [vmem:[#allocation5_spill] sm:$0xff] %v4267_v43 }
 0x17f   : > { %v1222_v59 = vpop.f32.mrf.mxu0  ;;  %v1421_v48 = vpop.f32.mrf.mxu2 }
 0x180   : > { %v1447_v44 = vadd.f32 %v1421_v48, %v1320_v27 }
 0x181   : > { %2906 = vmatmul.msk.f32.gmra.mxu3 %vm724_vm2, %v3071_v37 }
 0x182   : > { %2853 = vmatmul.msk.f32.gmra.mxu0 %vm724_vm2, %v4247_v31  ;;  %v1533_v56 = vadd.f32 %v1507_v11, %v1447_v44  ;;  %v1322_v47 = vpop.f32.mrf.mxu1  ;;  %v674_v11 = vrot.slane %v4267_v43, 1  ;;  %v3072_v31 = vld [vmem:[%s3324_s26 + $0x98] sm:$0xff]  ;;  %v3073_v43 = vld [vmem:[%s3324_s26 + $0xa8] sm:$0xff] }
 0x183   : > { %v1323_v27 = vadd.f32 %v1322_v47, %v1222_v59  ;;  %v4286_v47 = vld [vmem:[%s4019_s27 + $0xb0] sm:$0xff] }
 0x184   : > { %2888 = vmatmul.msk.f32.gmra.mxu2 %vm724_vm2, %v4878_v28  ;;  %2296 = vrot.lane.b32.xlu2 %v1533_v56, %s3171_s10  ;;  %v1510_v48 = vpop.f32.mrf.mxu3  ;;  %v4280_v59 = vsel %vm431_vm1, %v672_v36, %v674_v11  ;;  %v4283_v56 = vld [vmem:[%s4019_s27 + $0xa8] sm:$0xff]  ;;  %v677_v36 = vrot.slane %v4286_v47, 1 }
 0x185   : > { %2870 = vmatmul.msk.f32.gmra.mxu1 %vm724_vm2, %v4264_v38  ;;  %4909 = vst [vmem:[#allocation7_spill] sm:$0xff] %v4280_v59 }
 0x186   : > { %4910 = vst [vmem:[#allocation6_spill] sm:$0xff] %v4283_v56 }
 0x187   : > { %v1225_v37 = vpop.f32.mrf.mxu0  ;;  %v1424_v44 = vpop.f32.mrf.mxu2 }
 0x188   : > { %v1448_v46 = vadd.f32 %v1424_v44, %v1323_v27  ;;  %v676_v44 = vrot.slane %v4283_v56, 1 }
 0x189   : > { %2907 = vmatmul.msk.f32.gmra.mxu3 %vm724_vm2, %v3072_v31 }
 0x18a   : > { %2854 = vmatmul.msk.f32.gmra.mxu0 %vm724_vm2, %v4250_v7  ;;  %v1534_v28 = vadd.f32 %v1510_v48, %v1448_v46  ;;  %v1325_v6 = vpop.f32.mrf.mxu1 }
 0x18b   : > { %v1326_v31 = vadd.f32 %v1325_v6, %v1225_v37  ;;  %v4300_v37 = vsel %vm431_vm1, %v676_v44, %v677_v36 }
 0x18c   : > { %2889 = vmatmul.msk.f32.gmra.mxu2 %vm724_vm2, %v4884_v52  ;;  %2298 = vrot.lane.b32.xlu0 %v1534_v28, %s3171_s10  ;;  %v1513_v27 = vpop.f32.mrf.mxu3  ;;  %v3074_v52 = vld [vmem:[%s3324_s26 + $0xb0] sm:$0xff]  ;;  %s3172_s26 = smov 64  }
 0x18d   : > { %2871 = vmatmul.msk.f32.gmra.mxu1 %vm724_vm2, %v4280_v59  ;;  %v4303_v59 = vld [vmem:[%s4019_s27 + $0xb8] sm:$0x3]  ;;  %s2986_s27 = sshll.u32 %s2550_s15, 3  ;;  %s3095_s15 = scalar_lea.hbm %s4758_s5, 512 }
 0x18f   : > { %v1228_v48 = vpop.f32.mrf.mxu0  ;;  %v1427_v11 = vpop.f32.mrf.mxu2 }
 0x190   : > { %v1449_v46 = vadd.f32 %v1427_v11, %v1326_v31 }
 0x191   : > { %2908 = vmatmul.msk.f32.gmra.mxu3 %vm724_vm2, %v3073_v43 }
 0x192   : > { %2855 = vmatmul.msk.f32.gmra.mxu0 %vm724_vm2, %v4283_v56  ;;  %v1535_v28 = vadd.f32 %v1513_v27, %v1449_v46  ;;  %v1328_v6 = vpop.f32.mrf.mxu1  ;;  %v679_v56 = vrot.slane %v4303_v59, 1 }
 0x193   : > { %v1329_v31 = vadd.f32 %v1328_v6, %v1228_v48 }
 0x194   : > { %2890 = vmatmul.msk.f32.gmra.mxu2 %vm724_vm2, %v4889_v0  ;;  %2300 = vrot.lane.b32.xlu1 %v1535_v28, %s3171_s10  ;;  %v1516_v11 = vpop.f32.mrf.mxu3  ;;  %v4316_v28 = vsel %vm431_vm1, %v677_v36, %v679_v56 }
 0x195   : > { %2872 = vmatmul.msk.f32.gmra.mxu1 %vm724_vm2, %v4300_v37 }
 0x197   : > { %v1231_v43 = vpop.f32.mrf.mxu0  ;;  %v1430_v27 = vpop.f32.mrf.mxu2 }
 0x198   : > { %v1450_v46 = vadd.f32 %v1430_v27, %v1329_v31 }
 0x199   : > { %2909 = vmatmul.msk.f32.gmra.mxu3 %vm724_vm2, %v3074_v52  ;;  %v681_v52 = vrot.slane %v4032_v40, 2 }
 0x19a   : > { %2856 = vmatmul.msk.f32.gmra.mxu0 %vm724_vm2, %v4286_v47  ;;  %v1536_v44 = vadd.f32 %v1516_v11, %v1450_v46  ;;  %v1331_v0 = vpop.f32.mrf.mxu1  ;;  %v682_v11 = vrot.slane %v4035_v14, 2 }
 0x19b   : > { %v1332_v48 = vadd.f32 %v1331_v0, %v1231_v43 }
 0x19c   : > { %2891 = vmatmul.msk.f32.gmra.mxu2 %vm724_vm2, %v4894_v30  ;;  %2302 = vrot.lane.b32.xlu2 %v1536_v44, %s3171_s10  ;;  %v1519_v6 = vpop.f32.mrf.mxu3  ;;  %v683_v43 = vsel %vm472_vm3, %v681_v52, %v682_v11 }
 0x19d   : > { %2873 = vmatmul.msk.f32.gmra.mxu1 %vm724_vm2, %v4316_v28 }
 0x19e   : > { %v4324_v31 = vpop.permute.xlu0 %2274 }
 0x19f   : > { %v1594_v27 = vpop.f32.mrf.mxu0  ;;  %v1433_v46 = vpop.f32.mrf.mxu2 }
 0x1a0   : > { %v1451_v56 = vadd.f32 %v1433_v46, %v1332_v48 }
 0x1a1   : > { %2966 = vmatmul.msk.f32.vlgmr.msrb.gmra.mxu3 %vm724_vm2, %v4899_v50  ;;  %v684_v50 = vrot.slane %v4052_v63, 2 }
 0x1a2   : > { %2913 = vmatmul.msk.f32.vlgmr.msrb.gmra.mxu0 %vm724_vm2, %v4049_v17  ;;  %v1537_v0 = vadd.f32 %v1519_v6, %v1451_v56  ;;  %v1694_v36 = vpop.f32.mrf.mxu1 }
 0x1a3   : > { %v1695_v40 = vadd.f32 %v1694_v36, %v1594_v27  ;;  %v685_v63 = vsel %vm472_vm3, %v682_v11, %v684_v50 }
 0x1a4   : > { %2948 = vmatmul.msk.f32.vlgmr.msrb.gmra.mxu2 %vm724_vm2, %v3768_v61  ;;  %2304 = vrot.lane.b32.xlu0 %v1537_v0, %s3171_s10  ;;  %v1850_v44 = vpop.f32.mrf.mxu3  ;;  %v686_v0 = vrot.slane %v4067_v29, 2 }
 0x1a5   : > { %2930 = vmatmul.msk.f32.vlgmr.msrb.gmra.mxu1 %vm724_vm2, %v683_v43 }
 0x1a6   : > { %v2277_v14 = vpop.permute.xlu0 %2276  ;;  %v2283_v48 = vpop.permute.xlu2 %2282 }
 0x1a7   : > { %v4339_v17 = vsel %vm2450_vm4, %v3797_v19, %v2277_v14  ;;  %v4343_v6 = vsel %vm2450_vm4, %v3844_v35, %v2283_v48  ;;  %v1764_v61 = vpop.f32.mrf.mxu2  ;;  %v1597_v52 = vpop.f32.mrf.mxu0  ;;  %v689_v48 = vrot.slane %v4087_v2, 2 }
 0x1a8   : > { %v1812_v46 = vadd.f32 %v1764_v61, %v1695_v40 }
 0x1a9   : > { %2967 = vmatmul.msk.f32.gmra.mxu3 %vm724_vm2, %v3372_v23 }
 0x1aa   : > { %2914 = vmatmul.msk.f32.gmra.mxu0 %vm724_vm2, %v4064_v32  ;;  %v1898_v27 = vadd.f32 %v1850_v44, %v1812_v46  ;;  %v1697_v56 = vpop.f32.mrf.mxu1  ;;  %v687_v32 = vrot.slane %v4070_v10, 2 }
 0x1ab   : > { %v1698_v19 = vadd.f32 %v1697_v56, %v1597_v52 }
 0x1ac   : > { %2949 = vmatmul.msk.f32.gmra.mxu2 %vm724_vm2, %v3783_v20  ;;  %2338 = vrot.lane.b32.xlu1 %v1898_v27, %s3172_s26  ;;  %v1853_v35 = vpop.f32.mrf.mxu3  ;;  %v688_v10 = vsel %vm472_vm3, %v686_v0, %v687_v32  ;;  %v691_v27 = vrot.slane %v4103_v21, 2 }
 0x1ad   : > { %2931 = vmatmul.msk.f32.gmra.mxu1 %vm724_vm2, %v685_v63 }
 0x1ae   : > { %v2279_v23 = vpop.permute.xlu1 %2278  ;;  %v2285_v36 = vpop.permute.xlu2 %2284 }
 0x1af   : > { %v4358_v43 = vsel %vm2450_vm4, %v3812_v45, %v2279_v23  ;;  %v4362_v20 = vsel %vm2450_vm4, %v3861_v53, %v2285_v36  ;;  %v1767_v11 = vpop.f32.mrf.mxu2  ;;  %v1600_v40 = vpop.f32.mrf.mxu0  ;;  %v694_v23 = vrot.slane %v4123_v26, 2 }
 0x1b0   : > { %v1813_v44 = vadd.f32 %v1767_v11, %v1698_v19 }
 0x1b1   : > { %2968 = vmatmul.msk.f32.gmra.mxu3 %vm724_vm2, %v3402_v33 }
 0x1b2   : > { %2915 = vmatmul.msk.f32.gmra.mxu0 %vm724_vm2, %v4084_v60  ;;  %v1899_v29 = vadd.f32 %v1853_v35, %v1813_v44  ;;  %v1700_v14 = vpop.f32.mrf.mxu1  ;;  %v696_v44 = vrot.slane %v4139_v5, 2 }
 0x1b3   : > { %v1701_v45 = vadd.f32 %v1700_v14, %v1600_v40 }
 0x1b4   : > { %2950 = vmatmul.msk.f32.gmra.mxu2 %vm724_vm2, %v3800_v25  ;;  %2340 = vrot.lane.b32.xlu2 %v1899_v29, %s3172_s26  ;;  %v1856_v53 = vpop.f32.mrf.mxu3  ;;  %v690_v25 = vsel %vm472_vm3, %v687_v32, %v689_v48 }
 0x1b5   : > { %2932 = vmatmul.msk.f32.gmra.mxu1 %vm724_vm2, %v688_v10 }
 0x1b6   : > { %v4409_v29 = vpop.permute.xlu1 %2280 }
 0x1b7   : > { %v1770_v50 = vpop.f32.mrf.mxu2  ;;  %v1603_v33 = vpop.f32.mrf.mxu0 }
 0x1b8   : > { %v1814_v61 = vadd.f32 %v1770_v50, %v1701_v45 }
 0x1b9   : > { %2969 = vmatmul.msk.f32.gmra.mxu3 %vm724_vm2, %v3424_v39  ;;  %v692_v39 = vrot.slane %v4106_v3, 2 }
 0x1ba   : > { %2916 = vmatmul.msk.f32.gmra.mxu0 %vm724_vm2, %v4100_v62  ;;  %v1900_v60 = vadd.f32 %v1856_v53, %v1814_v61  ;;  %v1703_v52 = vpop.f32.mrf.mxu1 }
 0x1bb   : > { %v1704_v46 = vadd.f32 %v1703_v52, %v1603_v33  ;;  %v693_v35 = vsel %vm472_vm3, %v691_v27, %v692_v39  ;;  %v695_v40 = vsel %vm472_vm3, %v692_v39, %v694_v23  ;;  %v699_v33 = vrot.slane %v4159_v42, 2  ;;  %v4911_v52 = vld [vmem:[#allocation8_spill] sm:$0xff]  ;;  %v4913_v27 = vld [vmem:[#allocation38_spill] sm:$0xff] }
 0x1bc   : > { %2951 = vmatmul.msk.f32.gmra.mxu2 %vm724_vm2, %v3815_v8  ;;  %2342 = vrot.lane.b32.xlu0 %v1900_v60, %s3172_s26  ;;  %v1859_v2 = vpop.f32.mrf.mxu3  ;;  %v4914_v39 = vld [vmem:[#allocation28_spill] sm:$0xff] }
 0x1bd   : > { %2933 = vmatmul.msk.f32.gmra.mxu1 %vm724_vm2, %v690_v25 }
 0x1bf   : > { %v1773_v56 = vpop.f32.mrf.mxu2  ;;  %v1606_v63 = vpop.f32.mrf.mxu0 }
 0x1c0   : > { %v1815_v62 = vadd.f32 %v1773_v56, %v1704_v46  ;;  %v701_v56 = vrot.slane %v4914_v39, 2 }
 0x1c1   : > { %2970 = vmatmul.msk.f32.gmra.mxu3 %vm724_vm2, %v3454_v49 }
 0x1c2   : > { %2917 = vmatmul.msk.f32.gmra.mxu0 %vm724_vm2, %v4120_v16  ;;  %v1901_v8 = vadd.f32 %v1859_v2, %v1815_v62  ;;  %v1706_v19 = vpop.f32.mrf.mxu1  ;;  %v702_v62 = vrot.slane %v4178_v34, 2 }
 0x1c3   : > { %v1707_v21 = vadd.f32 %v1706_v19, %v1606_v63 }
 0x1c4   : > { %2952 = vmatmul.msk.f32.gmra.mxu2 %vm724_vm2, %v3832_v41  ;;  %2344 = vrot.lane.b32.xlu1 %v1901_v8, %s3172_s26  ;;  %v1862_v3 = vpop.f32.mrf.mxu3  ;;  %v4915_v8 = vld [vmem:[#allocation15_spill] sm:$0xff] }
 0x1c5   : > { %2934 = vmatmul.msk.f32.gmra.mxu1 %vm724_vm2, %v693_v35 }
 0x1c6   : > { %v2291_v0 = vpop.permute.xlu2 %2290 }
 0x1c7   : > { %v4397_v49 = vsel %vm2450_vm4, %v3908_v18, %v2291_v0  ;;  %v1776_v16 = vpop.f32.mrf.mxu2  ;;  %v1609_v36 = vpop.f32.mrf.mxu0  ;;  %v4916_v0 = vld [vmem:[#allocation9_spill] sm:$0xff] }
 0x1c8   : > { %v1816_v32 = vadd.f32 %v1776_v16, %v1707_v21 }
 0x1c9   : > { %2971 = vmatmul.msk.f32.gmra.mxu3 %vm724_vm2, %v3476_v55 }
 0x1ca   : > { %2918 = vmatmul.msk.f32.gmra.mxu0 %vm724_vm2, %v4136_v54  ;;  %v1902_v41 = vadd.f32 %v1862_v3, %v1816_v32  ;;  %v1709_v11 = vpop.f32.mrf.mxu1  ;;  %v697_v54 = vrot.slane %v4142_v4, 2  ;;  %v4917_v32 = vld [vmem:[#allocation39_spill] sm:$0xff] }
 0x1cb   : > { %v1710_v18 = vadd.f32 %v1709_v11, %v1609_v36  ;;  %v703_v36 = vsel %vm472_vm3, %v701_v56, %v702_v62  ;;  %v4926_v56 = vld [vmem:[#allocation33_spill] sm:$0xff] }
 0x1cc   : > { %2953 = vmatmul.msk.f32.gmra.mxu2 %vm724_vm2, %v3847_v9  ;;  %2346 = vrot.lane.b32.xlu2 %v1902_v41, %s3172_s26  ;;  %v1865_v26 = vpop.f32.mrf.mxu3  ;;  %v698_v48 = vsel %vm472_vm3, %v696_v44, %v697_v54  ;;  %v700_v2 = vsel %vm472_vm3, %v697_v54, %v699_v33  ;;  %v4919_v54 = vld [vmem:[#allocation10_spill] sm:$0xff]  ;;  %v707_v33 = vrot.slane %v4214_v51, 2 }
 0x1cd   : > { %2935 = vmatmul.msk.f32.gmra.mxu1 %vm724_vm2, %v695_v40  ;;  %v704_v40 = vrot.slane %v4195_v12, 2 }
 0x1ce   : > { %v2287_v55 = vpop.permute.xlu0 %2286 }
 0x1cf   : > { %v4414_v14 = vsel %vm2450_vm4, %v3876_v22, %v2287_v55  ;;  %v1779_v10 = vpop.f32.mrf.mxu2  ;;  %v1612_v45 = vpop.f32.mrf.mxu0 }
 0x1d0   : > { %v1817_v9 = vadd.f32 %v1779_v10, %v1710_v18  ;;  %v4918_v18 = vld [vmem:[#allocation11_spill] sm:$0xff]  ;;  %v4920_v10 = vld [vmem:[#allocation30_spill] sm:$0xff] }
 0x1d1   : > { %2972 = vmatmul.msk.f32.gmra.mxu3 %vm724_vm2, %v3506_v1 }
 0x1d2   : > { %2919 = vmatmul.msk.f32.gmra.mxu0 %vm724_vm2, %v4156_v15  ;;  %v1903_v53 = vadd.f32 %v1865_v26, %v1817_v9  ;;  %v1712_v5 = vpop.f32.mrf.mxu1 }
 0x1d3   : > { %v1713_v22 = vadd.f32 %v1712_v5, %v1612_v45  ;;  %v4921_v5 = vld [vmem:[#allocation40_spill] sm:$0xff] }
 0x1d4   : > { %2954 = vmatmul.msk.f32.gmra.mxu2 %vm724_vm2, %v3864_v57  ;;  %2348 = vrot.lane.b32.xlu0 %v1903_v53, %s3172_s26  ;;  %v1868_v4 = vpop.f32.mrf.mxu3  ;;  %v4912_v57 = vld [vmem:[#allocation27_spill] sm:$0xff]  ;;  %v705_v53 = vsel %vm472_vm3, %v702_v62, %v704_v40 }
 0x1d5   : > { %2936 = vmatmul.msk.f32.gmra.mxu1 %vm724_vm2, %v698_v48  ;;  %v4927_v62 = vld [vmem:[#allocation23_spill] sm:$0xff] }
 0x1d6   : > { %v2289_v50 = vpop.permute.xlu1 %2288 }
 0x1d7   : > { %v4428_v1 = vsel %vm2450_vm4, %v3893_v24, %v2289_v50  ;;  %v1782_v15 = vpop.f32.mrf.mxu2  ;;  %v1615_v61 = vpop.f32.mrf.mxu0 }
 0x1d8   : > { %v1818_v60 = vadd.f32 %v1782_v15, %v1713_v22  ;;  %v4922_v22 = vld [vmem:[#allocation31_spill] sm:$0xff]  ;;  %v4923_v15 = vld [vmem:[#allocation13_spill] sm:$0xff] }
 0x1d9   : > { %2973 = vmatmul.msk.f32.gmra.mxu3 %vm724_vm2, %v4911_v52 }
 0x1da   : > { %2920 = vmatmul.msk.f32.gmra.mxu0 %vm724_vm2, %v4912_v57  ;;  %v1904_v25 = vadd.f32 %v1868_v4, %v1818_v60  ;;  %v1715_v46 = vpop.f32.mrf.mxu1  ;;  %v706_v4 = vrot.slane %v4922_v22, 2 }
 0x1db   : > { %v1716_v24 = vadd.f32 %v1715_v46, %v1615_v61 }
 0x1dc   : > { %2955 = vmatmul.msk.f32.gmra.mxu2 %vm724_vm2, %v4913_v27  ;;  %2350 = vrot.lane.b32.xlu1 %v1904_v25, %s3172_s26  ;;  %v1871_v42 = vpop.f32.mrf.mxu3  ;;  %v4924_v25 = vld [vmem:[#allocation16_spill] sm:$0xff]  ;;  %v708_v27 = vsel %vm472_vm3, %v706_v4, %v707_v33 }
 0x1dd   : > { %2937 = vmatmul.msk.f32.gmra.mxu1 %vm724_vm2, %v700_v2 }
 0x1de   : > { %v2297_v63 = vpop.permute.xlu2 %2296 }
 0x1df   : > { %v4443_v19 = vsel %vm2450_vm4, %v4915_v8, %v2297_v63  ;;  %v1785_v35 = vpop.f32.mrf.mxu2  ;;  %v1618_v21 = vpop.f32.mrf.mxu0  ;;  %v709_v63 = vrot.slane %v4926_v56, 2  ;;  %v4940_v56 = vld [vmem:[#allocation6_spill] sm:$0xff] }
 0x1e0   : > { %v1819_v3 = vadd.f32 %v1785_v35, %v1716_v24  ;;  %v4925_v24 = vld [vmem:[#allocation12_spill] sm:$0xff] }
 0x1e1   : > { %2974 = vmatmul.msk.f32.gmra.mxu3 %vm724_vm2, %v4916_v0  ;;  %v4929_v0 = vld [vmem:[#allocation34_spill] sm:$0xff] }
 0x1e2   : > { %2921 = vmatmul.msk.f32.gmra.mxu0 %vm724_vm2, %v4192_v58  ;;  %v1905_v23 = vadd.f32 %v1871_v42, %v1819_v3  ;;  %v1718_v16 = vpop.f32.mrf.mxu1  ;;  %v4928_v3 = vld [vmem:[#allocation20_spill] sm:$0xff] }
 0x1e3   : > { %v1719_v34 = vadd.f32 %v1718_v16, %v1618_v21 }
 0x1e4   : > { %2956 = vmatmul.msk.f32.gmra.mxu2 %vm724_vm2, %v4917_v32  ;;  %2352 = vrot.lane.b32.xlu2 %v1905_v23, %s3172_s26  ;;  %v1874_v41 = vpop.f32.mrf.mxu3  ;;  %v4930_v32 = vld [vmem:[#allocation14_spill] sm:$0xff] }
 0x1e5   : > { %2938 = vmatmul.msk.f32.gmra.mxu1 %vm724_vm2, %v703_v36  ;;  %v710_v36 = vsel %vm472_vm3, %v707_v33, %v709_v63  ;;  %v716_v63 = vrot.slane %v4940_v56, 2 }
 0x1e6   : > { %v2293_v11 = vpop.permute.xlu0 %2292 }
 0x1e7   : > { %v4457_v26 = vsel %vm2450_vm4, %v4918_v18, %v2293_v11  ;;  %v1788_v58 = vpop.f32.mrf.mxu2  ;;  %v1621_v44 = vpop.f32.mrf.mxu0  ;;  %v4931_v11 = vld [vmem:[#allocation35_spill] sm:$0xff] }
 0x1e8   : > { %v1820_v55 = vadd.f32 %v1788_v58, %v1719_v34  ;;  %v711_v40 = vrot.slane %v4931_v11, 2  ;;  %v712_v58 = vrot.slane %v4250_v7, 2  ;;  %v719_v11 = vrot.slane %v4303_v59, 2 }
 0x1e9   : > { %2975 = vmatmul.msk.f32.gmra.mxu3 %vm724_vm2, %v4919_v54 }
 0x1ea   : > { %2922 = vmatmul.msk.f32.gmra.mxu0 %vm724_vm2, %v4920_v10  ;;  %v1906_v45 = vadd.f32 %v1874_v41, %v1820_v55  ;;  %v1721_v9 = vpop.f32.mrf.mxu1 }
 0x1eb   : > { %v1722_v12 = vadd.f32 %v1721_v9, %v1621_v44  ;;  %v4932_v44 = vld [vmem:[#allocation18_spill] sm:$0xff]  ;;  %v4933_v9 = vld [vmem:[#allocation25_spill] sm:$0xff] }
 0x1ec   : > { %2957 = vmatmul.msk.f32.gmra.mxu2 %vm724_vm2, %v4921_v5  ;;  %2354 = vrot.lane.b32.xlu0 %v1906_v45, %s3172_s26  ;;  %v1877_v48 = vpop.f32.mrf.mxu3 }
 0x1ed   : > { %2939 = vmatmul.msk.f32.gmra.mxu1 %vm724_vm2, %v705_v53 }
 0x1ee   : > { %v2295_v50 = vpop.permute.xlu1 %2294 }
 0x1ef   : > { %v4472_v61 = vsel %vm2450_vm4, %v4923_v15, %v2295_v50  ;;  %v1791_v60 = vpop.f32.mrf.mxu2  ;;  %v1624_v52 = vpop.f32.mrf.mxu0  ;;  %v4935_v50 = vld [vmem:[#allocation5_spill] sm:$0xff] }
 0x1f0   : > { %v1821_v57 = vadd.f32 %v1791_v60, %v1722_v12  ;;  %v713_v12 = vsel %vm472_vm3, %v711_v40, %v712_v58  ;;  %v714_v33 = vrot.slane %v4935_v50, 2  ;;  %v4936_v15 = vld [vmem:[#allocation21_spill] sm:$0xff]  ;;  %v4943_v40 = vld [vmem:[#allocation26_spill] sm:$0xff] }
 0x1f1   : > { %2976 = vmatmul.msk.f32.gmra.mxu3 %vm724_vm2, %v4924_v25  ;;  %v4937_v25 = vld [vmem:[#allocation29_spill] sm:$0xff] }
 0x1f2   : > { %2923 = vmatmul.msk.f32.gmra.mxu0 %vm724_vm2, %v4228_v13  ;;  %v1907_v46 = vadd.f32 %v1877_v48, %v1821_v57  ;;  %v1724_v2 = vpop.f32.mrf.mxu1  ;;  %v4934_v48 = vld [vmem:[#allocation17_spill] sm:$0xff] }
 0x1f3   : > { %v1725_v51 = vadd.f32 %v1724_v2, %v1624_v52 }
 0x1f4   : > { %2958 = vmatmul.msk.f32.gmra.mxu2 %vm724_vm2, %v4925_v24  ;;  %2356 = vrot.lane.b32.xlu1 %v1907_v46, %s3172_s26  ;;  %v1880_v42 = vpop.f32.mrf.mxu3  ;;  %v4938_v46 = vld [vmem:[#allocation7_spill] sm:$0xff]  ;;  %v715_v24 = vsel %vm472_vm3, %v712_v58, %v714_v33 }
 0x1f5   : > { %2940 = vmatmul.msk.f32.gmra.mxu1 %vm724_vm2, %v708_v27 }
 0x1f6   : > { %v2303_v39 = vpop.permute.xlu2 %2302 }
 0x1f7   : > { %v4486_v8 = vsel %vm2450_vm4, %v4927_v62, %v2303_v39  ;;  %v1794_v13 = vpop.f32.mrf.mxu2  ;;  %v1627_v35 = vpop.f32.mrf.mxu0 }
 0x1f8   : > { %v1822_v21 = vadd.f32 %v1794_v13, %v1725_v51  ;;  %v4939_v51 = vld [vmem:[#allocation19_spill] sm:$0xff]  ;;  %v717_v13 = vrot.slane %v4286_v47, 2 }
 0x1f9   : > { %2977 = vmatmul.msk.f32.gmra.mxu3 %vm724_vm2, %v4928_v3 }
 0x1fa   : > { %2924 = vmatmul.msk.f32.gmra.mxu0 %vm724_vm2, %v4929_v0  ;;  %v1908_v23 = vadd.f32 %v1880_v42, %v1822_v21  ;;  %v1727_v16 = vpop.f32.mrf.mxu1 }
 0x1fb   : > { %v1728_v34 = vadd.f32 %v1727_v16, %v1627_v35 }
 0x1fc   : > { %2959 = vmatmul.msk.f32.gmra.mxu2 %vm724_vm2, %v4930_v32  ;;  %2358 = vrot.lane.b32.xlu2 %v1908_v23, %s3172_s26  ;;  %v1883_v41 = vpop.f32.mrf.mxu3  ;;  %v4941_v23 = vld [vmem:[#allocation32_spill] sm:$0xff]  ;;  %v718_v32 = vsel %vm472_vm3, %v716_v63, %v717_v13 }
 0x1fd   : > { %2941 = vmatmul.msk.f32.gmra.mxu1 %vm724_vm2, %v710_v36 }
 0x1fe   : > { %v2299_v18 = vpop.permute.xlu0 %2298 }
 0x1ff   : > { %v4501_v55 = vsel %vm2450_vm4, %v4932_v44, %v2299_v18  ;;  %v1797_v54 = vpop.f32.mrf.mxu2  ;;  %v1630_v10 = vpop.f32.mrf.mxu0 }
 0x200   : > { %v1823_v45 = vadd.f32 %v1797_v54, %v1728_v34  ;;  %v4942_v34 = vld [vmem:[#allocation22_spill] sm:$0xff] }
 0x201   : > { %2978 = vmatmul.msk.f32.gmra.mxu3 %vm724_vm2, %v4933_v9  ;;  %v4944_v9 = vld [vmem:[#allocation24_spill] sm:$0xff] }
 0x202   : > { %2925 = vmatmul.msk.f32.gmra.mxu0 %vm724_vm2, %v4264_v38  ;;  %v1909_v53 = vadd.f32 %v1883_v41, %v1823_v45  ;;  %v1730_v5 = vpop.f32.mrf.mxu1  ;;  %v720_v45 = vsel %vm472_vm3, %v717_v13, %v719_v11 }
 0x203   : > { %v1731_v7 = vadd.f32 %v1730_v5, %v1630_v10 }
 0x204   : > { %2960 = vmatmul.msk.f32.gmra.mxu2 %vm724_vm2, %v4934_v48  ;;  %2360 = vrot.lane.b32.xlu0 %v1909_v53, %s3172_s26  ;;  %v1886_v22 = vpop.f32.mrf.mxu3 }
 0x205   : > { %2942 = vmatmul.msk.f32.gmra.mxu1 %vm724_vm2, %v713_v12 }
 0x206   : > { %v2301_v4 = vpop.permute.xlu1 %2300 }
 0x207   : > { %v4515_v60 = vsel %vm2450_vm4, %v4936_v15, %v2301_v4  ;;  %v1800_v38 = vpop.f32.mrf.mxu2  ;;  %v1633_v52 = vpop.f32.mrf.mxu0 }
 0x208   : > { %v1824_v57 = vadd.f32 %v1800_v38, %v1731_v7 }
 0x209   : > { %2979 = vmatmul.msk.f32.gmra.mxu3 %vm724_vm2, %v4937_v25 }
 0x20a   : > { %2926 = vmatmul.msk.f32.gmra.mxu0 %vm724_vm2, %v4938_v46  ;;  %v1910_v2 = vadd.f32 %v1886_v22, %v1824_v57  ;;  %v1733_v27 = vpop.f32.mrf.mxu1 }
 0x20b   : > { %v1734_v42 = vadd.f32 %v1733_v27, %v1633_v52 }
 0x20c   : > { %2961 = vmatmul.msk.f32.gmra.mxu2 %vm724_vm2, %v4939_v51  ;;  %2362 = vrot.lane.b32.xlu1 %v1910_v2, %s3172_s26  ;;  %v1889_v39 = vpop.f32.mrf.mxu3 }
 0x20d   : > { %2943 = vmatmul.msk.f32.gmra.mxu1 %vm724_vm2, %v715_v24 }
 0x20e   : > { %v2341_v62 = vpop.permute.xlu2 %2340 }
 0x20f   : > { %v4530_v35 = vsel %vm2467_vm5, %v4339_v17, %v2341_v62  ;;  %v1803_v21 = vpop.f32.mrf.mxu2  ;;  %v1636_v3 = vpop.f32.mrf.mxu0 }
 0x210   : > { %v1825_v0 = vadd.f32 %v1803_v21, %v1734_v42 }
 0x211   : > { %2980 = vmatmul.msk.f32.gmra.mxu3 %vm724_vm2, %v4941_v23 }
 0x212   : > { %2927 = vmatmul.msk.f32.gmra.mxu0 %vm724_vm2, %v4300_v37  ;;  %v1911_v16 = vadd.f32 %v1889_v39, %v1825_v0  ;;  %v1736_v36 = vpop.f32.mrf.mxu1 }
 0x213   : > { %v1737_v47 = vadd.f32 %v1736_v36, %v1636_v3 }
 0x214   : > { %2962 = vmatmul.msk.f32.gmra.mxu2 %vm724_vm2, %v4942_v34  ;;  %2364 = vrot.lane.b32.xlu2 %v1911_v16, %s3172_s26  ;;  %v1892_v17 = vpop.f32.mrf.mxu3 }
 0x215   : > { %2944 = vmatmul.msk.f32.gmra.mxu1 %vm724_vm2, %v718_v32 }
 0x216   : > { %v2305_v41 = vpop.permute.xlu0 %2304 }
 0x217   : > { %v4544_v18 = vsel %vm2450_vm4, %v4943_v40, %v2305_v41  ;;  %v1806_v37 = vpop.f32.mrf.mxu2  ;;  %v1639_v58 = vpop.f32.mrf.mxu0 }
 0x218   : > { %v1826_v44 = vadd.f32 %v1806_v37, %v1737_v47 }
 0x219   : > { %2981 = vmatmul.msk.f32.gmra.mxu3 %vm724_vm2, %v4894_v30 }
 0x21a   : > { %2928 = vmatmul.msk.f32.gmra.mxu0 %vm724_vm2, %v4316_v28  ;;  %v1912_v54 = vadd.f32 %v1892_v17, %v1826_v44  ;;  %v1739_v10 = vpop.f32.mrf.mxu1 }
 0x21b   : > { %v1740_v59 = vadd.f32 %v1739_v10, %v1639_v58 }
 0x21c   : > { %2963 = vmatmul.msk.f32.gmra.mxu2 %vm724_vm2, %v4944_v9  ;;  %2366 = vrot.lane.b32.xlu0 %v1912_v54, %s3172_s26  ;;  %v1895_v53 = vpop.f32.mrf.mxu3 }
 0x21d   : > { %2945 = vmatmul.msk.f32.gmra.mxu1 %vm724_vm2, %v720_v45 }
 0x21f   : > { %v1809_v5 = vpop.f32.mrf.mxu2  ;;  %v1938_v12 = vpop.f32.mrf.mxu0 }
 0x220   : > { %v1827_v48 = vadd.f32 %v1809_v5, %v1740_v59 }
 0x222   : > { %v1913_v30 = vadd.f32 %v1895_v53, %v1827_v48  ;;  %v2038_v7 = vpop.f32.mrf.mxu1 }
 0x223   : > { %v2039_v28 = vadd.f32 %v2038_v7, %v1938_v12 }
 0x224   : > { %2368 = vrot.lane.b32.xlu1 %v1913_v30, %s3172_s26  ;;  %v2194_v22 = vpop.f32.mrf.mxu3 }
 0x226   : > { %v2347_v4 = vpop.permute.xlu2 %2346 }
 0x227   : > { %v4558_v50 = vsel %vm2467_vm5, %v4343_v6, %v2347_v4  ;;  %v2108_v33 = vpop.f32.mrf.mxu2  ;;  %v1941_v15 = vpop.f32.mrf.mxu0 }
 0x228   : > { %v2156_v38 = vadd.f32 %v2108_v33, %v2039_v28 }
 0x22a   : > { %v2242_v52 = vadd.f32 %v2194_v22, %v2156_v38  ;;  %v2041_v57 = vpop.f32.mrf.mxu1 }
 0x22b   : > { %v2042_v25 = vadd.f32 %v2041_v57, %v1941_v15 }
 0x22c   : > { %2402 = vrot.lane.b32.xlu2 %v2242_v52, %s3173_s16  ;;  %v2197_v46 = vpop.f32.mrf.mxu3 }
 0x22f   : > { %v2111_v2 = vpop.f32.mrf.mxu2  ;;  %v1944_v27 = vpop.f32.mrf.mxu0 }
 0x230   : > { %v2157_v24 = vadd.f32 %v2111_v2, %v2042_v25 }
 0x232   : > { %v2243_v51 = vadd.f32 %v2197_v46, %v2157_v24  ;;  %v2044_v42 = vpop.f32.mrf.mxu1  ;;  %v2339_v46 = vpop.permute.xlu1 %2338 }
 0x233   : > { %v2045_v39 = vadd.f32 %v2044_v42, %v1944_v27 }
 0x234   : > { %2404 = vrot.lane.b32.xlu0 %v2243_v51, %s3173_s16  ;;  %v2200_v6 = vpop.f32.mrf.mxu3 }
 0x237   : > { %v2114_v56 = vpop.f32.mrf.mxu2  ;;  %v1947_v63 = vpop.f32.mrf.mxu0 }
 0x238   : > { %v2158_v62 = vadd.f32 %v2114_v56, %v2045_v39 }
 0x23a   : > { %v2244_v13 = vadd.f32 %v2200_v6, %v2158_v62  ;;  %v2047_v21 = vpop.f32.mrf.mxu1 }
 0x23b   : > { %v2048_v3 = vadd.f32 %v2047_v21, %v1947_v63  ;;  %v4584_v63 = vpop.permute.xlu1 %2344 }
 0x23c   : > { %2406 = vrot.lane.b32.xlu1 %v2244_v13, %s3173_s16  ;;  %v2203_v0 = vpop.f32.mrf.mxu3 }
 0x23e   : > { %v2353_v23 = vpop.permute.xlu2 %2352 }
 0x23f   : > { %v4565_v16 = vsel %vm2467_vm5, %v4428_v1, %v2353_v23  ;;  %v2117_v36 = vpop.f32.mrf.mxu2  ;;  %v1950_v32 = vpop.f32.mrf.mxu0 }
 0x240   : > { %v2159_v34 = vadd.f32 %v2117_v36, %v2048_v3  ;;  %v4569_v1 = vpop.permute.xlu0 %2342 }
 0x242   : > { %v2245_v47 = vadd.f32 %v2203_v0, %v2159_v34  ;;  %v2050_v17 = vpop.f32.mrf.mxu1 }
 0x243   : > { %v2051_v41 = vadd.f32 %v2050_v17, %v1950_v32 }
 0x244   : > { %2408 = vrot.lane.b32.xlu2 %v2245_v47, %s3173_s16  ;;  %v2206_v11 = vpop.f32.mrf.mxu3 }
 0x247   : > { %v2120_v40 = vpop.f32.mrf.mxu2  ;;  %v1953_v37 = vpop.f32.mrf.mxu0 }
 0x248   : > { %v2160_v58 = vadd.f32 %v2120_v40, %v2051_v41  ;;  %v4572_v7 = vpop.permute.xlu0 %2348 }
 0x24a   : > { %v2246_v44 = vadd.f32 %v2206_v11, %v2160_v58  ;;  %v2053_v54 = vpop.f32.mrf.mxu1 }
 0x24b   : > { %v2054_v10 = vadd.f32 %v2053_v54, %v1953_v37 }
 0x24c   : > { %2410 = vrot.lane.b32.xlu0 %v2246_v44, %s3173_s16  ;;  %v2209_v45 = vpop.f32.mrf.mxu3 }
 0x24e   : > { %v4587_v36 = vpop.permute.xlu1 %2350 }
 0x24f   : > { %v2123_v9 = vpop.f32.mrf.mxu2  ;;  %v1956_v59 = vpop.f32.mrf.mxu0 }
 0x250   : > { %v2161_v53 = vadd.f32 %v2123_v9, %v2054_v10 }
 0x252   : > { %v2247_v5 = vadd.f32 %v2209_v45, %v2161_v53  ;;  %v2056_v12 = vpop.f32.mrf.mxu1 }
 0x253   : > { %v2057_v48 = vadd.f32 %v2056_v12, %v1956_v59 }
 0x254   : > { %2412 = vrot.lane.b32.xlu1 %v2247_v5, %s3173_s16  ;;  %v2212_v30 = vpop.f32.mrf.mxu3 }
 0x256   : > { %v2359_v28 = vpop.permute.xlu2 %2358 }
 0x257   : > { %v4576_v22 = vsel %vm2467_vm5, %v4472_v61, %v2359_v28  ;;  %v2126_v4 = vpop.f32.mrf.mxu2  ;;  %v1959_v33 = vpop.f32.mrf.mxu0 }
 0x258   : > { %v2162_v15 = vadd.f32 %v2126_v4, %v2057_v48 }
 0x25a   : > { %v2248_v38 = vadd.f32 %v2212_v30, %v2162_v15  ;;  %v2059_v52 = vpop.f32.mrf.mxu1 }
 0x25b   : > { %v2060_v57 = vadd.f32 %v2059_v52, %v1959_v33  ;;  %v4610_v52 = vld [vmem:[%s4757_s4] ss:$0 sm:$0xff] }
 0x25c   : > { %2414 = vrot.lane.b32.xlu2 %v2248_v38, %s3173_s16  ;;  %v2215_v25 = vpop.f32.mrf.mxu3 }
 0x25e   : > { %v2355_v2 = vpop.permute.xlu0 %2354 }
 0x25f   : > { %v4581_v27 = vsel %vm2467_vm5, %v4397_v49, %v2355_v2  ;;  %v2129_v24 = vpop.f32.mrf.mxu2  ;;  %v1962_v51 = vpop.f32.mrf.mxu0 }
 0x260   : > { %v2163_v42 = vadd.f32 %v2129_v24, %v2060_v57 }
 0x262   : > { %v2249_v61 = vadd.f32 %v2215_v25, %v2163_v42  ;;  %v2062_v39 = vpop.f32.mrf.mxu1 }
 0x263   : > { %v2063_v6 = vadd.f32 %v2062_v39, %v1962_v51 }
 0x264   : > { %2416 = vrot.lane.b32.xlu0 %v2249_v61, %s3173_s16  ;;  %v2218_v56 = vpop.f32.mrf.mxu3 }
 0x266   : > { %v4594_v44 = vpop.permute.xlu1 %2356 }
 0x267   : > { %v2132_v62 = vpop.f32.mrf.mxu2  ;;  %v1965_v13 = vpop.f32.mrf.mxu0 }
 0x268   : > { %v2164_v21 = vadd.f32 %v2132_v62, %v2063_v6 }
 0x26a   : > { %v2250_v3 = vadd.f32 %v2218_v56, %v2164_v21  ;;  %v2065_v0 = vpop.f32.mrf.mxu1 }
 0x26b   : > { %v2066_v49 = vadd.f32 %v2065_v0, %v1965_v13 }
 0x26c   : > { %2418 = vrot.lane.b32.xlu1 %v2250_v3, %s3173_s16  ;;  %v2221_v23 = vpop.f32.mrf.mxu3 }
 0x26e   : > { %v2365_v32 = vpop.permute.xlu2 %2364 }
 0x26f   : > { %v4591_v34 = vsel %vm2467_vm5, %v4515_v60, %v2365_v32  ;;  %v2135_v47 = vpop.f32.mrf.mxu2  ;;  %v1968_v17 = vpop.f32.mrf.mxu0 }
 0x270   : > { %v2165_v41 = vadd.f32 %v2135_v47, %v2066_v49 }
 0x272   : > { %v2251_v11 = vadd.f32 %v2221_v23, %v2165_v41  ;;  %v2068_v40 = vpop.f32.mrf.mxu1 }
 0x273   : > { %v2069_v37 = vadd.f32 %v2068_v40, %v1968_v17 }
 0x274   : > { %2420 = vrot.lane.b32.xlu2 %v2251_v11, %s3173_s16  ;;  %v2224_v58 = vpop.f32.mrf.mxu3 }
 0x276   : > { %v2361_v54 = vpop.permute.xlu0 %2360 }
 0x277   : > { %v4598_v10 = vsel %vm2467_vm5, %v4443_v19, %v2361_v54  ;;  %v2138_v45 = vpop.f32.mrf.mxu2  ;;  %v1971_v60 = vpop.f32.mrf.mxu0 }
 0x278   : > { %v2166_v9 = vadd.f32 %v2138_v45, %v2069_v37 }
 0x27a   : > { %v2252_v59 = vadd.f32 %v2224_v58, %v2166_v9  ;;  %v2071_v53 = vpop.f32.mrf.mxu1 }
 0x27b   : > { %v2072_v5 = vadd.f32 %v2071_v53, %v1971_v60  ;;  %v4946_v60 = vld [vmem:[#allocation37_spill] sm:$0xff] }
 0x27c   : > { %2422 = vrot.lane.b32.xlu0 %v2252_v59, %s3173_s16  ;;  %v2227_v12 = vpop.f32.mrf.mxu3  ;;  %v2454_v9 = vsel %vm2450_vm4, %v4946_v60, %v4409_v29 }
 0x27d   : > { %v2471_v59 = vsel %vm2467_vm5, %v2454_v9, %v4584_v63 }
 0x27e   : > { %v2363_v48 = vpop.permute.xlu1 %2362 }
 0x27f   : > { %v4603_v30 = vsel %vm2467_vm5, %v4501_v55, %v2363_v48  ;;  %v2141_v28 = vpop.f32.mrf.mxu2  ;;  %v1974_v4 = vpop.f32.mrf.mxu0  ;;  %v4945_v55 = vld [vmem:[#allocation36_spill] sm:$0xff] }
 0x280   : > { %v2167_v33 = vadd.f32 %v2141_v28, %v2072_v5  ;;  %v2451_v25 = vsel %vm2450_vm4, %v4945_v55, %v4324_v31  ;;  %v2474_v55 = vsel %vm2467_vm5, %v4414_v14, %v4587_v36 }
 0x281   : > { %v2468_v2 = vsel %vm2467_vm5, %v2451_v25, %v2339_v46 }
 0x282   : > { %v2253_v19 = vadd.f32 %v2227_v12, %v2167_v33  ;;  %v2074_v15 = vpop.f32.mrf.mxu1 }
 0x283   : > { %v2075_v38 = vadd.f32 %v2074_v15, %v1974_v4 }
 0x284   : > { %2424 = vrot.lane.b32.xlu1 %v2253_v19, %s3173_s16  ;;  %v2230_v57 = vpop.f32.mrf.mxu3  ;;  %v2470_v19 = vsel %vm2467_vm5, %v4358_v43, %v4569_v1 }
 0x286   : > { %v2403_v24 = vpop.permute.xlu2 %2402 }
 0x287   : > { %v2485_v51 = vsel %vm2484_vm6, %v2468_v2, %v2403_v24  ;;  %v2144_v42 = vpop.f32.mrf.mxu2  ;;  %v1977_v61 = vpop.f32.mrf.mxu0 }
 0x288   : > { %v2505_v39 = vadd.f32 %v4610_v52, %v2485_v51  ;;  %v2168_v6 = vadd.f32 %v2144_v42, %v2075_v38  ;;  %v2473_v51 = vsel %vm2467_vm5, %v4362_v20, %v4572_v7 }
 0x28a   : > { %2521 = vst [vmem:[%s4620_s9] sm:$0xff] %v2505_v39  ;;  %v2254_v56 = vadd.f32 %v2230_v57, %v2168_v6  ;;  %v2077_v62 = vpop.f32.mrf.mxu1 }
 0x28b   : > { %v2078_v13 = vadd.f32 %v2077_v62, %v1977_v61  ;;  %v2477_v61 = vsel %vm2467_vm5, %v4457_v26, %v4594_v44 }
 0x28c   : > { %2426 = vrot.lane.b32.xlu2 %v2254_v56, %s3173_s16  ;;  %v2233_v31 = vpop.f32.mrf.mxu3 }
 0x28e   : > { %v2367_v21 = vpop.permute.xlu0 %2366 }
 0x28f   : > { %v4626_v46 = vsel %vm2467_vm5, %v4486_v8, %v2367_v21  ;;  %v2147_v3 = vpop.f32.mrf.mxu2  ;;  %v1980_v0 = vpop.f32.mrf.mxu0 }
 0x290   : > { %v2169_v49 = vadd.f32 %v2147_v3, %v2078_v13 }
 0x292   : > { %v2255_v23 = vadd.f32 %v2233_v31, %v2169_v49  ;;  %v2080_v32 = vpop.f32.mrf.mxu1 }
 0x293   : > { %v2081_v47 = vadd.f32 %v2080_v32, %v1980_v0 }
 0x294   : > { %2428 = vrot.lane.b32.xlu0 %v2255_v23, %s3173_s16  ;;  %v2236_v17 = vpop.f32.mrf.mxu3 }
 0x296   : > { %v2369_v41 = vpop.permute.xlu1 %2368 }
 0x297   : > { %v4631_v11 = vsel %vm2467_vm5, %v4544_v18, %v2369_v41  ;;  %v2150_v40 = vpop.f32.mrf.mxu2  ;;  %v1983_v58 = vpop.f32.mrf.mxu0 }
 0x298   : > { %v2170_v37 = vadd.f32 %v2150_v40, %v2081_v47 }
 0x29a   : > { %v2256_v8 = vadd.f32 %v2236_v17, %v2170_v37  ;;  %v2083_v54 = vpop.f32.mrf.mxu1 }
 0x29b   : > { %v2084_v45 = vadd.f32 %v2083_v54, %v1983_v58 }
 0x29c   : > { %2430 = vrot.lane.b32.xlu1 %v2256_v8, %s3173_s16  ;;  %v2239_v12 = vpop.f32.mrf.mxu3 }
 0x29e   : > { %v2409_v53 = vpop.permute.xlu2 %2408 }
 0x29f   : > { %v2488_v18 = vsel %vm2484_vm6, %v2471_v59, %v2409_v53  ;;  %v2153_v5 = vpop.f32.mrf.mxu2 }
 0x2a0   : > { %v2508_v48 = vadd.f32 %v4610_v52, %v2488_v18  ;;  %v2171_v28 = vadd.f32 %v2153_v5, %v2084_v45 }
 0x2a2   : > { %2524 = vst [vmem:[%s4620_s9 + $0x18] sm:$0xff] %v2508_v48  ;;  %v2257_v4 = vadd.f32 %v2239_v12, %v2171_v28 }
 0x2a4   : > { %2432 = vrot.lane.b32.xlu2 %v2257_v4, %s3173_s16  ;;  %s2552_s16 = scalar_lea.hbm %s4758_s5, %s2986_s27 }
 0x2a5   : > { %s2555_s21 = sshll.u32 %s2552_s16, 4  ;;  %s2556_s21 = int_to_ptr.hbm [resolvable:$true] %s2555_s21 }
 0x2a6   : > { %v2405_v33 = vpop.permute.xlu0 %2404  ;;  %s3089_s30 = sshra.s32 %s2556_s21, 4  ;;  %s3090_s30 = int_to_ptr.hbm [resolvable:$true] %s3089_s30 }
 0x2a7   : > { %v2486_v29 = vsel %vm2484_vm6, %v4530_v35, %v2405_v33  ;;  %s3091_s8 = scalar_lea.hbm %s3090_s30, 128  ;;  %p3096_p4 = scmp.lt.s32.totalorder %s3090_s30, %s4758_s5 }
 0x2a8   : > { %v2506_v63 = vadd.f32 %v4610_v52, %v2486_v29  ;;  %p3092_p0 = scmp.ne.s32.totalorder %s3090_s30, %s3091_s8  ;;  %p3097_p5 = scmp.lt.s32.totalorder %s3095_s15, %s3091_s8 }
 0x2aa   : > { %2522 = vst [vmem:[%s4620_s9 + $0x8] sm:$0xff] %v2506_v63  ;;  %p3093_p1 = pnand %p3092_p0, %p3257_p3  ;;  %p3098_p6 = por %p3097_p5, %p3096_p4 }
 0x2ac   : > { %p3094_p2 = pneg %p3093_p1 }
 0x2ae   : > { %v2407_v15 = vpop.permute.xlu1 %2406  ;;  %p3099_p7 = pnand %p3098_p6, %p3094_p2 }
 0x2af   : > { %v2487_v38 = vsel %vm2484_vm6, %v2470_v19, %v2407_v15 }
 0x2b0   : > { %v2507_v57 = vadd.f32 %v4610_v52, %v2487_v38 }
 0x2b2   : > { %2523 = vst [vmem:[%s4620_s9 + $0x10] sm:$0xff] %v2507_v57 }
 0x2b6   : > { %v2415_v35 = vpop.permute.xlu2 %2414 }
 0x2b7   : > { %v2491_v25 = vsel %vm2484_vm6, %v2474_v55, %v2415_v35 }
 0x2b8   : > { %v2511_v2 = vadd.f32 %v4610_v52, %v2491_v25 }
 0x2ba   : > { %2527 = vst [vmem:[%s4620_s9 + $0x30] sm:$0xff] %v2511_v2 }
 0x2be   : > { %v2411_v24 = vpop.permute.xlu0 %2410 }
 0x2bf   : > { %v2489_v43 = vsel %vm2484_vm6, %v4558_v50, %v2411_v24 }
 0x2c0   : > { %v2509_v1 = vadd.f32 %v4610_v52, %v2489_v43 }
 0x2c2   : > { %2525 = vst [vmem:[%s4620_s9 + $0x20] sm:$0xff] %v2509_v1 }
 0x2c6   : > { %v2413_v14 = vpop.permute.xlu1 %2412 }
 0x2c7   : > { %v2490_v36 = vsel %vm2484_vm6, %v2473_v51, %v2413_v14 }
 0x2c8   : > { %v2510_v42 = vadd.f32 %v4610_v52, %v2490_v36 }
 0x2ca   : > { %2526 = vst [vmem:[%s4620_s9 + $0x28] sm:$0xff] %v2510_v42 }
 0x2ce   : > { %v2421_v50 = vpop.permute.xlu2 %2420 }
 0x2cf   : > { %v2494_v39 = vsel %vm2484_vm6, %v2477_v61, %v2421_v50 }
 0x2d0   : > { %v2514_v6 = vadd.f32 %v4610_v52, %v2494_v39 }
 0x2d2   : > { %2530 = vst [vmem:[%s4620_s9 + $0x48] sm:$0xff] %v2514_v6 }
 0x2d6   : > { %v2417_v20 = vpop.permute.xlu0 %2416 }
 0x2d7   : > { %v2492_v7 = vsel %vm2484_vm6, %v4565_v16, %v2417_v20 }
 0x2d8   : > { %v2512_v56 = vadd.f32 %v4610_v52, %v2492_v7 }
 0x2da   : > { %2528 = vst [vmem:[%s4620_s9 + $0x38] sm:$0xff] %v2512_v56 }
 0x2de   : > { %v2419_v62 = vpop.permute.xlu1 %2418 }
 0x2df   : > { %v2493_v26 = vsel %vm2484_vm6, %v4581_v27, %v2419_v62 }
 0x2e0   : > { %v2513_v44 = vadd.f32 %v4610_v52, %v2493_v26 }
 0x2e2   : > { %2529 = vst [vmem:[%s4620_s9 + $0x40] sm:$0xff] %v2513_v44 }
 0x2e6   : > { %v2427_v13 = vpop.permute.xlu2 %2426 }
 0x2e7   : > { %v2497_v31 = vsel %vm2484_vm6, %v4603_v30, %v2427_v13 }
 0x2e8   : > { %v2517_v16 = vadd.f32 %v4610_v52, %v2497_v31 }
 0x2ea   : > { %2533 = vst [vmem:[%s4620_s9 + $0x60] sm:$0xff] %v2517_v16 }
 0x2ee   : > { %v2423_v21 = vpop.permute.xlu0 %2422 }
 0x2ef   : > { %v2495_v3 = vsel %vm2484_vm6, %v4576_v22, %v2423_v21 }
 0x2f0   : > { %v2515_v0 = vadd.f32 %v4610_v52, %v2495_v3 }
 0x2f2   : > { %2531 = vst [vmem:[%s4620_s9 + $0x50] sm:$0xff] %v2515_v0 }
 0x2f6   : > { %v2425_v27 = vpop.permute.xlu1 %2424 }
 0x2f7   : > { %v2496_v49 = vsel %vm2484_vm6, %v4598_v10, %v2425_v27 }
 0x2f8   : > { %v2516_v23 = vadd.f32 %v4610_v52, %v2496_v49 }
 0x2fa   : > { %2532 = vst [vmem:[%s4620_s9 + $0x58] sm:$0xff] %v2516_v23 }
 0x2fe   : > { %v2433_v30 = vpop.permute.xlu2 %2432 }
 0x2ff   : > { %v2500_v32 = vsel %vm2484_vm6, %v4631_v11, %v2433_v30 }
 0x300   : > { %v2520_v47 = vadd.f32 %v4610_v52, %v2500_v32 }
 0x302   : > { %2536 = vst [vmem:[%s4620_s9 + $0x78] sm:$0xff] %v2520_v47 }
 0x306   : > { %v2429_v22 = vpop.permute.xlu0 %2428 }
 0x307   : > { %v2498_v10 = vsel %vm2484_vm6, %v4591_v34, %v2429_v22 }
 0x308   : > { %v2518_v17 = vadd.f32 %v4610_v52, %v2498_v10 }
 0x30a   : > { %2534 = vst [vmem:[%s4620_s9 + $0x68] sm:$0xff] %v2518_v17 }
 0x30e   : > { %v2431_v41 = vpop.permute.xlu1 %2430 }
 0x30f   : > { %v2499_v11 = vsel %vm2484_vm6, %v4626_v46, %v2431_v41 }
 0x310   : > { %v2519_v40 = vadd.f32 %v4610_v52, %v2499_v11 }
 0x312   : > { %2535 = vst [vmem:[%s4620_s9 + $0x70] sm:$0xff] %v2519_v40 }
 0x313   : > { %3102 = shalt.err (!%p3099_p7)
}
 0x314   : > { %s3174_s14 = smov 128   ;;  %s3175_s9 = smov 8  }
 0x315   : > { %2992 = dma.vmem_to_hbm [thread:$0]  (%p3257_p3), %s2554_s17, 2048, %s2556_s21, %s2538_s22, %s3174_s14, %s3174_s14, %s3175_s9  }
 0x316 PF: > { %p2998_p9 = scmp.ge.s32.totalorder %s3169_s25, 2  ;;  %s2570_s26 = sand.u32 1, %s3141_s18  }
 0x317   : > { %s2571_s16 = scalar_lea.sflag [#allocation3], %s2570_s26 }
 0x318   : > { %p2995_p10 = pnand %p2998_p9, %p3266_p8 }
 0x31a   : > { %p2996_p11 = pneg %p2995_p10 }
 0x31c   : > { %3136 = dma.done.wait (%p2996_p11), %s2571_s16, 2048  }
 0x31d   : > { %3138 = vsyncadd (%p2996_p11), %s2571_s16, 4294965248  ;;  %s18_s25 = sadd.s32 1, %s3169_s25   ;;  %s4947_s18 = smov %s3145_s19 }
 0x31e   : > { %p15_p12 = scmp.ge.s32.totalorder %s18_s25, 6   ;;  %s4948_s19 = smov %s3149_s20 }
 0x31f   : > { %s4949_s20 = smov %s3275_s11  ;;  %s4950_s21 = smov %s3161_s23 }
 0x320   : > { %s4951_s22 = smov %s3165_s24  ;;  %s4952_s23 = smov %s4955_s28 }
 0x321   : > { %s4953_s24 = smov %s4959_s29  ;;  %17 = sbr.rel (!%p15_p12) target bundleno = 5 (0x5), region = 96 }
 0x326   :  { %2577 = vsyncpa [#allocation3], 1 }
 0x327   :  { %2579 = vsyncpa [#allocation3 + $0x1], 1 }

</bundles_post_ra>
